<compile_context>
chip_gen: v5e
topology: v5e:2x2
jax: 0.10.0
libtpu: 0.0.40
codegen_flags: <defaults>
</compile_context>

<pallas_src>
import jax
import jax.numpy as jnp
from jax import lax
from jax.experimental import pallas as pl
from jax.experimental.pallas import tpu as pltpu

BN_EPS = 1e-5
MXU_DTYPE = jnp.bfloat16          # MXU operand dtype (accumulation stays f32)
VMEM_LIMIT = 32 * 1024 * 1024     # explicit, fits every generation incl. v7x


# --------------------------------------------------------------------------- #
# Kernel A: ConvTranspose2d(k=2, s=2) == per-pixel channel matmul + bias.     #
# Native NCHW layout: channels on sublanes, spatial on lanes. bf16 output.    #
# --------------------------------------------------------------------------- #
def _convt_kernel(x1_ref, wt_ref, bias_ref, y_ref):
    x = x1_ref[0].astype(MXU_DTYPE)                       # cast once
    y = jnp.dot(wt_ref[...], x, preferred_element_type=jnp.float32)
    y_ref[0] = (y + bias_ref[...]).astype(MXU_DTYPE)      # (4*Cm, H1*W1)


def conv_transpose(x1_r, wt_mat, bias_col):
    B, Cin, L1 = x1_r.shape
    C4 = wt_mat.shape[0]
    return pl.pallas_call(
        _convt_kernel,
        grid=(B,),
        in_specs=[
            pl.BlockSpec((1, Cin, L1), lambda b: (b, 0, 0)),
            pl.BlockSpec((C4, Cin), lambda b: (0, 0)),
            pl.BlockSpec((C4, 1), lambda b: (0, 0)),
        ],
        out_specs=pl.BlockSpec((1, C4, L1), lambda b: (b, 0, 0)),
        out_shape=jax.ShapeDtypeStruct((B, C4, L1), MXU_DTYPE),
        compiler_params=pltpu.CompilerParams(
            dimension_semantics=("parallel",),
            vmem_limit_bytes=VMEM_LIMIT),
    )(x1_r, wt_mat, bias_col)


# --------------------------------------------------------------------------- #
# Kernel B: conv1 with the channel concat AND the zero padding fused.         #
#   - builds the padded concat image (Cin, Lpad) in VMEM from unpadded inputs #
#   - builds a (9*Cin, Lz) im2col in VMEM (9 shifted slices)                  #
#   - one stacked MXU matmul, per-image BN partial stats (sum, sumsq)         #
# --------------------------------------------------------------------------- #
def _make_conv1_kernel(H, W, C2, Cm, Co):
    Cin = C2 + Cm
    Wp = W + 2                    # width incl. left/right pad (wrap columns)
    Lz = H * Wp                   # conv output positions (wrap cols masked)
    Lpad = (H + 2) * Wp + 2       # padded image + slack for the last tap
    PAD0 = Wp + 1                 # flat offset of valid pixel (0, 0)

    def kernel(x2_ref, y_ref, w_ref, z_ref, st_ref, pcat_ref, col_ref):
        # ---- padded concat image in VMEM (padding fused in-kernel) ----------
        pcat_ref[:, pl.ds(0, PAD0)] = jnp.zeros((Cin, PAD0), MXU_DTYPE)
        pcat_ref[:, pl.ds(PAD0 + Lz, Lpad - PAD0 - Lz)] = jnp.zeros(
            (Cin, Lpad - PAD0 - Lz), MXU_DTYPE)
        zwrap = jnp.zeros((Cin, Wp - W), MXU_DTYPE)
        for h in range(H):                        # static: per-row placement
            row = PAD0 + h * Wp
            pcat_ref[pl.ds(0, C2), pl.ds(row, W)] = (
                x2_ref[0, :, pl.ds(h * W, W)].astype(MXU_DTYPE))
            pcat_ref[pl.ds(C2, Cm), pl.ds(row, W)] = y_ref[0, :, pl.ds(h * W, W)]
            pcat_ref[:, pl.ds(row + W, Wp - W)] = zwrap
        # ---- im2col in VMEM: 9 shifted slices stacked on sublanes -----------
        for t in range(9):
            dh, dw = divmod(t, 3)
            col_ref[pl.ds(t * Cin, Cin), :] = pcat_ref[:, pl.ds(dh * Wp + dw, Lz)]
        # ---- one stacked matmul: (Co, 9*Cin) @ (9*Cin, Lz) -------------------
        z = jnp.dot(w_ref[...], col_ref[...], preferred_element_type=jnp.float32)
        valid = ((lax.broadcasted_iota(jnp.int32, (1, Lz), 1) % Wp) < W
                 ).astype(jnp.float32)
        zm = z * valid                            # zero the width-wrap columns
        z_ref[0] = zm.astype(MXU_DTYPE)
        st_ref[0, :, 0:1] = jnp.sum(zm, axis=1, keepdims=True)
        st_ref[0, :, 1:2] = jnp.sum(zm * zm, axis=1, keepdims=True)

    return kernel


def conv1_call(x2_r, y_r, w1mat, H, W, C2, Cm, Co):
    B, _, HW = x2_r.shape
    Cin = C2 + Cm
    Wp = W + 2
    Lz = H * Wp
    Lpad = (H + 2) * Wp + 2
    return pl.pallas_call(
        _make_conv1_kernel(H, W, C2, Cm, Co),
        grid=(B,),
        in_specs=[
            pl.BlockSpec((1, C2, HW), lambda b: (b, 0, 0)),
            pl.BlockSpec((1, Cm, HW), lambda b: (b, 0, 0)),
            pl.BlockSpec((Co, 9 * Cin), lambda b: (0, 0)),
        ],
        out_specs=(
            pl.BlockSpec((1, Co, Lz), lambda b: (b, 0, 0)),
            pl.BlockSpec((1, Co, 2), lambda b: (b, 0, 0)),
        ),
        out_shape=(
            jax.ShapeDtypeStruct((B, Co, Lz), MXU_DTYPE),
            jax.ShapeDtypeStruct((B, Co, 2), jnp.float32),
        ),
        scratch_shapes=[
            pltpu.VMEM((Cin, Lpad), MXU_DTYPE),      # padded concat image
            pltpu.VMEM((9 * Cin, Lz), MXU_DTYPE),    # im2col
        ],
        compiler_params=pltpu.CompilerParams(
            dimension_semantics=("parallel",),
            vmem_limit_bytes=VMEM_LIMIT),
    )(x2_r, y_r, w1mat)


# --------------------------------------------------------------------------- #
# Kernel C: BN1-apply + ReLU fused in, padded h built in VMEM (borders only   #
#           zeroed; the mask keeps interior wrap columns zero), im2col, one   #
#           stacked matmul for conv2, BN2 partial stats.                      #
# --------------------------------------------------------------------------- #
def _make_conv2_kernel(H, W, Co):
    Wp = W + 2
    Lz = H * Wp
    Lpad = (H + 2) * Wp + 2
    PAD0 = Wp + 1

    def kernel(z1_ref, ab_ref, w_ref, z_ref, st_ref, hp_ref, col_ref):
        valid = ((lax.broadcasted_iota(jnp.int32, (1, Lz), 1) % Wp) < W
                 ).astype(jnp.float32)
        scale = ab_ref[:, 0:1]                    # (Co, 1) f32
        shift = ab_ref[:, 1:2]
        h = jnp.maximum(z1_ref[0].astype(jnp.float32) * scale + shift,
                        0.0) * valid              # mask keeps pad cols zero
        # border zeroing only (no full-buffer zero pass)
        hp_ref[:, pl.ds(0, PAD0)] = jnp.zeros((Co, PAD0), MXU_DTYPE)
        hp_ref[:, pl.ds(PAD0 + Lz, Lpad - PAD0 - Lz)] = jnp.zeros(
            (Co, Lpad - PAD0 - Lz), MXU_DTYPE)
        hp_ref[:, pl.ds(PAD0, Lz)] = h.astype(MXU_DTYPE)
        for t in range(9):
            dh, dw = divmod(t, 3)
            col_ref[pl.ds(t * Co, Co), :] = hp_ref[:, pl.ds(dh * Wp + dw, Lz)]
        z = jnp.dot(w_ref[...], col_ref[...], preferred_element_type=jnp.float32)
        zm = z * valid
        z_ref[0] = zm.astype(MXU_DTYPE)
        st_ref[0, :, 0:1] = jnp.sum(zm, axis=1, keepdims=True)
        st_ref[0, :, 1:2] = jnp.sum(zm * zm, axis=1, keepdims=True)

    return kernel


def conv2_call(z1, ab1, w2mat, H, W, Co):
    B, _, Lz = z1.shape
    Wp = W + 2
    Lpad = (H + 2) * Wp + 2
    return pl.pallas_call(
        _make_conv2_kernel(H, W, Co),
        grid=(B,),
        in_specs=[
            pl.BlockSpec((1, Co, Lz), lambda b: (b, 0, 0)),
            pl.BlockSpec((Co, 2), lambda b: (0, 0)),
            pl.BlockSpec((Co, 9 * Co), lambda b: (0, 0)),
        ],
        out_specs=(
            pl.BlockSpec((1, Co, Lz), lambda b: (b, 0, 0)),
            pl.BlockSpec((1, Co, 2), lambda b: (b, 0, 0)),
        ),
        out_shape=(
            jax.ShapeDtypeStruct((B, Co, Lz), MXU_DTYPE),
            jax.ShapeDtypeStruct((B, Co, 2), jnp.float32),
        ),
        scratch_shapes=[
            pltpu.VMEM((Co, Lpad), MXU_DTYPE),       # padded h image
            pltpu.VMEM((9 * Co, Lz), MXU_DTYPE),     # im2col
        ],
        compiler_params=pltpu.CompilerParams(
            dimension_semantics=("parallel",),
            vmem_limit_bytes=VMEM_LIMIT),
    )(z1, ab1, w2mat)


# --------------------------------------------------------------------------- #
# Kernel D: BN2-apply + ReLU + wrap-column strip, writing the output directly #
#           in NCHW row-flat layout (lane-dense, no trailing XLA passes).     #
# --------------------------------------------------------------------------- #
def _make_epilogue_kernel(H, W, Co):
    Wp = W + 2

    def kernel(z2_ref, ab_ref, o_ref):
        scale = ab_ref[:, 0:1]
        shift = ab_ref[:, 1:2]
        o = jnp.maximum(z2_ref[0].astype(jnp.float32) * scale + shift, 0.0)
        for h in range(H):                        # drop the 2 wrap lanes / row
            o_ref[0, :, pl.ds(h * W, W)] = o[:, h * Wp:h * Wp + W]

    return kernel


def epilogue_call(z2, ab2, H, W, Co):
    B, _, Lz = z2.shape
    HW = H * W
    return pl.pallas_call(
        _make_epilogue_kernel(H, W, Co),
        grid=(B,),
        in_specs=[
            pl.BlockSpec((1, Co, Lz), lambda b: (b, 0, 0)),
            pl.BlockSpec((Co, 2), lambda b: (0, 0)),
        ],
        out_specs=pl.BlockSpec((1, Co, HW), lambda b: (b, 0, 0)),
        out_shape=jax.ShapeDtypeStruct((B, Co, HW), jnp.float32),
        compiler_params=pltpu.CompilerParams(
            dimension_semantics=("parallel",),
            vmem_limit_bytes=VMEM_LIMIT),
    )(z2, ab2)


# ------------------------------- JAX glue ----------------------------------- #
def _bn_affine(stats, count, gamma, beta):
    """Fold batch statistics into per-channel (scale, shift). Biased variance."""
    s = jnp.sum(stats[:, :, 0], axis=0)
    ss = jnp.sum(stats[:, :, 1], axis=0)
    mean = s / count
    var = ss / count - mean * mean
    scale = gamma * lax.rsqrt(var + BN_EPS)
    shift = beta - mean * scale
    return jnp.stack([scale, shift], axis=1).astype(jnp.float32)   # (C, 2)


def up_forward(params, x1_nchw, x2_nchw, k):
    assert k == 3, "kernel specialized for the 3x3 DoubleConv"
    B, Cin, H1, W1 = x1_nchw.shape
    Cm = params["wt"].shape[1]          # conv-transpose out channels
    Co = params["w1"].shape[0]          # DoubleConv out channels
    C2 = x2_nchw.shape[1]               # skip-connection channels
    assert C2 + Cm == params["w1"].shape[1]
    H, W = 2 * H1, 2 * W1
    HW = H * W
    L1 = H1 * W1

    # --- 1. ConvTranspose2d(k=2, s=2): channel matmul in native NCHW layout --
    wt_mat = jnp.transpose(params["wt"], (1, 2, 3, 0)).reshape(4 * Cm, Cin)
    bias_col = jnp.repeat(params["bt"], 4).reshape(4 * Cm, 1)
    x1_r = x1_nchw.reshape(B, Cin, L1)                      # free reshape
    y_half = conv_transpose(x1_r, wt_mat.astype(MXU_DTYPE), bias_col)

    # sub-pixel interleave (2x upsample): the single remaining wrapper-side
    # layout pass, done on the half-size bf16 tensor.
    y = y_half.reshape(B, Cm, 2, 2, H1, W1)
    y = jnp.transpose(y, (0, 1, 4, 2, 5, 3)).reshape(B, Cm, HW)

    x2_r = x2_nchw.reshape(B, C2, HW)                       # free reshape

    # --- 2. conv1 (concat + zero-pad fused in-kernel) + BN1 partial stats ----
    w1mat = jnp.transpose(params["w1"], (0, 2, 3, 1)).reshape(Co, 9 * (C2 + Cm))
    z1, st1 = conv1_call(x2_r, y, w1mat.astype(MXU_DTYPE), H, W, C2, Cm, Co)
    count = jnp.float32(B * HW)
    ab1 = _bn_affine(st1, count, params["g1"], params["be1"])

    # --- 3. BN1+ReLU applied in-kernel, fused with conv2 + BN2 partials ------
    w2mat = jnp.transpose(params["w2"], (0, 2, 3, 1)).reshape(Co, 9 * Co)
    z2, st2 = conv2_call(z1, ab1, w2mat.astype(MXU_DTYPE), H, W, Co)
    ab2 = _bn_affine(st2, count, params["g2"], params["be2"])

    # --- 4. BN2 + ReLU + wrap strip; output already NCHW row-flat -------------
    out = epilogue_call(z2, ab2, H, W, Co)
    return out.reshape(B, Co, H, W)                         # free reshape


# --------------------------- pure-JAX reference ------------------------------ #
def up_reference(params, x1, x2, k):
    wt, bt = params["wt"], params["bt"]
    B, Cin, H1, W1 = x1.shape
    Cout = wt.shape[1]
    t = jnp.einsum("ncij,cokl->noikjl", x1, wt,
                   precision=jax.lax.Precision.HIGHEST)
    y = t.reshape(B, Cout, 2 * H1, 2 * W1) + bt[None, :, None, None]
    x = jnp.concatenate([x2, y], axis=1)

    def conv_bn_relu(x, w, g, b):
        z = jax.lax.conv_general_dilated(
            x, w, (1, 1), "SAME",
            dimension_numbers=("NCHW", "OIHW", "NCHW"),
            precision=jax.lax.Precision.HIGHEST)
        mean = jnp.mean(z, axis=(0, 2, 3), keepdims=True)
        var = jnp.mean((z - mean) ** 2, axis=(0, 2, 3), keepdims=True)
        zn = (z - mean) * jax.lax.rsqrt(var + BN_EPS)
        zn = zn * g[None, :, None, None] + b[None, :, None, None]
        return jnp.maximum(zn, 0.0)

    h = conv_bn_relu(x, params["w1"], params["g1"], params["be1"])
    return conv_bn_relu(h, params["w2"], params["g2"], params["be2"])


# ---------------------------------- main ------------------------------------- #
if __name__ == "__main__":
    key = jax.random.PRNGKey(0)
    (k_x1, k_x2, k_wt, k_bt, k_w1, k_w2,
     k_g1, k_b1, k_g2, k_b2) = jax.random.split(key, 10)

    # Up(in_channels=8, out_channels=4, kernel_size=3); x1 spatial 8 -> 16
    B, Cin, Cout, H1, W1, K = 2, 8, 4, 8, 8, 3
    x1 = jax.random.normal(k_x1, (B, Cin, H1, W1), jnp.float32)
    x2 = jax.random.normal(k_x2, (B, Cout, 2 * H1, 2 * W1), jnp.float32)

    params = dict(
        wt=0.1 * jax.random.normal(k_wt, (Cin, Cout, 2, 2), jnp.float32),
        bt=0.1 * jax.random.normal(k_bt, (Cout,), jnp.float32),
        w1=0.1 * jax.random.normal(k_w1, (Cout, Cin, K, K), jnp.float32),
        w2=0.1 * jax.random.normal(k_w2, (Cout, Cout, K, K), jnp.float32),
        g1=1.0 + 0.1 * jax.random.normal(k_g1, (Cout,), jnp.float32),
        be1=0.1 * jax.random.normal(k_b1, (Cout,), jnp.float32),
        g2=1.0 + 0.1 * jax.random.normal(k_g2, (Cout,), jnp.float32),
        be2=0.1 * jax.random.normal(k_b2, (Cout,), jnp.float32),
    )

    out = jax.jit(lambda p, a, b: up_forward(p, a, b, K))(params, x1, x2)
    out = jax.block_until_ready(out)

    ref = up_reference(params, x1, x2, K)
    assert out.shape == (B, Cout, 2 * H1, 2 * W1), out.shape
    # bf16 MXU operands + bf16 intermediate (y/z1/z2) storage through two convs
    # and two batch-norms -> ~1-2% relative error worst case; 5e-2 bound still
    # catches any layout / indexing bug.
    err = float(jnp.max(jnp.abs(out - ref)))
    assert jnp.allclose(out, ref, atol=5e-2, rtol=5e-2), err

    print("KERNEL_OK")
</pallas_src>

<mosaic_0001>
module attributes {stable_mosaic.version = 11 : i64} {
  func.func @_convt_kernel(%arg0: i32, %arg1: memref<1x8x64xf32, #tpu.memory_space<vmem>>, %arg2: memref<16x8xbf16, #tpu.memory_space<vmem>>, %arg3: memref<16x1xf32, #tpu.memory_space<vmem>>, %arg4: memref<1x16x64xbf16, #tpu.memory_space<vmem>>) attributes {dimension_semantics = [#tpu.dimension_semantics<parallel>], iteration_bounds = array<i64: 2>, scalar_prefetch = 0 : i64, scratch_operands = 0 : i64, tpu.core_type = #tpu.core_type<tc>, window_params = [{transform_indices = @transform_0, window_bounds = array<i64: 1, 8, 64>}, {pipeline_mode = #tpu.pipeline_mode<synchronous>, transform_indices = @transform_1, window_bounds = array<i64: 16, 8>}, {pipeline_mode = #tpu.pipeline_mode<synchronous>, transform_indices = @transform_2, window_bounds = array<i64: 16, 1>}, {transform_indices = @transform_3, window_bounds = array<i64: 1, 16, 64>}]} {
    %c0 = arith.constant 0 : index
    %c0_0 = arith.constant 0 : index
    %c0_1 = arith.constant 0 : index
    %0 = vector.load %arg1[%c0, %c0_0, %c0_1] : memref<1x8x64xf32, #tpu.memory_space<vmem>>, vector<1x8x64xf32>
    %1 = vector.shape_cast %0 : vector<1x8x64xf32> to vector<8x64xf32>
    %2 = arith.truncf %1 : vector<8x64xf32> to vector<8x64xbf16>
    %c0_2 = arith.constant 0 : index
    %c0_3 = arith.constant 0 : index
    %3 = vector.load %arg2[%c0_2, %c0_3] : memref<16x8xbf16, #tpu.memory_space<vmem>>, vector<16x8xbf16>
    %cst = arith.constant dense<0.000000e+00> : vector<16x64xf32>
    %4 = tpu.matmul %3, %2, %cst {dimension_numbers = #tpu.dot_dimension_numbers<[1], [0], [0], [1], [0, 0, 1, 1], [], []>} : vector<16x8xbf16>, vector<8x64xbf16>, vector<16x64xf32> -> vector<16x64xf32>
    %c0_4 = arith.constant 0 : index
    %c0_5 = arith.constant 0 : index
    %5 = vector.load %arg3[%c0_4, %c0_5] : memref<16x1xf32, #tpu.memory_space<vmem>>, vector<16x1xf32>
    %6 = vector.broadcast %5 : vector<16x1xf32> to vector<16x64xf32>
    %7 = arith.addf %4, %6 : vector<16x64xf32>
    %8 = arith.truncf %7 : vector<16x64xf32> to vector<16x64xbf16>
    %c0_6 = arith.constant 0 : index
    %c0_7 = arith.constant 0 : index
    %c0_8 = arith.constant 0 : index
    %9 = vector.load %arg4[%c0_6, %c0_7, %c0_8] : memref<1x16x64xbf16, #tpu.memory_space<vmem>>, vector<1x16x64xbf16>
    %10 = vector.shape_cast %9 : vector<1x16x64xbf16> to vector<16x64xbf16>
    %11 = vector.shape_cast %8 : vector<16x64xbf16> to vector<1x16x64xbf16>
    tpu.vector_store %arg4[%c0_6, %c0_7, %c0_8], %11 {strides = array<i32>} : memref<1x16x64xbf16, #tpu.memory_space<vmem>>, vector<1x16x64xbf16>,
    return
  }
  func.func @transform_0(%arg0: i32) -> (i32, i32, i32) {
    %c0_i32 = arith.constant 0 : i32
    %c0_i32_0 = arith.constant 0 : i32
    %c0_i32_1 = arith.constant 0 : i32
    return %arg0, %c0_i32, %c0_i32_0 : i32, i32, i32
  }
  func.func @transform_1(%arg0: i32) -> (i32, i32) {
    %c0_i32 = arith.constant 0 : i32
    %c0_i32_0 = arith.constant 0 : i32
    %c0_i32_1 = arith.constant 0 : i32
    return %c0_i32, %c0_i32_0 : i32, i32
  }
  func.func @transform_2(%arg0: i32) -> (i32, i32) {
    %c0_i32 = arith.constant 0 : i32
    %c0_i32_0 = arith.constant 0 : i32
    %c0_i32_1 = arith.constant 0 : i32
    return %c0_i32, %c0_i32_0 : i32, i32
  }
  func.func @transform_3(%arg0: i32) -> (i32, i32, i32) {
    %c0_i32 = arith.constant 0 : i32
    %c0_i32_0 = arith.constant 0 : i32
    %c0_i32_1 = arith.constant 0 : i32
    return %arg0, %c0_i32, %c0_i32_0 : i32, i32, i32
  }
}

module attributes {stable_mosaic.version = 11 : i64} {
  func.func @kernel(%arg0: i32, %arg1: memref<1x4x256xf32, #tpu.memory_space<vmem>>, %arg2: memref<1x4x256xbf16, #tpu.memory_space<vmem>>, %arg3: memref<4x72xbf16, #tpu.memory_space<vmem>>, %arg4: memref<1x4x288xbf16, #tpu.memory_space<vmem>>, %arg5: memref<1x4x2xf32, #tpu.memory_space<vmem>>, %arg6: memref<8x326xbf16, #tpu.memory_space<vmem>>, %arg7: memref<72x288xbf16, #tpu.memory_space<vmem>>) attributes {dimension_semantics = [#tpu.dimension_semantics<parallel>], iteration_bounds = array<i64: 2>, scalar_prefetch = 0 : i64, scratch_operands = 2 : i64, tpu.core_type = #tpu.core_type<tc>, window_params = [{transform_indices = @transform_0, window_bounds = array<i64: 1, 4, 256>}, {transform_indices = @transform_1, window_bounds = array<i64: 1, 4, 256>}, {pipeline_mode = #tpu.pipeline_mode<synchronous>, transform_indices = @transform_2, window_bounds = array<i64: 4, 72>}, {transform_indices = @transform_3, window_bounds = array<i64: 1, 4, 288>}, {transform_indices = @transform_4, window_bounds = array<i64: 1, 4, 2>}]} {
    %cst = arith.constant 0.000000e+00 : bf16
    %0 = vector.broadcast %cst : bf16 to vector<8x19xbf16>
    %c0 = arith.constant 0 : index
    %c0_0 = arith.constant 0 : index
    %1 = vector.load %arg6[%c0, %c0_0] : memref<8x326xbf16, #tpu.memory_space<vmem>>, vector<8x19xbf16>
    tpu.vector_store %arg6[%c0, %c0_0], %0 {strides = array<i32>} : memref<8x326xbf16, #tpu.memory_space<vmem>>, vector<8x19xbf16>,
    %cst_1 = arith.constant 0.000000e+00 : bf16
    %2 = vector.broadcast %cst_1 : bf16 to vector<8x19xbf16>
    %c0_2 = arith.constant 0 : index
    %c307 = arith.constant 307 : index
    %3 = vector.load %arg6[%c0_2, %c307] : memref<8x326xbf16, #tpu.memory_space<vmem>>, vector<8x19xbf16>
    tpu.vector_store %arg6[%c0_2, %c307], %2 {strides = array<i32>} : memref<8x326xbf16, #tpu.memory_space<vmem>>, vector<8x19xbf16>,
    %cst_3 = arith.constant 0.000000e+00 : bf16
    %4 = vector.broadcast %cst_3 : bf16 to vector<8x2xbf16>
    %c0_4 = arith.constant 0 : index
    %c0_5 = arith.constant 0 : index
    %c0_6 = arith.constant 0 : index
    %5 = vector.load %arg1[%c0_4, %c0_5, %c0_6] : memref<1x4x256xf32, #tpu.memory_space<vmem>>, vector<1x4x16xf32>
    %6 = vector.shape_cast %5 : vector<1x4x16xf32> to vector<4x16xf32>
    %7 = arith.truncf %6 : vector<4x16xf32> to vector<4x16xbf16>
    %c0_7 = arith.constant 0 : index
    %c19 = arith.constant 19 : index
    %8 = vector.load %arg6[%c0_7, %c19] : memref<8x326xbf16, #tpu.memory_space<vmem>>, vector<4x16xbf16>
    tpu.vector_store %arg6[%c0_7, %c19], %7 {strides = array<i32>} : memref<8x326xbf16, #tpu.memory_space<vmem>>, vector<4x16xbf16>,
    %c0_8 = arith.constant 0 : index
    %c0_9 = arith.constant 0 : index
    %c0_10 = arith.constant 0 : index
    %9 = vector.load %arg2[%c0_8, %c0_9, %c0_10] : memref<1x4x256xbf16, #tpu.memory_space<vmem>>, vector<1x4x16xbf16>
    %10 = vector.shape_cast %9 : vector<1x4x16xbf16> to vector<4x16xbf16>
    %c4 = arith.constant 4 : index
    %c19_11 = arith.constant 19 : index
    %11 = vector.load %arg6[%c4, %c19_11] : memref<8x326xbf16, #tpu.memory_space<vmem>>, vector<4x16xbf16>
    tpu.vector_store %arg6[%c4, %c19_11], %10 {strides = array<i32>} : memref<8x326xbf16, #tpu.memory_space<vmem>>, vector<4x16xbf16>,
    %c0_12 = arith.constant 0 : index
    %c35 = arith.constant 35 : index
    %12 = vector.load %arg6[%c0_12, %c35] : memref<8x326xbf16, #tpu.memory_space<vmem>>, vector<8x2xbf16>
    tpu.vector_store %arg6[%c0_12, %c35], %4 {strides = array<i32>} : memref<8x326xbf16, #tpu.memory_space<vmem>>, vector<8x2xbf16>,
    %c0_13 = arith.constant 0 : index
    %c0_14 = arith.constant 0 : index
    %c16 = arith.constant 16 : index
    %13 = vector.load %arg1[%c0_13, %c0_14, %c16] : memref<1x4x256xf32, #tpu.memory_space<vmem>>, vector<1x4x16xf32>
    %14 = vector.shape_cast %13 : vector<1x4x16xf32> to vector<4x16xf32>
    %15 = arith.truncf %14 : vector<4x16xf32> to vector<4x16xbf16>
    %c0_15 = arith.constant 0 : index
    %c37 = arith.constant 37 : index
    %16 = vector.load %arg6[%c0_15, %c37] : memref<8x326xbf16, #tpu.memory_space<vmem>>, vector<4x16xbf16>
    tpu.vector_store %arg6[%c0_15, %c37], %15 {strides = array<i32>} : memref<8x326xbf16, #tpu.memory_space<vmem>>, vector<4x16xbf16>,
    %c0_16 = arith.constant 0 : index
    %c0_17 = arith.constant 0 : index
    %c16_18 = arith.constant 16 : index
    %17 = vector.load %arg2[%c0_16, %c0_17, %c16_18] : memref<1x4x256xbf16, #tpu.memory_space<vmem>>, vector<1x4x16xbf16>
    %18 = vector.shape_cast %17 : vector<1x4x16xbf16> to vector<4x16xbf16>
    %c4_19 = arith.constant 4 : index
    %c37_20 = arith.constant 37 : index
    %19 = vector.load %arg6[%c4_19, %c37_20] : memref<8x326xbf16, #tpu.memory_space<vmem>>, vector<4x16xbf16>
    tpu.vector_store %arg6[%c4_19, %c37_20], %18 {strides = array<i32>} : memref<8x326xbf16, #tpu.memory_space<vmem>>, vector<4x16xbf16>,
    %c0_21 = arith.constant 0 : index
    %c53 = arith.constant 53 : index
    %20 = vector.load %arg6[%c0_21, %c53] : memref<8x326xbf16, #tpu.memory_space<vmem>>, vector<8x2xbf16>
    tpu.vector_store %arg6[%c0_21, %c53], %4 {strides = array<i32>} : memref<8x326xbf16, #tpu.memory_space<vmem>>, vector<8x2xbf16>,
    %c0_22 = arith.constant 0 : index
    %c0_23 = arith.constant 0 : index
    %c32 = arith.constant 32 : index
    %21 = vector.load %arg1[%c0_22, %c0_23, %c32] : memref<1x4x256xf32, #tpu.memory_space<vmem>>, vector<1x4x16xf32>
    %22 = vector.shape_cast %21 : vector<1x4x16xf32> to vector<4x16xf32>
    %23 = arith.truncf %22 : vector<4x16xf32> to vector<4x16xbf16>
    %c0_24 = arith.constant 0 : index
    %c55 = arith.constant 55 : index
    %24 = vector.load %arg6[%c0_24, %c55] : memref<8x326xbf16, #tpu.memory_space<vmem>>, vector<4x16xbf16>
    tpu.vector_store %arg6[%c0_24, %c55], %23 {strides = array<i32>} : memref<8x326xbf16, #tpu.memory_space<vmem>>, vector<4x16xbf16>,
    %c0_25 = arith.constant 0 : index
    %c0_26 = arith.constant 0 : index
    %c32_27 = arith.constant 32 : index
    %25 = vector.load %arg2[%c0_25, %c0_26, %c32_27] : memref<1x4x256xbf16, #tpu.memory_space<vmem>>, vector<1x4x16xbf16>
    %26 = vector.shape_cast %25 : vector<1x4x16xbf16> to vector<4x16xbf16>
    %c4_28 = arith.constant 4 : index
    %c55_29 = arith.constant 55 : index
    %27 = vector.load %arg6[%c4_28, %c55_29] : memref<8x326xbf16, #tpu.memory_space<vmem>>, vector<4x16xbf16>
    tpu.vector_store %arg6[%c4_28, %c55_29], %26 {strides = array<i32>} : memref<8x326xbf16, #tpu.memory_space<vmem>>, vector<4x16xbf16>,
    %c0_30 = arith.constant 0 : index
    %c71 = arith.constant 71 : index
    %28 = vector.load %arg6[%c0_30, %c71] : memref<8x326xbf16, #tpu.memory_space<vmem>>, vector<8x2xbf16>
    tpu.vector_store %arg6[%c0_30, %c71], %4 {strides = array<i32>} : memref<8x326xbf16, #tpu.memory_space<vmem>>, vector<8x2xbf16>,
    %c0_31 = arith.constant 0 : index
    %c0_32 = arith.constant 0 : index
    %c48 = arith.constant 48 : index
    %29 = vector.load %arg1[%c0_31, %c0_32, %c48] : memref<1x4x256xf32, #tpu.memory_space<vmem>>, vector<1x4x16xf32>
    %30 = vector.shape_cast %29 : vector<1x4x16xf32> to vector<4x16xf32>
    %31 = arith.truncf %30 : vector<4x16xf32> to vector<4x16xbf16>
    %c0_33 = arith.constant 0 : index
    %c73 = arith.constant 73 : index
    %32 = vector.load %arg6[%c0_33, %c73] : memref<8x326xbf16, #tpu.memory_space<vmem>>, vector<4x16xbf16>
    tpu.vector_store %arg6[%c0_33, %c73], %31 {strides = array<i32>} : memref<8x326xbf16, #tpu.memory_space<vmem>>, vector<4x16xbf16>,
    %c0_34 = arith.constant 0 : index
    %c0_35 = arith.constant 0 : index
    %c48_36 = arith.constant 48 : index
    %33 = vector.load %arg2[%c0_34, %c0_35, %c48_36] : memref<1x4x256xbf16, #tpu.memory_space<vmem>>, vector<1x4x16xbf16>
    %34 = vector.shape_cast %33 : vector<1x4x16xbf16> to vector<4x16xbf16>
    %c4_37 = arith.constant 4 : index
    %c73_38 = arith.constant 73 : index
    %35 = vector.load %arg6[%c4_37, %c73_38] : memref<8x326xbf16, #tpu.memory_space<vmem>>, vector<4x16xbf16>
    tpu.vector_store %arg6[%c4_37, %c73_38], %34 {strides = array<i32>} : memref<8x326xbf16, #tpu.memory_space<vmem>>, vector<4x16xbf16>,
    %c0_39 = arith.constant 0 : index
    %c89 = arith.constant 89 : index
    %36 = vector.load %arg6[%c0_39, %c89] : memref<8x326xbf16, #tpu.memory_space<vmem>>, vector<8x2xbf16>
    tpu.vector_store %arg6[%c0_39, %c89], %4 {strides = array<i32>} : memref<8x326xbf16, #tpu.memory_space<vmem>>, vector<8x2xbf16>,
    %c0_40 = arith.constant 0 : index
    %c0_41 = arith.constant 0 : index
    %c64 = arith.constant 64 : index
    %37 = vector.load %arg1[%c0_40, %c0_41, %c64] : memref<1x4x256xf32, #tpu.memory_space<vmem>>, vector<1x4x16xf32>
    %38 = vector.shape_cast %37 : vector<1x4x16xf32> to vector<4x16xf32>
    %39 = arith.truncf %38 : vector<4x16xf32> to vector<4x16xbf16>
    %c0_42 = arith.constant 0 : index
    %c91 = arith.constant 91 : index
    %40 = vector.load %arg6[%c0_42, %c91] : memref<8x326xbf16, #tpu.memory_space<vmem>>, vector<4x16xbf16>
    tpu.vector_store %arg6[%c0_42, %c91], %39 {strides = array<i32>} : memref<8x326xbf16, #tpu.memory_space<vmem>>, vector<4x16xbf16>,
    %c0_43 = arith.constant 0 : index
    %c0_44 = arith.constant 0 : index
    %c64_45 = arith.constant 64 : index
    %41 = vector.load %arg2[%c0_43, %c0_44, %c64_45] : memref<1x4x256xbf16, #tpu.memory_space<vmem>>, vector<1x4x16xbf16>
    %42 = vector.shape_cast %41 : vector<1x4x16xbf16> to vector<4x16xbf16>
    %c4_46 = arith.constant 4 : index
    %c91_47 = arith.constant 91 : index
    %43 = vector.load %arg6[%c4_46, %c91_47] : memref<8x326xbf16, #tpu.memory_space<vmem>>, vector<4x16xbf16>
    tpu.vector_store %arg6[%c4_46, %c91_47], %42 {strides = array<i32>} : memref<8x326xbf16, #tpu.memory_space<vmem>>, vector<4x16xbf16>,
    %c0_48 = arith.constant 0 : index
    %c107 = arith.constant 107 : index
    %44 = vector.load %arg6[%c0_48, %c107] : memref<8x326xbf16, #tpu.memory_space<vmem>>, vector<8x2xbf16>
    tpu.vector_store %arg6[%c0_48, %c107], %4 {strides = array<i32>} : memref<8x326xbf16, #tpu.memory_space<vmem>>, vector<8x2xbf16>,
    %c0_49 = arith.constant 0 : index
    %c0_50 = arith.constant 0 : index
    %c80 = arith.constant 80 : index
    %45 = vector.load %arg1[%c0_49, %c0_50, %c80] : memref<1x4x256xf32, #tpu.memory_space<vmem>>, vector<1x4x16xf32>
    %46 = vector.shape_cast %45 : vector<1x4x16xf32> to vector<4x16xf32>
    %47 = arith.truncf %46 : vector<4x16xf32> to vector<4x16xbf16>
    %c0_51 = arith.constant 0 : index
    %c109 = arith.constant 109 : index
    %48 = vector.load %arg6[%c0_51, %c109] : memref<8x326xbf16, #tpu.memory_space<vmem>>, vector<4x16xbf16>
    tpu.vector_store %arg6[%c0_51, %c109], %47 {strides = array<i32>} : memref<8x326xbf16, #tpu.memory_space<vmem>>, vector<4x16xbf16>,
    %c0_52 = arith.constant 0 : index
    %c0_53 = arith.constant 0 : index
    %c80_54 = arith.constant 80 : index
    %49 = vector.load %arg2[%c0_52, %c0_53, %c80_54] : memref<1x4x256xbf16, #tpu.memory_space<vmem>>, vector<1x4x16xbf16>
    %50 = vector.shape_cast %49 : vector<1x4x16xbf16> to vector<4x16xbf16>
    %c4_55 = arith.constant 4 : index
    %c109_56 = arith.constant 109 : index
    %51 = vector.load %arg6[%c4_55, %c109_56] : memref<8x326xbf16, #tpu.memory_space<vmem>>, vector<4x16xbf16>
    tpu.vector_store %arg6[%c4_55, %c109_56], %50 {strides = array<i32>} : memref<8x326xbf16, #tpu.memory_space<vmem>>, vector<4x16xbf16>,
    %c0_57 = arith.constant 0 : index
    %c125 = arith.constant 125 : index
    %52 = vector.load %arg6[%c0_57, %c125] : memref<8x326xbf16, #tpu.memory_space<vmem>>, vector<8x2xbf16>
    tpu.vector_store %arg6[%c0_57, %c125], %4 {strides = array<i32>} : memref<8x326xbf16, #tpu.memory_space<vmem>>, vector<8x2xbf16>,
    %c0_58 = arith.constant 0 : index
    %c0_59 = arith.constant 0 : index
    %c96 = arith.constant 96 : index
    %53 = vector.load %arg1[%c0_58, %c0_59, %c96] : memref<1x4x256xf32, #tpu.memory_space<vmem>>, vector<1x4x16xf32>
    %54 = vector.shape_cast %53 : vector<1x4x16xf32> to vector<4x16xf32>
    %55 = arith.truncf %54 : vector<4x16xf32> to vector<4x16xbf16>
    %c0_60 = arith.constant 0 : index
    %c127 = arith.constant 127 : index
    %56 = vector.load %arg6[%c0_60, %c127] : memref<8x326xbf16, #tpu.memory_space<vmem>>, vector<4x16xbf16>
    tpu.vector_store %arg6[%c0_60, %c127], %55 {strides = array<i32>} : memref<8x326xbf16, #tpu.memory_space<vmem>>, vector<4x16xbf16>,
    %c0_61 = arith.constant 0 : index
    %c0_62 = arith.constant 0 : index
    %c96_63 = arith.constant 96 : index
    %57 = vector.load %arg2[%c0_61, %c0_62, %c96_63] : memref<1x4x256xbf16, #tpu.memory_space<vmem>>, vector<1x4x16xbf16>
    %58 = vector.shape_cast %57 : vector<1x4x16xbf16> to vector<4x16xbf16>
    %c4_64 = arith.constant 4 : index
    %c127_65 = arith.constant 127 : index
    %59 = vector.load %arg6[%c4_64, %c127_65] : memref<8x326xbf16, #tpu.memory_space<vmem>>, vector<4x16xbf16>
    tpu.vector_store %arg6[%c4_64, %c127_65], %58 {strides = array<i32>} : memref<8x326xbf16, #tpu.memory_space<vmem>>, vector<4x16xbf16>,
    %c0_66 = arith.constant 0 : index
    %c143 = arith.constant 143 : index
    %60 = vector.load %arg6[%c0_66, %c143] : memref<8x326xbf16, #tpu.memory_space<vmem>>, vector<8x2xbf16>
    tpu.vector_store %arg6[%c0_66, %c143], %4 {strides = array<i32>} : memref<8x326xbf16, #tpu.memory_space<vmem>>, vector<8x2xbf16>,
    %c0_67 = arith.constant 0 : index
    %c0_68 = arith.constant 0 : index
    %c112 = arith.constant 112 : index
    %61 = vector.load %arg1[%c0_67, %c0_68, %c112] : memref<1x4x256xf32, #tpu.memory_space<vmem>>, vector<1x4x16xf32>
    %62 = vector.shape_cast %61 : vector<1x4x16xf32> to vector<4x16xf32>
    %63 = arith.truncf %62 : vector<4x16xf32> to vector<4x16xbf16>
    %c0_69 = arith.constant 0 : index
    %c145 = arith.constant 145 : index
    %64 = vector.load %arg6[%c0_69, %c145] : memref<8x326xbf16, #tpu.memory_space<vmem>>, vector<4x16xbf16>
    tpu.vector_store %arg6[%c0_69, %c145], %63 {strides = array<i32>} : memref<8x326xbf16, #tpu.memory_space<vmem>>, vector<4x16xbf16>,
    %c0_70 = arith.constant 0 : index
    %c0_71 = arith.constant 0 : index
    %c112_72 = arith.constant 112 : index
    %65 = vector.load %arg2[%c0_70, %c0_71, %c112_72] : memref<1x4x256xbf16, #tpu.memory_space<vmem>>, vector<1x4x16xbf16>
    %66 = vector.shape_cast %65 : vector<1x4x16xbf16> to vector<4x16xbf16>
    %c4_73 = arith.constant 4 : index
    %c145_74 = arith.constant 145 : index
    %67 = vector.load %arg6[%c4_73, %c145_74] : memref<8x326xbf16, #tpu.memory_space<vmem>>, vector<4x16xbf16>
    tpu.vector_store %arg6[%c4_73, %c145_74], %66 {strides = array<i32>} : memref<8x326xbf16, #tpu.memory_space<vmem>>, vector<4x16xbf16>,
    %c0_75 = arith.constant 0 : index
    %c161 = arith.constant 161 : index
    %68 = vector.load %arg6[%c0_75, %c161] : memref<8x326xbf16, #tpu.memory_space<vmem>>, vector<8x2xbf16>
    tpu.vector_store %arg6[%c0_75, %c161], %4 {strides = array<i32>} : memref<8x326xbf16, #tpu.memory_space<vmem>>, vector<8x2xbf16>,
    %c0_76 = arith.constant 0 : index
    %c0_77 = arith.constant 0 : index
    %c128 = arith.constant 128 : index
    %69 = vector.load %arg1[%c0_76, %c0_77, %c128] : memref<1x4x256xf32, #tpu.memory_space<vmem>>, vector<1x4x16xf32>
    %70 = vector.shape_cast %69 : vector<1x4x16xf32> to vector<4x16xf32>
    %71 = arith.truncf %70 : vector<4x16xf32> to vector<4x16xbf16>
    %c0_78 = arith.constant 0 : index
    %c163 = arith.constant 163 : index
    %72 = vector.load %arg6[%c0_78, %c163] : memref<8x326xbf16, #tpu.memory_space<vmem>>, vector<4x16xbf16>
    tpu.vector_store %arg6[%c0_78, %c163], %71 {strides = array<i32>} : memref<8x326xbf16, #tpu.memory_space<vmem>>, vector<4x16xbf16>,
    %c0_79 = arith.constant 0 : index
    %c0_80 = arith.constant 0 : index
    %c128_81 = arith.constant 128 : index
    %73 = vector.load %arg2[%c0_79, %c0_80, %c128_81] : memref<1x4x256xbf16, #tpu.memory_space<vmem>>, vector<1x4x16xbf16>
    %74 = vector.shape_cast %73 : vector<1x4x16xbf16> to vector<4x16xbf16>
    %c4_82 = arith.constant 4 : index
    %c163_83 = arith.constant 163 : index
    %75 = vector.load %arg6[%c4_82, %c163_83] : memref<8x326xbf16, #tpu.memory_space<vmem>>, vector<4x16xbf16>
    tpu.vector_store %arg6[%c4_82, %c163_83], %74 {strides = array<i32>} : memref<8x326xbf16, #tpu.memory_space<vmem>>, vector<4x16xbf16>,
    %c0_84 = arith.constant 0 : index
    %c179 = arith.constant 179 : index
    %76 = vector.load %arg6[%c0_84, %c179] : memref<8x326xbf16, #tpu.memory_space<vmem>>, vector<8x2xbf16>
    tpu.vector_store %arg6[%c0_84, %c179], %4 {strides = array<i32>} : memref<8x326xbf16, #tpu.memory_space<vmem>>, vector<8x2xbf16>,
    %c0_85 = arith.constant 0 : index
    %c0_86 = arith.constant 0 : index
    %c144 = arith.constant 144 : index
    %77 = vector.load %arg1[%c0_85, %c0_86, %c144] : memref<1x4x256xf32, #tpu.memory_space<vmem>>, vector<1x4x16xf32>
    %78 = vector.shape_cast %77 : vector<1x4x16xf32> to vector<4x16xf32>
    %79 = arith.truncf %78 : vector<4x16xf32> to vector<4x16xbf16>
    %c0_87 = arith.constant 0 : index
    %c181 = arith.constant 181 : index
    %80 = vector.load %arg6[%c0_87, %c181] : memref<8x326xbf16, #tpu.memory_space<vmem>>, vector<4x16xbf16>
    tpu.vector_store %arg6[%c0_87, %c181], %79 {strides = array<i32>} : memref<8x326xbf16, #tpu.memory_space<vmem>>, vector<4x16xbf16>,
    %c0_88 = arith.constant 0 : index
    %c0_89 = arith.constant 0 : index
    %c144_90 = arith.constant 144 : index
    %81 = vector.load %arg2[%c0_88, %c0_89, %c144_90] : memref<1x4x256xbf16, #tpu.memory_space<vmem>>, vector<1x4x16xbf16>
    %82 = vector.shape_cast %81 : vector<1x4x16xbf16> to vector<4x16xbf16>
    %c4_91 = arith.constant 4 : index
    %c181_92 = arith.constant 181 : index
    %83 = vector.load %arg6[%c4_91, %c181_92] : memref<8x326xbf16, #tpu.memory_space<vmem>>, vector<4x16xbf16>
    tpu.vector_store %arg6[%c4_91, %c181_92], %82 {strides = array<i32>} : memref<8x326xbf16, #tpu.memory_space<vmem>>, vector<4x16xbf16>,
    %c0_93 = arith.constant 0 : index
    %c197 = arith.constant 197 : index
    %84 = vector.load %arg6[%c0_93, %c197] : memref<8x326xbf16, #tpu.memory_space<vmem>>, vector<8x2xbf16>
    tpu.vector_store %arg6[%c0_93, %c197], %4 {strides = array<i32>} : memref<8x326xbf16, #tpu.memory_space<vmem>>, vector<8x2xbf16>,
    %c0_94 = arith.constant 0 : index
    %c0_95 = arith.constant 0 : index
    %c160 = arith.constant 160 : index
    %85 = vector.load %arg1[%c0_94, %c0_95, %c160] : memref<1x4x256xf32, #tpu.memory_space<vmem>>, vector<1x4x16xf32>
    %86 = vector.shape_cast %85 : vector<1x4x16xf32> to vector<4x16xf32>
    %87 = arith.truncf %86 : vector<4x16xf32> to vector<4x16xbf16>
    %c0_96 = arith.constant 0 : index
    %c199 = arith.constant 199 : index
    %88 = vector.load %arg6[%c0_96, %c199] : memref<8x326xbf16, #tpu.memory_space<vmem>>, vector<4x16xbf16>
    tpu.vector_store %arg6[%c0_96, %c199], %87 {strides = array<i32>} : memref<8x326xbf16, #tpu.memory_space<vmem>>, vector<4x16xbf16>,
    %c0_97 = arith.constant 0 : index
    %c0_98 = arith.constant 0 : index
    %c160_99 = arith.constant 160 : index
    %89 = vector.load %arg2[%c0_97, %c0_98, %c160_99] : memref<1x4x256xbf16, #tpu.memory_space<vmem>>, vector<1x4x16xbf16>
    %90 = vector.shape_cast %89 : vector<1x4x16xbf16> to vector<4x16xbf16>
    %c4_100 = arith.constant 4 : index
    %c199_101 = arith.constant 199 : index
    %91 = vector.load %arg6[%c4_100, %c199_101] : memref<8x326xbf16, #tpu.memory_space<vmem>>, vector<4x16xbf16>
    tpu.vector_store %arg6[%c4_100, %c199_101], %90 {strides = array<i32>} : memref<8x326xbf16, #tpu.memory_space<vmem>>, vector<4x16xbf16>,
    %c0_102 = arith.constant 0 : index
    %c215 = arith.constant 215 : index
    %92 = vector.load %arg6[%c0_102, %c215] : memref<8x326xbf16, #tpu.memory_space<vmem>>, vector<8x2xbf16>
    tpu.vector_store %arg6[%c0_102, %c215], %4 {strides = array<i32>} : memref<8x326xbf16, #tpu.memory_space<vmem>>, vector<8x2xbf16>,
    %c0_103 = arith.constant 0 : index
    %c0_104 = arith.constant 0 : index
    %c176 = arith.constant 176 : index
    %93 = vector.load %arg1[%c0_103, %c0_104, %c176] : memref<1x4x256xf32, #tpu.memory_space<vmem>>, vector<1x4x16xf32>
    %94 = vector.shape_cast %93 : vector<1x4x16xf32> to vector<4x16xf32>
    %95 = arith.truncf %94 : vector<4x16xf32> to vector<4x16xbf16>
    %c0_105 = arith.constant 0 : index
    %c217 = arith.constant 217 : index
    %96 = vector.load %arg6[%c0_105, %c217] : memref<8x326xbf16, #tpu.memory_space<vmem>>, vector<4x16xbf16>
    tpu.vector_store %arg6[%c0_105, %c217], %95 {strides = array<i32>} : memref<8x326xbf16, #tpu.memory_space<vmem>>, vector<4x16xbf16>,
    %c0_106 = arith.constant 0 : index
    %c0_107 = arith.constant 0 : index
    %c176_108 = arith.constant 176 : index
    %97 = vector.load %arg2[%c0_106, %c0_107, %c176_108] : memref<1x4x256xbf16, #tpu.memory_space<vmem>>, vector<1x4x16xbf16>
    %98 = vector.shape_cast %97 : vector<1x4x16xbf16> to vector<4x16xbf16>
    %c4_109 = arith.constant 4 : index
    %c217_110 = arith.constant 217 : index
    %99 = vector.load %arg6[%c4_109, %c217_110] : memref<8x326xbf16, #tpu.memory_space<vmem>>, vector<4x16xbf16>
    tpu.vector_store %arg6[%c4_109, %c217_110], %98 {strides = array<i32>} : memref<8x326xbf16, #tpu.memory_space<vmem>>, vector<4x16xbf16>,
    %c0_111 = arith.constant 0 : index
    %c233 = arith.constant 233 : index
    %100 = vector.load %arg6[%c0_111, %c233] : memref<8x326xbf16, #tpu.memory_space<vmem>>, vector<8x2xbf16>
    tpu.vector_store %arg6[%c0_111, %c233], %4 {strides = array<i32>} : memref<8x326xbf16, #tpu.memory_space<vmem>>, vector<8x2xbf16>,
    %c0_112 = arith.constant 0 : index
    %c0_113 = arith.constant 0 : index
    %c192 = arith.constant 192 : index
    %101 = vector.load %arg1[%c0_112, %c0_113, %c192] : memref<1x4x256xf32, #tpu.memory_space<vmem>>, vector<1x4x16xf32>
    %102 = vector.shape_cast %101 : vector<1x4x16xf32> to vector<4x16xf32>
    %103 = arith.truncf %102 : vector<4x16xf32> to vector<4x16xbf16>
    %c0_114 = arith.constant 0 : index
    %c235 = arith.constant 235 : index
    %104 = vector.load %arg6[%c0_114, %c235] : memref<8x326xbf16, #tpu.memory_space<vmem>>, vector<4x16xbf16>
    tpu.vector_store %arg6[%c0_114, %c235], %103 {strides = array<i32>} : memref<8x326xbf16, #tpu.memory_space<vmem>>, vector<4x16xbf16>,
    %c0_115 = arith.constant 0 : index
    %c0_116 = arith.constant 0 : index
    %c192_117 = arith.constant 192 : index
    %105 = vector.load %arg2[%c0_115, %c0_116, %c192_117] : memref<1x4x256xbf16, #tpu.memory_space<vmem>>, vector<1x4x16xbf16>
    %106 = vector.shape_cast %105 : vector<1x4x16xbf16> to vector<4x16xbf16>
    %c4_118 = arith.constant 4 : index
    %c235_119 = arith.constant 235 : index
    %107 = vector.load %arg6[%c4_118, %c235_119] : memref<8x326xbf16, #tpu.memory_space<vmem>>, vector<4x16xbf16>
    tpu.vector_store %arg6[%c4_118, %c235_119], %106 {strides = array<i32>} : memref<8x326xbf16, #tpu.memory_space<vmem>>, vector<4x16xbf16>,
    %c0_120 = arith.constant 0 : index
    %c251 = arith.constant 251 : index
    %108 = vector.load %arg6[%c0_120, %c251] : memref<8x326xbf16, #tpu.memory_space<vmem>>, vector<8x2xbf16>
    tpu.vector_store %arg6[%c0_120, %c251], %4 {strides = array<i32>} : memref<8x326xbf16, #tpu.memory_space<vmem>>, vector<8x2xbf16>,
    %c0_121 = arith.constant 0 : index
    %c0_122 = arith.constant 0 : index
    %c208 = arith.constant 208 : index
    %109 = vector.load %arg1[%c0_121, %c0_122, %c208] : memref<1x4x256xf32, #tpu.memory_space<vmem>>, vector<1x4x16xf32>
    %110 = vector.shape_cast %109 : vector<1x4x16xf32> to vector<4x16xf32>
    %111 = arith.truncf %110 : vector<4x16xf32> to vector<4x16xbf16>
    %c0_123 = arith.constant 0 : index
    %c253 = arith.constant 253 : index
    %112 = vector.load %arg6[%c0_123, %c253] : memref<8x326xbf16, #tpu.memory_space<vmem>>, vector<4x16xbf16>
    tpu.vector_store %arg6[%c0_123, %c253], %111 {strides = array<i32>} : memref<8x326xbf16, #tpu.memory_space<vmem>>, vector<4x16xbf16>,
    %c0_124 = arith.constant 0 : index
    %c0_125 = arith.constant 0 : index
    %c208_126 = arith.constant 208 : index
    %113 = vector.load %arg2[%c0_124, %c0_125, %c208_126] : memref<1x4x256xbf16, #tpu.memory_space<vmem>>, vector<1x4x16xbf16>
    %114 = vector.shape_cast %113 : vector<1x4x16xbf16> to vector<4x16xbf16>
    %c4_127 = arith.constant 4 : index
    %c253_128 = arith.constant 253 : index
    %115 = vector.load %arg6[%c4_127, %c253_128] : memref<8x326xbf16, #tpu.memory_space<vmem>>, vector<4x16xbf16>
    tpu.vector_store %arg6[%c4_127, %c253_128], %114 {strides = array<i32>} : memref<8x326xbf16, #tpu.memory_space<vmem>>, vector<4x16xbf16>,
    %c0_129 = arith.constant 0 : index
    %c269 = arith.constant 269 : index
    %116 = vector.load %arg6[%c0_129, %c269] : memref<8x326xbf16, #tpu.memory_space<vmem>>, vector<8x2xbf16>
    tpu.vector_store %arg6[%c0_129, %c269], %4 {strides = array<i32>} : memref<8x326xbf16, #tpu.memory_space<vmem>>, vector<8x2xbf16>,
    %c0_130 = arith.constant 0 : index
    %c0_131 = arith.constant 0 : index
    %c224 = arith.constant 224 : index
    %117 = vector.load %arg1[%c0_130, %c0_131, %c224] : memref<1x4x256xf32, #tpu.memory_space<vmem>>, vector<1x4x16xf32>
    %118 = vector.shape_cast %117 : vector<1x4x16xf32> to vector<4x16xf32>
    %119 = arith.truncf %118 : vector<4x16xf32> to vector<4x16xbf16>
    %c0_132 = arith.constant 0 : index
    %c271 = arith.constant 271 : index
    %120 = vector.load %arg6[%c0_132, %c271] : memref<8x326xbf16, #tpu.memory_space<vmem>>, vector<4x16xbf16>
    tpu.vector_store %arg6[%c0_132, %c271], %119 {strides = array<i32>} : memref<8x326xbf16, #tpu.memory_space<vmem>>, vector<4x16xbf16>,
    %c0_133 = arith.constant 0 : index
    %c0_134 = arith.constant 0 : index
    %c224_135 = arith.constant 224 : index
    %121 = vector.load %arg2[%c0_133, %c0_134, %c224_135] : memref<1x4x256xbf16, #tpu.memory_space<vmem>>, vector<1x4x16xbf16>
    %122 = vector.shape_cast %121 : vector<1x4x16xbf16> to vector<4x16xbf16>
    %c4_136 = arith.constant 4 : index
    %c271_137 = arith.constant 271 : index
    %123 = vector.load %arg6[%c4_136, %c271_137] : memref<8x326xbf16, #tpu.memory_space<vmem>>, vector<4x16xbf16>
    tpu.vector_store %arg6[%c4_136, %c271_137], %122 {strides = array<i32>} : memref<8x326xbf16, #tpu.memory_space<vmem>>, vector<4x16xbf16>,
    %c0_138 = arith.constant 0 : index
    %c287 = arith.constant 287 : index
    %124 = vector.load %arg6[%c0_138, %c287] : memref<8x326xbf16, #tpu.memory_space<vmem>>, vector<8x2xbf16>
    tpu.vector_store %arg6[%c0_138, %c287], %4 {strides = array<i32>} : memref<8x326xbf16, #tpu.memory_space<vmem>>, vector<8x2xbf16>,
    %c0_139 = arith.constant 0 : index
    %c0_140 = arith.constant 0 : index
    %c240 = arith.constant 240 : index
    %125 = vector.load %arg1[%c0_139, %c0_140, %c240] : memref<1x4x256xf32, #tpu.memory_space<vmem>>, vector<1x4x16xf32>
    %126 = vector.shape_cast %125 : vector<1x4x16xf32> to vector<4x16xf32>
    %127 = arith.truncf %126 : vector<4x16xf32> to vector<4x16xbf16>
    %c0_141 = arith.constant 0 : index
    %c289 = arith.constant 289 : index
    %128 = vector.load %arg6[%c0_141, %c289] : memref<8x326xbf16, #tpu.memory_space<vmem>>, vector<4x16xbf16>
    tpu.vector_store %arg6[%c0_141, %c289], %127 {strides = array<i32>} : memref<8x326xbf16, #tpu.memory_space<vmem>>, vector<4x16xbf16>,
    %c0_142 = arith.constant 0 : index
    %c0_143 = arith.constant 0 : index
    %c240_144 = arith.constant 240 : index
    %129 = vector.load %arg2[%c0_142, %c0_143, %c240_144] : memref<1x4x256xbf16, #tpu.memory_space<vmem>>, vector<1x4x16xbf16>
    %130 = vector.shape_cast %129 : vector<1x4x16xbf16> to vector<4x16xbf16>
    %c4_145 = arith.constant 4 : index
    %c289_146 = arith.constant 289 : index
    %131 = vector.load %arg6[%c4_145, %c289_146] : memref<8x326xbf16, #tpu.memory_space<vmem>>, vector<4x16xbf16>
    tpu.vector_store %arg6[%c4_145, %c289_146], %130 {strides = array<i32>} : memref<8x326xbf16, #tpu.memory_space<vmem>>, vector<4x16xbf16>,
    %c0_147 = arith.constant 0 : index
    %c305 = arith.constant 305 : index
    %132 = vector.load %arg6[%c0_147, %c305] : memref<8x326xbf16, #tpu.memory_space<vmem>>, vector<8x2xbf16>
    tpu.vector_store %arg6[%c0_147, %c305], %4 {strides = array<i32>} : memref<8x326xbf16, #tpu.memory_space<vmem>>, vector<8x2xbf16>,
    %c0_148 = arith.constant 0 : index
    %c0_149 = arith.constant 0 : index
    %133 = vector.load %arg6[%c0_148, %c0_149] : memref<8x326xbf16, #tpu.memory_space<vmem>>, vector<8x288xbf16>
    %c0_150 = arith.constant 0 : index
    %c0_151 = arith.constant 0 : index
    %134 = vector.load %arg7[%c0_150, %c0_151] : memref<72x288xbf16, #tpu.memory_space<vmem>>, vector<8x288xbf16>
    tpu.vector_store %arg7[%c0_150, %c0_151], %133 {strides = array<i32>} : memref<72x288xbf16, #tpu.memory_space<vmem>>, vector<8x288xbf16>,
    %c0_152 = arith.constant 0 : index
    %c1 = arith.constant 1 : index
    %135 = vector.load %arg6[%c0_152, %c1] : memref<8x326xbf16, #tpu.memory_space<vmem>>, vector<8x288xbf16>
    %c8 = arith.constant 8 : index
    %c0_153 = arith.constant 0 : index
    %136 = vector.load %arg7[%c8, %c0_153] : memref<72x288xbf16, #tpu.memory_space<vmem>>, vector<8x288xbf16>
    tpu.vector_store %arg7[%c8, %c0_153], %135 {strides = array<i32>} : memref<72x288xbf16, #tpu.memory_space<vmem>>, vector<8x288xbf16>,
    %c0_154 = arith.constant 0 : index
    %c2 = arith.constant 2 : index
    %137 = vector.load %arg6[%c0_154, %c2] : memref<8x326xbf16, #tpu.memory_space<vmem>>, vector<8x288xbf16>
    %c16_155 = arith.constant 16 : index
    %c0_156 = arith.constant 0 : index
    %138 = vector.load %arg7[%c16_155, %c0_156] : memref<72x288xbf16, #tpu.memory_space<vmem>>, vector<8x288xbf16>
    tpu.vector_store %arg7[%c16_155, %c0_156], %137 {strides = array<i32>} : memref<72x288xbf16, #tpu.memory_space<vmem>>, vector<8x288xbf16>,
    %c0_157 = arith.constant 0 : index
    %c18 = arith.constant 18 : index
    %139 = vector.load %arg6[%c0_157, %c18] : memref<8x326xbf16, #tpu.memory_space<vmem>>, vector<8x288xbf16>
    %c24 = arith.constant 24 : index
    %c0_158 = arith.constant 0 : index
    %140 = vector.load %arg7[%c24, %c0_158] : memref<72x288xbf16, #tpu.memory_space<vmem>>, vector<8x288xbf16>
    tpu.vector_store %arg7[%c24, %c0_158], %139 {strides = array<i32>} : memref<72x288xbf16, #tpu.memory_space<vmem>>, vector<8x288xbf16>,
    %c0_159 = arith.constant 0 : index
    %c19_160 = arith.constant 19 : index
    %141 = vector.load %arg6[%c0_159, %c19_160] : memref<8x326xbf16, #tpu.memory_space<vmem>>, vector<8x288xbf16>
    %c32_161 = arith.constant 32 : index
    %c0_162 = arith.constant 0 : index
    %142 = vector.load %arg7[%c32_161, %c0_162] : memref<72x288xbf16, #tpu.memory_space<vmem>>, vector<8x288xbf16>
    tpu.vector_store %arg7[%c32_161, %c0_162], %141 {strides = array<i32>} : memref<72x288xbf16, #tpu.memory_space<vmem>>, vector<8x288xbf16>,
    %c0_163 = arith.constant 0 : index
    %c20 = arith.constant 20 : index
    %143 = vector.load %arg6[%c0_163, %c20] : memref<8x326xbf16, #tpu.memory_space<vmem>>, vector<8x288xbf16>
    %c40 = arith.constant 40 : index
    %c0_164 = arith.constant 0 : index
    %144 = vector.load %arg7[%c40, %c0_164] : memref<72x288xbf16, #tpu.memory_space<vmem>>, vector<8x288xbf16>
    tpu.vector_store %arg7[%c40, %c0_164], %143 {strides = array<i32>} : memref<72x288xbf16, #tpu.memory_space<vmem>>, vector<8x288xbf16>,
    %c0_165 = arith.constant 0 : index
    %c36 = arith.constant 36 : index
    %145 = vector.load %arg6[%c0_165, %c36] : memref<8x326xbf16, #tpu.memory_space<vmem>>, vector<8x288xbf16>
    %c48_166 = arith.constant 48 : index
    %c0_167 = arith.constant 0 : index
    %146 = vector.load %arg7[%c48_166, %c0_167] : memref<72x288xbf16, #tpu.memory_space<vmem>>, vector<8x288xbf16>
    tpu.vector_store %arg7[%c48_166, %c0_167], %145 {strides = array<i32>} : memref<72x288xbf16, #tpu.memory_space<vmem>>, vector<8x288xbf16>,
    %c0_168 = arith.constant 0 : index
    %c37_169 = arith.constant 37 : index
    %147 = vector.load %arg6[%c0_168, %c37_169] : memref<8x326xbf16, #tpu.memory_space<vmem>>, vector<8x288xbf16>
    %c56 = arith.constant 56 : index
    %c0_170 = arith.constant 0 : index
    %148 = vector.load %arg7[%c56, %c0_170] : memref<72x288xbf16, #tpu.memory_space<vmem>>, vector<8x288xbf16>
    tpu.vector_store %arg7[%c56, %c0_170], %147 {strides = array<i32>} : memref<72x288xbf16, #tpu.memory_space<vmem>>, vector<8x288xbf16>,
    %c0_171 = arith.constant 0 : index
    %c38 = arith.constant 38 : index
    %149 = vector.load %arg6[%c0_171, %c38] : memref<8x326xbf16, #tpu.memory_space<vmem>>, vector<8x288xbf16>
    %c64_172 = arith.constant 64 : index
    %c0_173 = arith.constant 0 : index
    %150 = vector.load %arg7[%c64_172, %c0_173] : memref<72x288xbf16, #tpu.memory_space<vmem>>, vector<8x288xbf16>
    tpu.vector_store %arg7[%c64_172, %c0_173], %149 {strides = array<i32>} : memref<72x288xbf16, #tpu.memory_space<vmem>>, vector<8x288xbf16>,
    %c0_174 = arith.constant 0 : index
    %c0_175 = arith.constant 0 : index
    %151 = vector.load %arg3[%c0_174, %c0_175] : memref<4x72xbf16, #tpu.memory_space<vmem>>, vector<4x72xbf16>
    %c0_176 = arith.constant 0 : index
    %c0_177 = arith.constant 0 : index
    %152 = vector.load %arg7[%c0_176, %c0_177] : memref<72x288xbf16, #tpu.memory_space<vmem>>, vector<72x288xbf16>
    %cst_178 = arith.constant dense<0.000000e+00> : vector<4x288xf32>
    %153 = tpu.matmul %151, %152, %cst_178 {dimension_numbers = #tpu.dot_dimension_numbers<[1], [0], [0], [1], [0, 0, 1, 1], [], []>} : vector<4x72xbf16>, vector<72x288xbf16>, vector<4x288xf32> -> vector<4x288xf32>
    %154 = tpu.iota {dimensions = array<i32: 1>} : vector<1x288xi32>
    %c18_i32 = arith.constant 18 : i32
    %c0_i32 = arith.constant 0 : i32
    %155 = arith.cmpi eq, %c18_i32, %c0_i32 : i32
    %c1_i32 = arith.constant 1 : i32
    %156 = arith.select %155, %c1_i32, %c18_i32 : i32
    %157 = vector.broadcast %156 : i32 to vector<1x288xi32>
    %158 = arith.remsi %154, %157 : vector<1x288xi32>
    %c0_i32_179 = arith.constant 0 : i32
    %159 = vector.broadcast %c0_i32_179 : i32 to vector<1x288xi32>
    %160 = arith.cmpi ne, %158, %159 : vector<1x288xi32>
    %c0_i32_180 = arith.constant 0 : i32
    %161 = vector.broadcast %c0_i32_180 : i32 to vector<1x288xi32>
    %162 = arith.cmpi slt, %158, %161 : vector<1x288xi32>
    %c0_i32_181 = arith.constant 0 : i32
    %163 = arith.cmpi slt, %156, %c0_i32_181 : i32
    %164 = vector.broadcast %163 : i1 to vector<1x288xi1>
    %165 = vector.broadcast %164 : vector<1x288xi1> to vector<1x288xi1>
    %166 = arith.xori %162, %165 : vector<1x288xi1>
    %167 = arith.andi %166, %160 : vector<1x288xi1>
    %168 = vector.broadcast %156 : i32 to vector<1x288xi32>
    %169 = arith.addi %158, %168 : vector<1x288xi32>
    %170 = arith.select %167, %169, %158 : vector<1x288xi1>, vector<1x288xi32>
    %c16_i32 = arith.constant 16 : i32
    %171 = vector.broadcast %c16_i32 : i32 to vector<1x288xi32>
    %172 = arith.cmpi slt, %170, %171 : vector<1x288xi32>
    %173 = arith.extui %172 : vector<1x288xi1> to vector<1x288xi32>
    %174 = arith.sitofp %173 : vector<1x288xi32> to vector<1x288xf32>
    %175 = vector.broadcast %174 : vector<1x288xf32> to vector<4x288xf32>
    %176 = arith.mulf %153, %175 : vector<4x288xf32>
    %177 = arith.truncf %176 : vector<4x288xf32> to vector<4x288xbf16>
    %c0_182 = arith.constant 0 : index
    %c0_183 = arith.constant 0 : index
    %c0_184 = arith.constant 0 : index
    %178 = vector.load %arg4[%c0_182, %c0_183, %c0_184] : memref<1x4x288xbf16, #tpu.memory_space<vmem>>, vector<1x4x288xbf16>
    %179 = vector.shape_cast %178 : vector<1x4x288xbf16> to vector<4x288xbf16>
    %180 = vector.shape_cast %177 : vector<4x288xbf16> to vector<1x4x288xbf16>
    tpu.vector_store %arg4[%c0_182, %c0_183, %c0_184], %180 {strides = array<i32>} : memref<1x4x288xbf16, #tpu.memory_space<vmem>>, vector<1x4x288xbf16>,
    %cst_185 = arith.constant dense<0.000000e+00> : vector<4xf32>
    %181 = vector.multi_reduction <add>, %176, %cst_185 [1] : vector<4x288xf32> to vector<4xf32>
    %182 = vector.shape_cast %181 : vector<4xf32> to vector<4x1xf32>
    %c0_186 = arith.constant 0 : index
    %c0_187 = arith.constant 0 : index
    %c0_188 = arith.constant 0 : index
    %183 = vector.load %arg5[%c0_186, %c0_187, %c0_188] : memref<1x4x2xf32, #tpu.memory_space<vmem>>, vector<1x4x1xf32>
    %184 = vector.shape_cast %183 : vector<1x4x1xf32> to vector<4x1xf32>
    %185 = vector.shape_cast %182 : vector<4x1xf32> to vector<1x4x1xf32>
    tpu.vector_store %arg5[%c0_186, %c0_187, %c0_188], %185 {strides = array<i32>} : memref<1x4x2xf32, #tpu.memory_space<vmem>>, vector<1x4x1xf32>,
    %186 = arith.mulf %176, %176 : vector<4x288xf32>
    %cst_189 = arith.constant dense<0.000000e+00> : vector<4xf32>
    %187 = vector.multi_reduction <add>, %186, %cst_189 [1] : vector<4x288xf32> to vector<4xf32>
    %188 = vector.shape_cast %187 : vector<4xf32> to vector<4x1xf32>
    %c0_190 = arith.constant 0 : index
    %c0_191 = arith.constant 0 : index
    %c1_192 = arith.constant 1 : index
    %189 = vector.load %arg5[%c0_190, %c0_191, %c1_192] : memref<1x4x2xf32, #tpu.memory_space<vmem>>, vector<1x4x1xf32>
    %190 = vector.shape_cast %189 : vector<1x4x1xf32> to vector<4x1xf32>
    %191 = vector.shape_cast %188 : vector<4x1xf32> to vector<1x4x1xf32>
    tpu.vector_store %arg5[%c0_190, %c0_191, %c1_192], %191 {strides = array<i32>} : memref<1x4x2xf32, #tpu.memory_space<vmem>>, vector<1x4x1xf32>,
    return
  }
  func.func @transform_0(%arg0: i32) -> (i32, i32, i32) {
    %c0_i32 = arith.constant 0 : i32
    %c0_i32_0 = arith.constant 0 : i32
    %c0_i32_1 = arith.constant 0 : i32
    return %arg0, %c0_i32, %c0_i32_0 : i32, i32, i32
  }
  func.func @transform_1(%arg0: i32) -> (i32, i32, i32) {
    %c0_i32 = arith.constant 0 : i32
    %c0_i32_0 = arith.constant 0 : i32
    %c0_i32_1 = arith.constant 0 : i32
    return %arg0, %c0_i32, %c0_i32_0 : i32, i32, i32
  }
  func.func @transform_2(%arg0: i32) -> (i32, i32) {
    %c0_i32 = arith.constant 0 : i32
    %c0_i32_0 = arith.constant 0 : i32
    %c0_i32_1 = arith.constant 0 : i32
    return %c0_i32, %c0_i32_0 : i32, i32
  }
  func.func @transform_3(%arg0: i32) -> (i32, i32, i32) {
    %c0_i32 = arith.constant 0 : i32
    %c0_i32_0 = arith.constant 0 : i32
    %c0_i32_1 = arith.constant 0 : i32
    return %arg0, %c0_i32, %c0_i32_0 : i32, i32, i32
  }
  func.func @transform_4(%arg0: i32) -> (i32, i32, i32) {
    %c0_i32 = arith.constant 0 : i32
    %c0_i32_0 = arith.constant 0 : i32
    %c0_i32_1 = arith.constant 0 : i32
    return %arg0, %c0_i32, %c0_i32_0 : i32, i32, i32
  }
}

module attributes {stable_mosaic.version = 11 : i64} {
  func.func @kernel(%arg0: i32, %arg1: memref<1x4x288xbf16, #tpu.memory_space<vmem>>, %arg2: memref<4x2xf32, #tpu.memory_space<vmem>>, %arg3: memref<4x36xbf16, #tpu.memory_space<vmem>>, %arg4: memref<1x4x288xbf16, #tpu.memory_space<vmem>>, %arg5: memref<1x4x2xf32, #tpu.memory_space<vmem>>, %arg6: memref<4x326xbf16, #tpu.memory_space<vmem>>, %arg7: memref<36x288xbf16, #tpu.memory_space<vmem>>) attributes {dimension_semantics = [#tpu.dimension_semantics<parallel>], iteration_bounds = array<i64: 2>, scalar_prefetch = 0 : i64, scratch_operands = 2 : i64, tpu.core_type = #tpu.core_type<tc>, window_params = [{transform_indices = @transform_0, window_bounds = array<i64: 1, 4, 288>}, {pipeline_mode = #tpu.pipeline_mode<synchronous>, transform_indices = @transform_1, window_bounds = array<i64: 4, 2>}, {pipeline_mode = #tpu.pipeline_mode<synchronous>, transform_indices = @transform_2, window_bounds = array<i64: 4, 36>}, {transform_indices = @transform_3, window_bounds = array<i64: 1, 4, 288>}, {transform_indices = @transform_4, window_bounds = array<i64: 1, 4, 2>}]} {
    %0 = tpu.iota {dimensions = array<i32: 1>} : vector<1x288xi32>
    %c18_i32 = arith.constant 18 : i32
    %c0_i32 = arith.constant 0 : i32
    %1 = arith.cmpi eq, %c18_i32, %c0_i32 : i32
    %c1_i32 = arith.constant 1 : i32
    %2 = arith.select %1, %c1_i32, %c18_i32 : i32
    %3 = vector.broadcast %2 : i32 to vector<1x288xi32>
    %4 = arith.remsi %0, %3 : vector<1x288xi32>
    %c0_i32_0 = arith.constant 0 : i32
    %5 = vector.broadcast %c0_i32_0 : i32 to vector<1x288xi32>
    %6 = arith.cmpi ne, %4, %5 : vector<1x288xi32>
    %c0_i32_1 = arith.constant 0 : i32
    %7 = vector.broadcast %c0_i32_1 : i32 to vector<1x288xi32>
    %8 = arith.cmpi slt, %4, %7 : vector<1x288xi32>
    %c0_i32_2 = arith.constant 0 : i32
    %9 = arith.cmpi slt, %2, %c0_i32_2 : i32
    %10 = vector.broadcast %9 : i1 to vector<1x288xi1>
    %11 = vector.broadcast %10 : vector<1x288xi1> to vector<1x288xi1>
    %12 = arith.xori %8, %11 : vector<1x288xi1>
    %13 = arith.andi %12, %6 : vector<1x288xi1>
    %14 = vector.broadcast %2 : i32 to vector<1x288xi32>
    %15 = arith.addi %4, %14 : vector<1x288xi32>
    %16 = arith.select %13, %15, %4 : vector<1x288xi1>, vector<1x288xi32>
    %c16_i32 = arith.constant 16 : i32
    %17 = vector.broadcast %c16_i32 : i32 to vector<1x288xi32>
    %18 = arith.cmpi slt, %16, %17 : vector<1x288xi32>
    %19 = arith.extui %18 : vector<1x288xi1> to vector<1x288xi32>
    %20 = arith.sitofp %19 : vector<1x288xi32> to vector<1x288xf32>
    %c0 = arith.constant 0 : index
    %c0_3 = arith.constant 0 : index
    %21 = vector.load %arg2[%c0, %c0_3] : memref<4x2xf32, #tpu.memory_space<vmem>>, vector<4x1xf32>
    %c0_4 = arith.constant 0 : index
    %c1 = arith.constant 1 : index
    %22 = vector.load %arg2[%c0_4, %c1] : memref<4x2xf32, #tpu.memory_space<vmem>>, vector<4x1xf32>
    %c0_5 = arith.constant 0 : index
    %c0_6 = arith.constant 0 : index
    %c0_7 = arith.constant 0 : index
    %23 = vector.load %arg1[%c0_5, %c0_6, %c0_7] : memref<1x4x288xbf16, #tpu.memory_space<vmem>>, vector<1x4x288xbf16>
    %24 = vector.shape_cast %23 : vector<1x4x288xbf16> to vector<4x288xbf16>
    %25 = arith.extf %24 : vector<4x288xbf16> to vector<4x288xf32>
    %26 = vector.broadcast %21 : vector<4x1xf32> to vector<4x288xf32>
    %27 = arith.mulf %25, %26 : vector<4x288xf32>
    %28 = vector.broadcast %22 : vector<4x1xf32> to vector<4x288xf32>
    %29 = arith.addf %27, %28 : vector<4x288xf32>
    %cst = arith.constant 0.000000e+00 : f32
    %30 = vector.broadcast %cst : f32 to vector<4x288xf32>
    %31 = arith.maximumf %29, %30 : vector<4x288xf32>
    %32 = vector.broadcast %20 : vector<1x288xf32> to vector<4x288xf32>
    %33 = arith.mulf %31, %32 : vector<4x288xf32>
    %cst_8 = arith.constant 0.000000e+00 : bf16
    %34 = vector.broadcast %cst_8 : bf16 to vector<4x19xbf16>
    %c0_9 = arith.constant 0 : index
    %c0_10 = arith.constant 0 : index
    %35 = vector.load %arg6[%c0_9, %c0_10] : memref<4x326xbf16, #tpu.memory_space<vmem>>, vector<4x19xbf16>
    tpu.vector_store %arg6[%c0_9, %c0_10], %34 {strides = array<i32>} : memref<4x326xbf16, #tpu.memory_space<vmem>>, vector<4x19xbf16>,
    %cst_11 = arith.constant 0.000000e+00 : bf16
    %36 = vector.broadcast %cst_11 : bf16 to vector<4x19xbf16>
    %c0_12 = arith.constant 0 : index
    %c307 = arith.constant 307 : index
    %37 = vector.load %arg6[%c0_12, %c307] : memref<4x326xbf16, #tpu.memory_space<vmem>>, vector<4x19xbf16>
    tpu.vector_store %arg6[%c0_12, %c307], %36 {strides = array<i32>} : memref<4x326xbf16, #tpu.memory_space<vmem>>, vector<4x19xbf16>,
    %38 = arith.truncf %33 : vector<4x288xf32> to vector<4x288xbf16>
    %c0_13 = arith.constant 0 : index
    %c19 = arith.constant 19 : index
    %39 = vector.load %arg6[%c0_13, %c19] : memref<4x326xbf16, #tpu.memory_space<vmem>>, vector<4x288xbf16>
    tpu.vector_store %arg6[%c0_13, %c19], %38 {strides = array<i32>} : memref<4x326xbf16, #tpu.memory_space<vmem>>, vector<4x288xbf16>,
    %c0_14 = arith.constant 0 : index
    %c0_15 = arith.constant 0 : index
    %40 = vector.load %arg6[%c0_14, %c0_15] : memref<4x326xbf16, #tpu.memory_space<vmem>>, vector<4x288xbf16>
    %c0_16 = arith.constant 0 : index
    %c0_17 = arith.constant 0 : index
    %41 = vector.load %arg7[%c0_16, %c0_17] : memref<36x288xbf16, #tpu.memory_space<vmem>>, vector<4x288xbf16>
    tpu.vector_store %arg7[%c0_16, %c0_17], %40 {strides = array<i32>} : memref<36x288xbf16, #tpu.memory_space<vmem>>, vector<4x288xbf16>,
    %c0_18 = arith.constant 0 : index
    %c1_19 = arith.constant 1 : index
    %42 = vector.load %arg6[%c0_18, %c1_19] : memref<4x326xbf16, #tpu.memory_space<vmem>>, vector<4x288xbf16>
    %c4 = arith.constant 4 : index
    %c0_20 = arith.constant 0 : index
    %43 = vector.load %arg7[%c4, %c0_20] : memref<36x288xbf16, #tpu.memory_space<vmem>>, vector<4x288xbf16>
    tpu.vector_store %arg7[%c4, %c0_20], %42 {strides = array<i32>} : memref<36x288xbf16, #tpu.memory_space<vmem>>, vector<4x288xbf16>,
    %c0_21 = arith.constant 0 : index
    %c2 = arith.constant 2 : index
    %44 = vector.load %arg6[%c0_21, %c2] : memref<4x326xbf16, #tpu.memory_space<vmem>>, vector<4x288xbf16>
    %c8 = arith.constant 8 : index
    %c0_22 = arith.constant 0 : index
    %45 = vector.load %arg7[%c8, %c0_22] : memref<36x288xbf16, #tpu.memory_space<vmem>>, vector<4x288xbf16>
    tpu.vector_store %arg7[%c8, %c0_22], %44 {strides = array<i32>} : memref<36x288xbf16, #tpu.memory_space<vmem>>, vector<4x288xbf16>,
    %c0_23 = arith.constant 0 : index
    %c18 = arith.constant 18 : index
    %46 = vector.load %arg6[%c0_23, %c18] : memref<4x326xbf16, #tpu.memory_space<vmem>>, vector<4x288xbf16>
    %c12 = arith.constant 12 : index
    %c0_24 = arith.constant 0 : index
    %47 = vector.load %arg7[%c12, %c0_24] : memref<36x288xbf16, #tpu.memory_space<vmem>>, vector<4x288xbf16>
    tpu.vector_store %arg7[%c12, %c0_24], %46 {strides = array<i32>} : memref<36x288xbf16, #tpu.memory_space<vmem>>, vector<4x288xbf16>,
    %c0_25 = arith.constant 0 : index
    %c19_26 = arith.constant 19 : index
    %48 = vector.load %arg6[%c0_25, %c19_26] : memref<4x326xbf16, #tpu.memory_space<vmem>>, vector<4x288xbf16>
    %c16 = arith.constant 16 : index
    %c0_27 = arith.constant 0 : index
    %49 = vector.load %arg7[%c16, %c0_27] : memref<36x288xbf16, #tpu.memory_space<vmem>>, vector<4x288xbf16>
    tpu.vector_store %arg7[%c16, %c0_27], %48 {strides = array<i32>} : memref<36x288xbf16, #tpu.memory_space<vmem>>, vector<4x288xbf16>,
    %c0_28 = arith.constant 0 : index
    %c20 = arith.constant 20 : index
    %50 = vector.load %arg6[%c0_28, %c20] : memref<4x326xbf16, #tpu.memory_space<vmem>>, vector<4x288xbf16>
    %c20_29 = arith.constant 20 : index
    %c0_30 = arith.constant 0 : index
    %51 = vector.load %arg7[%c20_29, %c0_30] : memref<36x288xbf16, #tpu.memory_space<vmem>>, vector<4x288xbf16>
    tpu.vector_store %arg7[%c20_29, %c0_30], %50 {strides = array<i32>} : memref<36x288xbf16, #tpu.memory_space<vmem>>, vector<4x288xbf16>,
    %c0_31 = arith.constant 0 : index
    %c36 = arith.constant 36 : index
    %52 = vector.load %arg6[%c0_31, %c36] : memref<4x326xbf16, #tpu.memory_space<vmem>>, vector<4x288xbf16>
    %c24 = arith.constant 24 : index
    %c0_32 = arith.constant 0 : index
    %53 = vector.load %arg7[%c24, %c0_32] : memref<36x288xbf16, #tpu.memory_space<vmem>>, vector<4x288xbf16>
    tpu.vector_store %arg7[%c24, %c0_32], %52 {strides = array<i32>} : memref<36x288xbf16, #tpu.memory_space<vmem>>, vector<4x288xbf16>,
    %c0_33 = arith.constant 0 : index
    %c37 = arith.constant 37 : index
    %54 = vector.load %arg6[%c0_33, %c37] : memref<4x326xbf16, #tpu.memory_space<vmem>>, vector<4x288xbf16>
    %c28 = arith.constant 28 : index
    %c0_34 = arith.constant 0 : index
    %55 = vector.load %arg7[%c28, %c0_34] : memref<36x288xbf16, #tpu.memory_space<vmem>>, vector<4x288xbf16>
    tpu.vector_store %arg7[%c28, %c0_34], %54 {strides = array<i32>} : memref<36x288xbf16, #tpu.memory_space<vmem>>, vector<4x288xbf16>,
    %c0_35 = arith.constant 0 : index
    %c38 = arith.constant 38 : index
    %56 = vector.load %arg6[%c0_35, %c38] : memref<4x326xbf16, #tpu.memory_space<vmem>>, vector<4x288xbf16>
    %c32 = arith.constant 32 : index
    %c0_36 = arith.constant 0 : index
    %57 = vector.load %arg7[%c32, %c0_36] : memref<36x288xbf16, #tpu.memory_space<vmem>>, vector<4x288xbf16>
    tpu.vector_store %arg7[%c32, %c0_36], %56 {strides = array<i32>} : memref<36x288xbf16, #tpu.memory_space<vmem>>, vector<4x288xbf16>,
    %c0_37 = arith.constant 0 : index
    %c0_38 = arith.constant 0 : index
    %58 = vector.load %arg3[%c0_37, %c0_38] : memref<4x36xbf16, #tpu.memory_space<vmem>>, vector<4x36xbf16>
    %c0_39 = arith.constant 0 : index
    %c0_40 = arith.constant 0 : index
    %59 = vector.load %arg7[%c0_39, %c0_40] : memref<36x288xbf16, #tpu.memory_space<vmem>>, vector<36x288xbf16>
    %cst_41 = arith.constant dense<0.000000e+00> : vector<4x288xf32>
    %60 = tpu.matmul %58, %59, %cst_41 {dimension_numbers = #tpu.dot_dimension_numbers<[1], [0], [0], [1], [0, 0, 1, 1], [], []>} : vector<4x36xbf16>, vector<36x288xbf16>, vector<4x288xf32> -> vector<4x288xf32>
    %61 = vector.broadcast %20 : vector<1x288xf32> to vector<4x288xf32>
    %62 = arith.mulf %60, %61 : vector<4x288xf32>
    %63 = arith.truncf %62 : vector<4x288xf32> to vector<4x288xbf16>
    %c0_42 = arith.constant 0 : index
    %c0_43 = arith.constant 0 : index
    %c0_44 = arith.constant 0 : index
    %64 = vector.load %arg4[%c0_42, %c0_43, %c0_44] : memref<1x4x288xbf16, #tpu.memory_space<vmem>>, vector<1x4x288xbf16>
    %65 = vector.shape_cast %64 : vector<1x4x288xbf16> to vector<4x288xbf16>
    %66 = vector.shape_cast %63 : vector<4x288xbf16> to vector<1x4x288xbf16>
    tpu.vector_store %arg4[%c0_42, %c0_43, %c0_44], %66 {strides = array<i32>} : memref<1x4x288xbf16, #tpu.memory_space<vmem>>, vector<1x4x288xbf16>,
    %cst_45 = arith.constant dense<0.000000e+00> : vector<4xf32>
    %67 = vector.multi_reduction <add>, %62, %cst_45 [1] : vector<4x288xf32> to vector<4xf32>
    %68 = vector.shape_cast %67 : vector<4xf32> to vector<4x1xf32>
    %c0_46 = arith.constant 0 : index
    %c0_47 = arith.constant 0 : index
    %c0_48 = arith.constant 0 : index
    %69 = vector.load %arg5[%c0_46, %c0_47, %c0_48] : memref<1x4x2xf32, #tpu.memory_space<vmem>>, vector<1x4x1xf32>
    %70 = vector.shape_cast %69 : vector<1x4x1xf32> to vector<4x1xf32>
    %71 = vector.shape_cast %68 : vector<4x1xf32> to vector<1x4x1xf32>
    tpu.vector_store %arg5[%c0_46, %c0_47, %c0_48], %71 {strides = array<i32>} : memref<1x4x2xf32, #tpu.memory_space<vmem>>, vector<1x4x1xf32>,
    %72 = arith.mulf %62, %62 : vector<4x288xf32>
    %cst_49 = arith.constant dense<0.000000e+00> : vector<4xf32>
    %73 = vector.multi_reduction <add>, %72, %cst_49 [1] : vector<4x288xf32> to vector<4xf32>
    %74 = vector.shape_cast %73 : vector<4xf32> to vector<4x1xf32>
    %c0_50 = arith.constant 0 : index
    %c0_51 = arith.constant 0 : index
    %c1_52 = arith.constant 1 : index
    %75 = vector.load %arg5[%c0_50, %c0_51, %c1_52] : memref<1x4x2xf32, #tpu.memory_space<vmem>>, vector<1x4x1xf32>
    %76 = vector.shape_cast %75 : vector<1x4x1xf32> to vector<4x1xf32>
    %77 = vector.shape_cast %74 : vector<4x1xf32> to vector<1x4x1xf32>
    tpu.vector_store %arg5[%c0_50, %c0_51, %c1_52], %77 {strides = array<i32>} : memref<1x4x2xf32, #tpu.memory_space<vmem>>, vector<1x4x1xf32>,
    return
  }
  func.func @transform_0(%arg0: i32) -> (i32, i32, i32) {
    %c0_i32 = arith.constant 0 : i32
    %c0_i32_0 = arith.constant 0 : i32
    %c0_i32_1 = arith.constant 0 : i32
    return %arg0, %c0_i32, %c0_i32_0 : i32, i32, i32
  }
  func.func @transform_1(%arg0: i32) -> (i32, i32) {
    %c0_i32 = arith.constant 0 : i32
    %c0_i32_0 = arith.constant 0 : i32
    %c0_i32_1 = arith.constant 0 : i32
    return %c0_i32, %c0_i32_0 : i32, i32
  }
  func.func @transform_2(%arg0: i32) -> (i32, i32) {
    %c0_i32 = arith.constant 0 : i32
    %c0_i32_0 = arith.constant 0 : i32
    %c0_i32_1 = arith.constant 0 : i32
    return %c0_i32, %c0_i32_0 : i32, i32
  }
  func.func @transform_3(%arg0: i32) -> (i32, i32, i32) {
    %c0_i32 = arith.constant 0 : i32
    %c0_i32_0 = arith.constant 0 : i32
    %c0_i32_1 = arith.constant 0 : i32
    return %arg0, %c0_i32, %c0_i32_0 : i32, i32, i32
  }
  func.func @transform_4(%arg0: i32) -> (i32, i32, i32) {
    %c0_i32 = arith.constant 0 : i32
    %c0_i32_0 = arith.constant 0 : i32
    %c0_i32_1 = arith.constant 0 : i32
    return %arg0, %c0_i32, %c0_i32_0 : i32, i32, i32
  }
}

module attributes {stable_mosaic.version = 11 : i64} {
  func.func @kernel(%arg0: i32, %arg1: memref<1x4x288xbf16, #tpu.memory_space<vmem>>, %arg2: memref<4x2xf32, #tpu.memory_space<vmem>>, %arg3: memref<1x4x256xf32, #tpu.memory_space<vmem>>) attributes {dimension_semantics = [#tpu.dimension_semantics<parallel>], iteration_bounds = array<i64: 2>, scalar_prefetch = 0 : i64, scratch_operands = 0 : i64, tpu.core_type = #tpu.core_type<tc>, window_params = [{transform_indices = @transform_0, window_bounds = array<i64: 1, 4, 288>}, {pipeline_mode = #tpu.pipeline_mode<synchronous>, transform_indices = @transform_1, window_bounds = array<i64: 4, 2>}, {transform_indices = @transform_2, window_bounds = array<i64: 1, 4, 256>}]} {
    %c0 = arith.constant 0 : index
    %c0_0 = arith.constant 0 : index
    %0 = vector.load %arg2[%c0, %c0_0] : memref<4x2xf32, #tpu.memory_space<vmem>>, vector<4x1xf32>
    %c0_1 = arith.constant 0 : index
    %c1 = arith.constant 1 : index
    %1 = vector.load %arg2[%c0_1, %c1] : memref<4x2xf32, #tpu.memory_space<vmem>>, vector<4x1xf32>
    %c0_2 = arith.constant 0 : index
    %c0_3 = arith.constant 0 : index
    %c0_4 = arith.constant 0 : index
    %2 = vector.load %arg1[%c0_2, %c0_3, %c0_4] : memref<1x4x288xbf16, #tpu.memory_space<vmem>>, vector<1x4x288xbf16>
    %3 = vector.shape_cast %2 : vector<1x4x288xbf16> to vector<4x288xbf16>
    %4 = arith.extf %3 : vector<4x288xbf16> to vector<4x288xf32>
    %5 = vector.broadcast %0 : vector<4x1xf32> to vector<4x288xf32>
    %6 = arith.mulf %4, %5 : vector<4x288xf32>
    %7 = vector.broadcast %1 : vector<4x1xf32> to vector<4x288xf32>
    %8 = arith.addf %6, %7 : vector<4x288xf32>
    %cst = arith.constant 0.000000e+00 : f32
    %9 = vector.broadcast %cst : f32 to vector<4x288xf32>
    %10 = arith.maximumf %8, %9 : vector<4x288xf32>
    %11 = vector.extract_strided_slice %10 {offsets = [0, 0], sizes = [4, 16], strides = [1, 1]} : vector<4x288xf32> to vector<4x16xf32>
    %c0_5 = arith.constant 0 : index
    %c0_6 = arith.constant 0 : index
    %c0_7 = arith.constant 0 : index
    %12 = vector.load %arg3[%c0_5, %c0_6, %c0_7] : memref<1x4x256xf32, #tpu.memory_space<vmem>>, vector<1x4x16xf32>
    %13 = vector.shape_cast %12 : vector<1x4x16xf32> to vector<4x16xf32>
    %14 = vector.shape_cast %11 : vector<4x16xf32> to vector<1x4x16xf32>
    tpu.vector_store %arg3[%c0_5, %c0_6, %c0_7], %14 {strides = array<i32>} : memref<1x4x256xf32, #tpu.memory_space<vmem>>, vector<1x4x16xf32>,
    %15 = vector.extract_strided_slice %10 {offsets = [0, 18], sizes = [4, 16], strides = [1, 1]} : vector<4x288xf32> to vector<4x16xf32>
    %c0_8 = arith.constant 0 : index
    %c0_9 = arith.constant 0 : index
    %c16 = arith.constant 16 : index
    %16 = vector.load %arg3[%c0_8, %c0_9, %c16] : memref<1x4x256xf32, #tpu.memory_space<vmem>>, vector<1x4x16xf32>
    %17 = vector.shape_cast %16 : vector<1x4x16xf32> to vector<4x16xf32>
    %18 = vector.shape_cast %15 : vector<4x16xf32> to vector<1x4x16xf32>
    tpu.vector_store %arg3[%c0_8, %c0_9, %c16], %18 {strides = array<i32>} : memref<1x4x256xf32, #tpu.memory_space<vmem>>, vector<1x4x16xf32>,
    %19 = vector.extract_strided_slice %10 {offsets = [0, 36], sizes = [4, 16], strides = [1, 1]} : vector<4x288xf32> to vector<4x16xf32>
    %c0_10 = arith.constant 0 : index
    %c0_11 = arith.constant 0 : index
    %c32 = arith.constant 32 : index
    %20 = vector.load %arg3[%c0_10, %c0_11, %c32] : memref<1x4x256xf32, #tpu.memory_space<vmem>>, vector<1x4x16xf32>
    %21 = vector.shape_cast %20 : vector<1x4x16xf32> to vector<4x16xf32>
    %22 = vector.shape_cast %19 : vector<4x16xf32> to vector<1x4x16xf32>
    tpu.vector_store %arg3[%c0_10, %c0_11, %c32], %22 {strides = array<i32>} : memref<1x4x256xf32, #tpu.memory_space<vmem>>, vector<1x4x16xf32>,
    %23 = vector.extract_strided_slice %10 {offsets = [0, 54], sizes = [4, 16], strides = [1, 1]} : vector<4x288xf32> to vector<4x16xf32>
    %c0_12 = arith.constant 0 : index
    %c0_13 = arith.constant 0 : index
    %c48 = arith.constant 48 : index
    %24 = vector.load %arg3[%c0_12, %c0_13, %c48] : memref<1x4x256xf32, #tpu.memory_space<vmem>>, vector<1x4x16xf32>
    %25 = vector.shape_cast %24 : vector<1x4x16xf32> to vector<4x16xf32>
    %26 = vector.shape_cast %23 : vector<4x16xf32> to vector<1x4x16xf32>
    tpu.vector_store %arg3[%c0_12, %c0_13, %c48], %26 {strides = array<i32>} : memref<1x4x256xf32, #tpu.memory_space<vmem>>, vector<1x4x16xf32>,
    %27 = vector.extract_strided_slice %10 {offsets = [0, 72], sizes = [4, 16], strides = [1, 1]} : vector<4x288xf32> to vector<4x16xf32>
    %c0_14 = arith.constant 0 : index
    %c0_15 = arith.constant 0 : index
    %c64 = arith.constant 64 : index
    %28 = vector.load %arg3[%c0_14, %c0_15, %c64] : memref<1x4x256xf32, #tpu.memory_space<vmem>>, vector<1x4x16xf32>
    %29 = vector.shape_cast %28 : vector<1x4x16xf32> to vector<4x16xf32>
    %30 = vector.shape_cast %27 : vector<4x16xf32> to vector<1x4x16xf32>
    tpu.vector_store %arg3[%c0_14, %c0_15, %c64], %30 {strides = array<i32>} : memref<1x4x256xf32, #tpu.memory_space<vmem>>, vector<1x4x16xf32>,
    %31 = vector.extract_strided_slice %10 {offsets = [0, 90], sizes = [4, 16], strides = [1, 1]} : vector<4x288xf32> to vector<4x16xf32>
    %c0_16 = arith.constant 0 : index
    %c0_17 = arith.constant 0 : index
    %c80 = arith.constant 80 : index
    %32 = vector.load %arg3[%c0_16, %c0_17, %c80] : memref<1x4x256xf32, #tpu.memory_space<vmem>>, vector<1x4x16xf32>
    %33 = vector.shape_cast %32 : vector<1x4x16xf32> to vector<4x16xf32>
    %34 = vector.shape_cast %31 : vector<4x16xf32> to vector<1x4x16xf32>
    tpu.vector_store %arg3[%c0_16, %c0_17, %c80], %34 {strides = array<i32>} : memref<1x4x256xf32, #tpu.memory_space<vmem>>, vector<1x4x16xf32>,
    %35 = vector.extract_strided_slice %10 {offsets = [0, 108], sizes = [4, 16], strides = [1, 1]} : vector<4x288xf32> to vector<4x16xf32>
    %c0_18 = arith.constant 0 : index
    %c0_19 = arith.constant 0 : index
    %c96 = arith.constant 96 : index
    %36 = vector.load %arg3[%c0_18, %c0_19, %c96] : memref<1x4x256xf32, #tpu.memory_space<vmem>>, vector<1x4x16xf32>
    %37 = vector.shape_cast %36 : vector<1x4x16xf32> to vector<4x16xf32>
    %38 = vector.shape_cast %35 : vector<4x16xf32> to vector<1x4x16xf32>
    tpu.vector_store %arg3[%c0_18, %c0_19, %c96], %38 {strides = array<i32>} : memref<1x4x256xf32, #tpu.memory_space<vmem>>, vector<1x4x16xf32>,
    %39 = vector.extract_strided_slice %10 {offsets = [0, 126], sizes = [4, 16], strides = [1, 1]} : vector<4x288xf32> to vector<4x16xf32>
    %c0_20 = arith.constant 0 : index
    %c0_21 = arith.constant 0 : index
    %c112 = arith.constant 112 : index
    %40 = vector.load %arg3[%c0_20, %c0_21, %c112] : memref<1x4x256xf32, #tpu.memory_space<vmem>>, vector<1x4x16xf32>
    %41 = vector.shape_cast %40 : vector<1x4x16xf32> to vector<4x16xf32>
    %42 = vector.shape_cast %39 : vector<4x16xf32> to vector<1x4x16xf32>
    tpu.vector_store %arg3[%c0_20, %c0_21, %c112], %42 {strides = array<i32>} : memref<1x4x256xf32, #tpu.memory_space<vmem>>, vector<1x4x16xf32>,
    %43 = vector.extract_strided_slice %10 {offsets = [0, 144], sizes = [4, 16], strides = [1, 1]} : vector<4x288xf32> to vector<4x16xf32>
    %c0_22 = arith.constant 0 : index
    %c0_23 = arith.constant 0 : index
    %c128 = arith.constant 128 : index
    %44 = vector.load %arg3[%c0_22, %c0_23, %c128] : memref<1x4x256xf32, #tpu.memory_space<vmem>>, vector<1x4x16xf32>
    %45 = vector.shape_cast %44 : vector<1x4x16xf32> to vector<4x16xf32>
    %46 = vector.shape_cast %43 : vector<4x16xf32> to vector<1x4x16xf32>
    tpu.vector_store %arg3[%c0_22, %c0_23, %c128], %46 {strides = array<i32>} : memref<1x4x256xf32, #tpu.memory_space<vmem>>, vector<1x4x16xf32>,
    %47 = vector.extract_strided_slice %10 {offsets = [0, 162], sizes = [4, 16], strides = [1, 1]} : vector<4x288xf32> to vector<4x16xf32>
    %c0_24 = arith.constant 0 : index
    %c0_25 = arith.constant 0 : index
    %c144 = arith.constant 144 : index
    %48 = vector.load %arg3[%c0_24, %c0_25, %c144] : memref<1x4x256xf32, #tpu.memory_space<vmem>>, vector<1x4x16xf32>
    %49 = vector.shape_cast %48 : vector<1x4x16xf32> to vector<4x16xf32>
    %50 = vector.shape_cast %47 : vector<4x16xf32> to vector<1x4x16xf32>
    tpu.vector_store %arg3[%c0_24, %c0_25, %c144], %50 {strides = array<i32>} : memref<1x4x256xf32, #tpu.memory_space<vmem>>, vector<1x4x16xf32>,
    %51 = vector.extract_strided_slice %10 {offsets = [0, 180], sizes = [4, 16], strides = [1, 1]} : vector<4x288xf32> to vector<4x16xf32>
    %c0_26 = arith.constant 0 : index
    %c0_27 = arith.constant 0 : index
    %c160 = arith.constant 160 : index
    %52 = vector.load %arg3[%c0_26, %c0_27, %c160] : memref<1x4x256xf32, #tpu.memory_space<vmem>>, vector<1x4x16xf32>
    %53 = vector.shape_cast %52 : vector<1x4x16xf32> to vector<4x16xf32>
    %54 = vector.shape_cast %51 : vector<4x16xf32> to vector<1x4x16xf32>
    tpu.vector_store %arg3[%c0_26, %c0_27, %c160], %54 {strides = array<i32>} : memref<1x4x256xf32, #tpu.memory_space<vmem>>, vector<1x4x16xf32>,
    %55 = vector.extract_strided_slice %10 {offsets = [0, 198], sizes = [4, 16], strides = [1, 1]} : vector<4x288xf32> to vector<4x16xf32>
    %c0_28 = arith.constant 0 : index
    %c0_29 = arith.constant 0 : index
    %c176 = arith.constant 176 : index
    %56 = vector.load %arg3[%c0_28, %c0_29, %c176] : memref<1x4x256xf32, #tpu.memory_space<vmem>>, vector<1x4x16xf32>
    %57 = vector.shape_cast %56 : vector<1x4x16xf32> to vector<4x16xf32>
    %58 = vector.shape_cast %55 : vector<4x16xf32> to vector<1x4x16xf32>
    tpu.vector_store %arg3[%c0_28, %c0_29, %c176], %58 {strides = array<i32>} : memref<1x4x256xf32, #tpu.memory_space<vmem>>, vector<1x4x16xf32>,
    %59 = vector.extract_strided_slice %10 {offsets = [0, 216], sizes = [4, 16], strides = [1, 1]} : vector<4x288xf32> to vector<4x16xf32>
    %c0_30 = arith.constant 0 : index
    %c0_31 = arith.constant 0 : index
    %c192 = arith.constant 192 : index
    %60 = vector.load %arg3[%c0_30, %c0_31, %c192] : memref<1x4x256xf32, #tpu.memory_space<vmem>>, vector<1x4x16xf32>
    %61 = vector.shape_cast %60 : vector<1x4x16xf32> to vector<4x16xf32>
    %62 = vector.shape_cast %59 : vector<4x16xf32> to vector<1x4x16xf32>
    tpu.vector_store %arg3[%c0_30, %c0_31, %c192], %62 {strides = array<i32>} : memref<1x4x256xf32, #tpu.memory_space<vmem>>, vector<1x4x16xf32>,
    %63 = vector.extract_strided_slice %10 {offsets = [0, 234], sizes = [4, 16], strides = [1, 1]} : vector<4x288xf32> to vector<4x16xf32>
    %c0_32 = arith.constant 0 : index
    %c0_33 = arith.constant 0 : index
    %c208 = arith.constant 208 : index
    %64 = vector.load %arg3[%c0_32, %c0_33, %c208] : memref<1x4x256xf32, #tpu.memory_space<vmem>>, vector<1x4x16xf32>
    %65 = vector.shape_cast %64 : vector<1x4x16xf32> to vector<4x16xf32>
    %66 = vector.shape_cast %63 : vector<4x16xf32> to vector<1x4x16xf32>
    tpu.vector_store %arg3[%c0_32, %c0_33, %c208], %66 {strides = array<i32>} : memref<1x4x256xf32, #tpu.memory_space<vmem>>, vector<1x4x16xf32>,
    %67 = vector.extract_strided_slice %10 {offsets = [0, 252], sizes = [4, 16], strides = [1, 1]} : vector<4x288xf32> to vector<4x16xf32>
    %c0_34 = arith.constant 0 : index
    %c0_35 = arith.constant 0 : index
    %c224 = arith.constant 224 : index
    %68 = vector.load %arg3[%c0_34, %c0_35, %c224] : memref<1x4x256xf32, #tpu.memory_space<vmem>>, vector<1x4x16xf32>
    %69 = vector.shape_cast %68 : vector<1x4x16xf32> to vector<4x16xf32>
    %70 = vector.shape_cast %67 : vector<4x16xf32> to vector<1x4x16xf32>
    tpu.vector_store %arg3[%c0_34, %c0_35, %c224], %70 {strides = array<i32>} : memref<1x4x256xf32, #tpu.memory_space<vmem>>, vector<1x4x16xf32>,
    %71 = vector.extract_strided_slice %10 {offsets = [0, 270], sizes = [4, 16], strides = [1, 1]} : vector<4x288xf32> to vector<4x16xf32>
    %c0_36 = arith.constant 0 : index
    %c0_37 = arith.constant 0 : index
    %c240 = arith.constant 240 : index
    %72 = vector.load %arg3[%c0_36, %c0_37, %c240] : memref<1x4x256xf32, #tpu.memory_space<vmem>>, vector<1x4x16xf32>
    %73 = vector.shape_cast %72 : vector<1x4x16xf32> to vector<4x16xf32>
    %74 = vector.shape_cast %71 : vector<4x16xf32> to vector<1x4x16xf32>
    tpu.vector_store %arg3[%c0_36, %c0_37, %c240], %74 {strides = array<i32>} : memref<1x4x256xf32, #tpu.memory_space<vmem>>, vector<1x4x16xf32>,
    return
  }
  func.func @transform_0(%arg0: i32) -> (i32, i32, i32) {
    %c0_i32 = arith.constant 0 : i32
    %c0_i32_0 = arith.constant 0 : i32
    %c0_i32_1 = arith.constant 0 : i32
    return %arg0, %c0_i32, %c0_i32_0 : i32, i32, i32
  }
  func.func @transform_1(%arg0: i32) -> (i32, i32) {
    %c0_i32 = arith.constant 0 : i32
    %c0_i32_0 = arith.constant 0 : i32
    %c0_i32_1 = arith.constant 0 : i32
    return %c0_i32, %c0_i32_0 : i32, i32
  }
  func.func @transform_2(%arg0: i32) -> (i32, i32, i32) {
    %c0_i32 = arith.constant 0 : i32
    %c0_i32_0 = arith.constant 0 : i32
    %c0_i32_1 = arith.constant 0 : i32
    return %arg0, %c0_i32, %c0_i32_0 : i32, i32, i32
  }
}

</mosaic_0001>

<bundles_post_ra>
// kernel: _lambda_.4
= control target key start
LH: loop header
LB: loop body
LE: loop exit
PB: predicated region body
PF: predicated region fallthrough
CT: control target
= control target key end

     0   :  { %s328_s12 = smov 0   ;;  %s354_s0 = inlined_call_operand.vmem [shape: f32[2,8,64], index: 0, kind: input, shape index: {}]   ;;  %s355_s1 = inlined_call_operand.vmem [shape: bf16[16,8], index: 1, kind: input, shape index: {}]   ;;  %s356_s2 = inlined_call_operand.vmem [shape: f32[16,1], index: 2, kind: input, shape index: {}]   ;;  %s357_s3 = inlined_call_operand.vmem [shape: bf16[2,16,64], index: 3, kind: output, shape index: {}]  }
   0x1 LB: > { %s272_s13 = sadd.s32 4294967295, %s305_s12   ;;  %p276_p0 = scmp.ge.s32.totalorder %s305_s12, 1  ;;  %s305_s12 = sphi %s328_s12, %s13_s12  }
   0x2   : > { %p136_p1 = scmp.lt.s32.totalorder %s305_s12, 3 }
   0x4   : > { %p137_p2 = pnand %p276_p0, %p136_p1 }
   0x5   : > { %p159_p3 = scmp.lt.s32.totalorder (!%p137_p2), %s272_s13, 1 }
   0x6   : > { %140 = sbr.rel (%p137_p2) target bundleno = 160 (0xa0), region = 32 }
   0xb   : > { %v173_v0 = vld [vmem:[%s356_s2] sm:$0xff]  ;;  %v307_v1 = vmov 0   ;;  %s359_s13 = smov (!%p159_p3, %s272_s13), 1  ;;  %vm194_vm0 = vcmask 1043456   ;;  %v174_v4 = vld [vmem:[%s356_s2 + $0x8] sm:$0xff]  ;;  %vm190_vm1 = vcmask 64512  }
   0xc   : > { %298 = vset.pattern.permute.xlu0 %v307_v1  ;;  %s277_s16 = sshll.u32 %s359_s13, 3  ;;  %v288_v6 = vld [vmem:[%s355_s1] sm:$0xff]  ;;  %vm214_vm2 = vcmask 519168  }
   0xd   : > { %177 = vperm.xlu0 %298, %v173_v0   ;;  %s162_s19 = scalar_lea.vmem %s354_s0, %s277_s16  ;;  %s167_s26 = scalar_lea.vmem %s357_s3, %s277_s16 }
   0xe   : > { %v169_v2 = vld [vmem:[%s162_s19] sm:$0xff] }
   0xf   : > { %v170_v3 = vpack.c.bf16 %v169_v2, %v169_v2 }
  0x11   : > { %v196_v5 = vsel %vm194_vm0, %v170_v3, 0 }
  0x12   : > { %205 = vmatpush.bf16.msra.mxu0 %v196_v5 }
  0x15   : > { %182 = vperm.xlu0 %298, %v174_v4   ;;  %284 = vmatmul.msk.bf16.vlgmr.msra.gmra.mxu0 %vm190_vm1, %v288_v6 }
  0x7f   : > { %v178_v7 = vpop.permute.xlu0 %177 }
  0x87   : > { %v183_v11 = vpop.permute.xlu0 %182 }
  0x92   : > { %v207_v8 = vpop.f32.mrf.mxu0 }
  0x93   : > { %v208_v9 = vadd.f32 %v207_v8, %v178_v7 }
  0x95   : > { %v212_v10 = vpack.c.bf16 %v208_v9, %v208_v9 }
  0x97   : > { %215 = vst.msk [vmem:[%s167_s26] sm:$0xf] %vm214_vm2, %v212_v10 }
  0x9a   : > { %v209_v12 = vpop.f32.mrf.mxu0 }
  0x9b   : > { %v210_v13 = vadd.f32 %v209_v12, %v183_v11 }
  0x9d   : > { %v213_v14 = vpack.c.bf16 %v210_v13, %v210_v13 }
  0x9f   : > { %216 = vst.msk [vmem:[%s167_s26 + $0x4] sm:$0xf] %vm214_vm2, %v213_v14 }
  0xa0 PF: > { %s13_s12 = sadd.s32 1, %s305_s12  }
  0xa1   : > { %p10_p4 = scmp.ge.s32.totalorder %s13_s12, 4  }
  0xa3   :  { %12 = sbr.rel (!%p10_p4) target bundleno = 1 (0x1), region = 62 }

// kernel: _lambda_.7
= control target key start
LH: loop header
LB: loop body
LE: loop exit
PB: predicated region body
PF: predicated region fallthrough
CT: control target
= control target key end

     0   :  { %s416_s9 = smov 0   ;;  %s475_s0 = inlined_call_operand.vmem [shape: bf16[2,4,288], index: 0, kind: input, shape index: {}]   ;;  %s476_s1 = inlined_call_operand.vmem [shape: f32[4,2], index: 1, kind: input, shape index: {}]   ;;  %s477_s2 = inlined_call_operand.vmem [shape: f32[2,4,256], index: 2, kind: output, shape index: {}]  }
   0x1 LB: > { %s323_s10 = sadd.s32 4294967295, %s375_s9   ;;  %p327_p0 = scmp.ge.s32.totalorder %s375_s9, 1  ;;  %s375_s9 = sphi %s416_s9, %s12_s9  }
   0x2   : > { %p112_p1 = scmp.lt.s32.totalorder %s375_s9, 3 }
   0x4   : > { %p113_p2 = pnand %p327_p0, %p112_p1 }
   0x5   : > { %p134_p3 = scmp.lt.s32.totalorder (!%p113_p2), %s323_s10, 1  ;;  %s380_s21 = smov (!%p113_p2), 4  }
   0x6   : > { %116 = sbr.rel (%p113_p2) target bundleno = 401 (0x191), region = 28  ;;  %s381_s22 = smov (!%p113_p2), 58  }
   0x7   : > { %s382_s23 = smov (!%p113_p2), 94   ;;  %s383_s24 = smov (!%p113_p2), 122  }
   0x8   : > { %s384_s25 = smov (!%p113_p2), 40   ;;  %s385_s26 = smov (!%p113_p2), 76  }
   0x9   : > { %s386_s27 = smov (!%p113_p2), 114   ;;  %s387_s28 = smov (!%p113_p2), 22  }
   0xa   : > { %s388_s29 = smov (!%p113_p2), 126   ;;  %s389_s30 = smov (!%p113_p2), 112  }
   0xb   : > { %v144_v0 = vld [vmem:[%s476_s1] sm:$0xf]  ;;  %v377_v1 = vmov 0   ;;  %v378_v2 = vmov 1   ;;  %s479_s10 = smov (!%p134_p3, %s323_s10), 1  ;;  %vm171_vm0 = vcmask 125952  }
   0xc   : > { %367 = vset.pattern.permute.xlu0 %v377_v1  ;;  %s334_s13 = smul.u32 6, %s479_s10  ;;  %v379_v3 = vmov 839922192   ;;  %s333_s17 = sshll.u32 %s479_s10, 3  ;;  %vm177_vm1 = vcmask 257152   ;;  %vm258_vm2 = vcmask 31744  }
   0xd   : > { %150 = vperm.xlu0 %367, %v144_v0   ;;  %v153_v4 = vunpack.c.l.s4 %v379_v3  ;;  %s435_s20 = scalar_lea.vmem %s477_s2, %s333_s17  ;;  %s390_s3 = smov 120   ;;  %vm182_vm3 = vcmask 388352   ;;  %vm187_vm4 = vcmask 519552   ;;  %vm192_vm5 = vcmask 650752  }
   0xe   : > { %s138_s16 = scalar_lea.vmem %s475_s0, %s334_s13  ;;  %s391_s4 = smov 124   ;;  %vm197_vm6 = vcmask 781952   ;;  %vm207_vm7 = vcmask 932864   ;;  %vm202_vm8 = vcmask 913152   ;;  %vm210_vm9 = vcmask 1044352  }
   0xf   : > { %v154_v6 = vunpack.c.0.s8 %v153_v4  ;;  %v145_v7 = vld [vmem:[%s138_s16] sm:$0x3f]  ;;  %s392_s5 = smov 118   ;;  %s393_s6 = smov 48  }
  0x10   : > { %v146_v8 = vunpack.c.l.bf16 %v145_v7  ;;  %v147_v9 = vunpack.c.h.bf16 %v145_v7  ;;  %s394_s7 = smov 64   ;;  %s395_s8 = smov 116  }
  0x11   : > { %s396_s10 = smov 16   ;;  %s397_s11 = smov 32  }
  0x12   : > { %s398_s12 = smov 96   ;;  %s399_s13 = smov 80  }
  0x13   : > { %s400_s14 = smov 98  }
  0x15   : > { %368 = vset.pattern.permute.xlu0 %v378_v2 }
  0x16   : > { %160 = vperm.xlu0 %368, %v144_v0  }
  0x7f   : > { %v151_v5 = vpop.permute.xlu0 %150 }
  0x80   : > { %v155_v10 = vperm.slane %v151_v5, %v154_v6 }
  0x82   : > { %v157_v12 = vmul.f32 %v155_v10, %v146_v8  ;;  %v158_v13 = vmul.f32 %v155_v10, %v147_v9 }
  0x88   : > { %v161_v11 = vpop.permute.xlu0 %160 }
  0x89   : > { %v165_v14 = vperm.slane %v161_v11, %v154_v6 }
  0x8b   : > { %v167_v15 = vadd.f32 %v165_v14, %v157_v12  ;;  %v430_v16 = vadd.f32 %v165_v14, %v158_v13 }
  0x8d   : > { %v169_v17 = vmax.f32 %v167_v15, 0.0  ;;  %v170_v18 = vmax.f32 %v430_v16, 0.0 }
  0x8f   : > { %255 = vrot.lane.b32.xlu0 %v170_v18, %s380_s21  ;;  %231 = vrot.lane.b32.xlu2 %v169_v17, %s381_s22  ;;  %172 = vst.msk [vmem:[%s435_s20] sm:$0xf] %vm171_vm0, %v169_v17 }
  0x90   : > { %217 = vrot.lane.b32.xlu1 %v169_v17, %s382_s23 }
  0x97   : > { %184 = vrot.lane.b32.xlu0 %v169_v17, %s383_s24  ;;  %238 = vrot.lane.b32.xlu2 %v169_v17, %s384_s25 }
  0x98   : > { %224 = vrot.lane.b32.xlu1 %v169_v17, %s385_s26 }
  0x9f   : > { %204 = vrot.lane.b32.xlu0 %v169_v17, %s386_s27  ;;  %253 = vrot.lane.b32.xlu2 %v169_v17, %s380_s21 }
  0xa0   : > { %245 = vrot.lane.b32.xlu1 %v169_v17, %s387_s28 }
  0xa7   : > { %174 = vrot.lane.b32.xlu2 %v169_v17, %s388_s29 }
  0xa8   : > { %212 = vrot.lane.b32.xlu1 %v169_v17, %s389_s30 }
  0xaf   : > { %189 = vrot.lane.b32.xlu2 %v169_v17, %s390_s3 }
  0xb0   : > { %179 = vrot.lane.b32.xlu1 %v169_v17, %s391_s4 }
  0xb7   : > { %194 = vrot.lane.b32.xlu2 %v169_v17, %s392_s5 }
  0xe9   : > { %v232_v19 = vpop.permute.xlu2 %231 }
  0xea   : > { %v233_v20 = vrot.slane %v232_v19, 4 }
  0xec   : > { %234 = vrot.lane.b32.xlu1 %v233_v20, %s393_s6 }
  0xf1   : > { %v239_v21 = vpop.permute.xlu2 %238 }
  0xf2   : > { %v240_v22 = vrot.slane %v239_v21, 4 }
  0xf4   : > { %241 = vrot.lane.b32.xlu1 %v240_v22, %s394_s7 }
  0xf9   : > { %v254_v23 = vpop.permute.xlu2 %253 }
  0xfa   : > { %v257_v30 = vrot.slane %v254_v23, 4 }
  0xfc   : > { %199 = vrot.lane.b32.xlu1 %v169_v17, %s395_s8 }
 0x101   : > { %v175_v24 = vpop.permute.xlu2 %174  ;;  %v256_v29 = vpop.permute.xlu0 %255 }
 0x102   : > { %178 = vst.msk [vmem:[%s435_s20] sm:$0xf] %vm177_vm1, %v175_v24  ;;  %v218_v25 = vpop.permute.xlu1 %217  ;;  %v259_v33 = vsel %vm258_vm2, %v257_v30, %v256_v29 }
 0x103   : > { %v219_v26 = vrot.slane %v218_v25, 4 }
 0x105   : > { %220 = vrot.lane.b32.xlu0 %v219_v26, %s396_s10 }
 0x109   : > { %v190_v35 = vpop.permute.xlu2 %189  ;;  %v185_v38 = vpop.permute.xlu0 %184 }
 0x10a   : > { %v225_v27 = vpop.permute.xlu1 %224 }
 0x10b   : > { %v226_v28 = vrot.slane %v225_v27, 4 }
 0x10d   : > { %227 = vrot.lane.b32.xlu2 %v226_v28, %s397_s11 }
 0x111   : > { %v195_v39 = vpop.permute.xlu2 %194  ;;  %v205_v42 = vpop.permute.xlu0 %204 }
 0x112   : > { %v246_v31 = vpop.permute.xlu1 %245  ;;  %v206_v43 = vrot.slane %v205_v42, 4 }
 0x113   : > { %v247_v32 = vrot.slane %v246_v31, 4 }
 0x114   : > { %v208_v45 = vsel %vm207_vm7, %v205_v42, %v206_v43 }
 0x115   : > { %260 = vrot.lane.b32.xlu2 %v259_v33, %s398_s12  ;;  %248 = vrot.lane.b32.xlu0 %v247_v32, %s399_s13 }
 0x11a   : > { %v213_v34 = vpop.permute.xlu1 %212 }
 0x11b   : > { %v214_v36 = vrot.slane %v213_v34, 4 }
 0x11d   : > { %216 = vst.msk [vmem:[%s435_s20 + $0x4] sm:$0xf] %vm171_vm0, %v214_v36  ;;  %264 = vrot.lane.b32.xlu0 %v170_v18, %s400_s14 }
 0x122   : > { %v180_v37 = vpop.permute.xlu1 %179 }
 0x123   : > { %183 = vst.msk [vmem:[%s435_s20] sm:$0xf] %vm182_vm3, %v180_v37 }
 0x124   : > { %188 = vst.msk [vmem:[%s435_s20] sm:$0xf] %vm187_vm4, %v185_v38 }
 0x125   : > { %193 = vst.msk [vmem:[%s435_s20] sm:$0xf] %vm192_vm5, %v190_v35 }
 0x126   : > { %198 = vst.msk [vmem:[%s435_s20] sm:$0xf] %vm197_vm6, %v195_v39 }
 0x15e   : > { %v235_v40 = vpop.permute.xlu1 %234 }
 0x166   : > { %v242_v41 = vpop.permute.xlu1 %241 }
 0x167   : > { %v228_v47 = vpop.permute.xlu2 %227 }
 0x16e   : > { %v200_v44 = vpop.permute.xlu1 %199 }
 0x16f   : > { %203 = vst.msk [vmem:[%s435_s20] sm:$0xf] %vm202_vm8, %v200_v44  ;;  %v261_v49 = vpop.permute.xlu2 %260 }
 0x170   : > { %211 = vst.msk [vmem:[%s435_s20] sm:$0xf] %vm210_vm9, %v208_v45 }
 0x177   : > { %v221_v46 = vpop.permute.xlu0 %220 }
 0x178   : > { %223 = vst.msk [vmem:[%s435_s20 + $0x4] sm:$0xf] %vm177_vm1, %v221_v46 }
 0x179   : > { %230 = vst.msk [vmem:[%s435_s20 + $0x4] sm:$0xf] %vm182_vm3, %v228_v47 }
 0x17a   : > { %237 = vst.msk [vmem:[%s435_s20 + $0x4] sm:$0xf] %vm187_vm4, %v235_v40 }
 0x17b   : > { %244 = vst.msk [vmem:[%s435_s20 + $0x4] sm:$0xf] %vm192_vm5, %v242_v41 }
 0x187   : > { %v249_v48 = vpop.permute.xlu0 %248 }
 0x188   : > { %251 = vst.msk [vmem:[%s435_s20 + $0x4] sm:$0xf] %vm197_vm6, %v249_v48 }
 0x189   : > { %263 = vst.msk [vmem:[%s435_s20 + $0x4] sm:$0xf] %vm202_vm8, %v261_v49 }
 0x18f   : > { %v265_v50 = vpop.permute.xlu0 %264 }
 0x190   : > { %267 = vst.msk [vmem:[%s435_s20 + $0x4] sm:$0xf] %vm210_vm9, %v265_v50 }
 0x191 PF: > { %s12_s9 = sadd.s32 1, %s375_s9  }
 0x192   : > { %p9_p4 = scmp.ge.s32.totalorder %s12_s9, 4  }
 0x194   :  { %11 = sbr.rel (!%p9_p4) target bundleno = 1 (0x1), region = 58 }

// kernel: _lambda_.6
= control target key start
LH: loop header
LB: loop body
LE: loop exit
PB: predicated region body
PF: predicated region fallthrough
CT: control target
= control target key end

     0   :  { %s929_s15 = smov 0   ;;  %s1054_s0 = inlined_call_operand.vmem [shape: bf16[2,4,288], index: 0, kind: input, shape index: {}]   ;;  %s1055_s1 = inlined_call_operand.vmem [shape: f32[4,2], index: 1, kind: input, shape index: {}]   ;;  %s1056_s2 = inlined_call_operand.vmem [shape: bf16[4,36], index: 2, kind: input, shape index: {}]   ;;  %s1057_s3 = inlined_call_operand.vmem [shape: bf16[2,4,288], index: 3, kind: output, shape index: {0}]   ;;  %s1058_s4 = inlined_call_operand.vmem [shape: f32[2,4,2], index: 4, kind: output, shape index: {1}]  }
   0x1 LB: > { %s813_s16 = sadd.s32 4294967295, %s889_s15   ;;  %p817_p0 = scmp.ge.s32.totalorder %s889_s15, 1  ;;  %s889_s15 = sphi %s929_s15, %s15_s15  }
   0x2   : > { %p165_p1 = scmp.lt.s32.totalorder %s889_s15, 3 }
   0x4   : > { %p166_p2 = pnand %p817_p0, %p165_p1 }
   0x5   : > { %p195_p3 = scmp.lt.s32.totalorder (!%p166_p2), %s813_s16, 1  ;;  %s895_s23 = smov (!%p166_p2), 19  }
   0x6   : > { %169 = sbr.rel (%p166_p2) target bundleno = 760 (0x2f8), region = 32  ;;  %s896_s24 = smov (!%p166_p2), 109  }
   0x7   : > { %s897_s25 = smov (!%p166_p2), 108   ;;  %s898_s26 = smov (!%p166_p2), 92  }
   0x8   : > { %s899_s27 = smov (!%p166_p2), 91   ;;  %s900_s28 = smov (!%p166_p2), 127  }
   0x9   : > { %s901_s29 = smov (!%p166_p2), 90   ;;  %s902_s30 = smov (!%p166_p2), 110  }
   0xa   : > { %s903_s5 = smov (!%p166_p2), 126  }
   0xb   : > { %v325_v0 = vld [vmem:[%s1055_s1] sm:$0xf]  ;;  %v891_v1 = vmov 0   ;;  %v892_v2 = vmov 1   ;;  %v210_v3 = vlaneseq  ;;  %s1064_s16 = smov (!%p195_p3, %s813_s16), 1  ;;  %vm360_vm14 = vcmask 148480  }
   0xc   : > { %881 = vset.pattern.permute.xlu0 %v891_v1  ;;  %s859_s19 = smul.u32 6, %s1064_s16  ;;  %vm362_vm15 = vcmask 566680   ;;  %361 = vst.msk [vmem:[#allocation2] sm:$0x3] %vm360_vm14, %v891_v1  ;;  %vm492_vm14 = vcmask 891904   ;;  %s820_s11 = sshll.u32 %s1064_s16, 2 }
   0xd   : > { %331 = vperm.xlu0 %881, %v325_v0   ;;  %v941_v4 = vand.u32 127, %v210_v3  ;;  %363 = vst.msk [vmem:[#allocation2 + $0x4] sm:$0x3] %vm362_vm15, %v891_v1  ;;  %vm435_vm15 = vcmask 257026   ;;  %s208_s14 = scalar_lea.vmem %s1058_s4, %s820_s11 }
   0xe   : > { %s199_s22 = scalar_lea.vmem %s1054_s0, %s859_s19  ;;  %s204_s10 = scalar_lea.vmem %s1057_s3, %s859_s19 }
   0xf   : > { %v944_v5 = vadd.s32 128, %v941_v4  ;;  %v948_v7 = vadd.s32 256, %v941_v4  ;;  %v217_v8 = vand.u32 65535, %v941_v4  ;;  %v218_v12 = vshrl.u32 %v941_v4, 16 }
  0x11   : > { %v246_v6 = vand.u32 65535, %v944_v5  ;;  %v247_v9 = vshrl.u32 %v944_v5, 16  ;;  %v275_v11 = vand.u32 65535, %v948_v7  ;;  %v221_v13 = vmul.u32 58254, %v217_v8 }
  0x12   : > { %v276_v17 = vshrl.u32 %v948_v7, 16  ;;  %v220_v18 = vmul.u32 14564, %v217_v8  ;;  %v222_v19 = vmul.u32 14564, %v218_v12  ;;  %v223_v30 = vmul.u32 58254, %v218_v12 }
  0x13   : > { %v250_v10 = vmul.u32 58254, %v246_v6  ;;  %v249_v14 = vmul.u32 14564, %v246_v6  ;;  %v251_v15 = vmul.u32 14564, %v247_v9  ;;  %v224_v20 = vshll.u32 %v221_v13, 16 }
  0x14   : > { %v279_v23 = vmul.u32 58254, %v275_v11  ;;  %v226_v24 = vshll.u32 %v222_v19, 16  ;;  %v252_v26 = vmul.u32 58254, %v247_v9  ;;  %v278_v28 = vmul.u32 14564, %v275_v11 }
  0x15   : > { %882 = vset.pattern.permute.xlu0 %v892_v2  ;;  %v253_v16 = vshll.u32 %v250_v10, 16  ;;  %v255_v21 = vshll.u32 %v251_v15, 16  ;;  %v230_v25 = vadd.s32 %v224_v20, %v220_v18  ;;  %vm228_vm1 = vc.u32 %v220_v18, %v224_v20 }
  0x16   : > { %341 = vperm.xlu0 %882, %v325_v0   ;;  %v280_v29 = vmul.u32 14564, %v276_v17  ;;  %v282_v31 = vshll.u32 %v279_v23, 16  ;;  %v229_v32 = vsel %vm228_vm1, 1, %v891_v1  ;;  %v281_v38 = vmul.u32 58254, %v276_v17 }
  0x17   : > { %vm257_vm0 = vc.u32 %v249_v14, %v253_v16  ;;  %v259_v22 = vadd.s32 %v253_v16, %v249_v14  ;;  %vm232_vm3 = vc.u32 %v230_v25, %v226_v24  ;;  %v231_v37 = vadd.s32 %v229_v32, %v223_v30 }
  0x18   : > { %v258_v27 = vsel %vm257_vm0, 1, %v891_v1  ;;  %v284_v35 = vshll.u32 %v280_v29, 16  ;;  %vm286_vm4 = vc.u32 %v278_v28, %v282_v31  ;;  %v288_v36 = vadd.s32 %v282_v31, %v278_v28 }
  0x19   : > { %vm261_vm2 = vc.u32 %v259_v22, %v255_v21  ;;  %v260_v33 = vadd.s32 %v258_v27, %v252_v26  ;;  %v233_v39 = vsel %vm232_vm3, 1, %v891_v1  ;;  %v254_v40 = vshrl.u32 %v250_v10, 16 }
  0x1a   : > { %v262_v34 = vsel %vm261_vm2, 1, %v891_v1  ;;  %v287_v42 = vsel %vm286_vm4, 1, %v891_v1  ;;  %vm290_vm5 = vc.u32 %v288_v36, %v284_v35  ;;  %v225_v43 = vshrl.u32 %v221_v13, 16  ;;  %v326_v13 = vld [vmem:[%s199_s22] sm:$0x3f] }
  0x1b   : > { %v264_v41 = vadd.s32 %v262_v34, %v260_v33  ;;  %v235_v44 = vadd.s32 %v233_v39, %v231_v37  ;;  %v289_v45 = vadd.s32 %v287_v42, %v281_v38  ;;  %v256_v46 = vshrl.u32 %v251_v15, 16 }
  0x1c   : > { %v291_v48 = vsel %vm290_vm5, 1, %v891_v1  ;;  %v227_v49 = vshrl.u32 %v222_v19, 16  ;;  %v283_v51 = vshrl.u32 %v279_v23, 16  ;;  %v285_v55 = vshrl.u32 %v280_v29, 16 }
  0x1d   : > { %v265_v47 = vadd.s32 %v264_v41, %v254_v40  ;;  %v236_v50 = vadd.s32 %v235_v44, %v225_v43  ;;  %v293_v52 = vadd.s32 %v291_v48, %v289_v45  ;;  %v327_v16 = vunpack.c.l.bf16 %v326_v13 }
  0x1e   : > { %v328_v17 = vunpack.c.h.bf16 %v326_v13  ;;  %v894_v19 = vmov 0.0   ;;  %vm355_vm3 = vcmask 1043456   ;;  %vm382_vm5 = vcmask 1041408  }
  0x1f   : > { %v266_v53 = vadd.s32 %v265_v47, %v256_v46  ;;  %v237_v54 = vadd.s32 %v236_v50, %v227_v49  ;;  %v294_v56 = vadd.s32 %v293_v52, %v283_v51 }
  0x21   : > { %v267_v57 = vshrl.u32 %v266_v53, 4  ;;  %v238_v58 = vshrl.u32 %v237_v54, 4  ;;  %v295_v59 = vadd.s32 %v294_v56, %v285_v55 }
  0x23   : > { %v268_v60 = vmul.u32 18, %v267_v57  ;;  %v239_v61 = vmul.u32 18, %v238_v58  ;;  %v296_v62 = vshrl.u32 %v295_v59, 4 }
  0x25   : > { %v269_v63 = vsub.s32 %v944_v5, %v268_v60  ;;  %v240_v0 = vsub.s32 %v941_v4, %v239_v61  ;;  %v297_v2 = vmul.u32 18, %v296_v62  ;;  %v893_v5 = vmov 839922192  }
  0x26   : > { %v334_v9 = vunpack.c.l.s4 %v893_v5 }
  0x27   : > { %vm302_vm6 = vcmp.ne.s32.totalorder %v269_v63, 0  ;;  %vm305_vm7 = vcmp.lt.s32.totalorder %v269_v63, 0  ;;  %v311_v3 = vadd.s32 18, %v269_v63  ;;  %v298_v6 = vsub.s32 %v948_v7, %v297_v2 }
  0x28   : > { %vm301_vm8 = vcmp.ne.s32.totalorder %v240_v0, 0  ;;  %vm304_vm9 = vcmp.lt.s32.totalorder %v240_v0, 0  ;;  %vm971_vm10 = vmand %vm305_vm7, %vm302_vm6  ;;  %v310_v4 = vadd.s32 18, %v240_v0  ;;  %v335_v12 = vunpack.c.0.s8 %v334_v9 }
  0x29   : > { %vm980_vm11 = vmand %vm304_vm9, %vm301_vm8  ;;  %v314_v7 = vsel %vm971_vm10, %v311_v3, %v269_v63  ;;  %vm303_vm12 = vcmp.ne.s32.totalorder %v298_v6, 0  ;;  %vm306_vm13 = vcmp.lt.s32.totalorder %v298_v6, 0  ;;  %v312_v14 = vadd.s32 18, %v298_v6 }
  0x2a   : > { %v313_v15 = vsel %vm980_vm11, %v310_v4, %v240_v0  ;;  %vm317_vm0 = vcmp.lt.s32.totalorder %v314_v7, 16  ;;  %vm309_vm1 = vmand %vm306_vm13, %vm303_vm12  ;;  %vm386_vm6 = vcmask 1045508   ;;  %vm398_vm7 = vcmask 1041560  }
  0x2b   : > { %vm316_vm2 = vcmp.lt.s32.totalorder %v313_v15, 16  ;;  %v990_v20 = vsel %vm317_vm0, 1.0, %v894_v19  ;;  %v315_v21 = vsel %vm309_vm1, %v312_v14, %v298_v6  ;;  %vm399_vm8 = vcmask 1043458  }
  0x2c   : > { %v992_v23 = vsel %vm316_vm2, 1.0, %v894_v19  ;;  %v354_v24 = vrot.slane %v990_v20, 4  ;;  %vm318_vm4 = vcmp.lt.s32.totalorder %v315_v21, 16  ;;  %vm400_vm9 = vmor %vm399_vm8, %vm398_vm7  ;;  %vm401_vm10 = vcmask 414724  }
  0x2d   : > { %v995_v29 = vsel %vm318_vm4, 1.0, %v894_v19  ;;  %vm395_vm11 = vcmask 154624   ;;  %vm402_vm12 = vmor %vm401_vm10, %vm400_vm9  ;;  %vm412_vm13 = vcmask 254976   ;;  %vm513_vm0 = vcmask 883712  }
  0x2e   : > { %v356_v30 = vsel %vm355_vm3, %v992_v23, %v354_v24  ;;  %vm533_vm1 = vcmask 752640   ;;  %vm554_vm2 = vcmask 744448   ;;  %vm430_vm4 = vcmask 1039360  }
  0x2f   : > { %vm574_vm7 = vcmask 736256   ;;  %vm451_vm9 = vcmask 1031168   ;;  %vm472_vm10 = vcmask 900096  }
  0x7f   : > { %v332_v10 = vpop.permute.xlu0 %331 }
  0x80   : > { %v336_v18 = vperm.slane %v332_v10, %v335_v12 }
  0x82   : > { %v338_v25 = vmul.f32 %v336_v18, %v327_v16  ;;  %v339_v26 = vmul.f32 %v336_v18, %v328_v17 }
  0x88   : > { %v342_v22 = vpop.permute.xlu0 %341 }
  0x89   : > { %v346_v27 = vperm.slane %v342_v22, %v335_v12 }
  0x8b   : > { %v348_v1 = vadd.f32 %v346_v27, %v338_v25  ;;  %v349_v28 = vadd.f32 %v346_v27, %v339_v26 }
  0x8d   : > { %v350_v31 = vmax.f32 %v348_v1, 0.0  ;;  %v351_v32 = vmax.f32 %v349_v28, 0.0 }
  0x8f   : > { %v358_v33 = vmul.f32 %v356_v30, %v350_v31  ;;  %v359_v34 = vmul.f32 %v995_v29, %v351_v32 }
  0x91   : > { %366 = vst [vmem:[#allocation1] ss:$2 sm:$0xff] %v358_v33 }
  0x92   : > { %368 = vst [vmem:[#allocation1 + $0x10] ss:$2 sm:$0xff] %v359_v34 }
  0x98   : > { %v369_v35 = vld.sshfl [vmem:[#allocation1] sm:$0xff pattern:$0x75316420]  ;;  %v370_v36 = vld.sshfl [vmem:[#allocation1 + $0x8] sm:$0xff pattern:$0x75316420] }
  0x99   : > { %v371_v37 = vld.sshfl [vmem:[#allocation1 + $0x10] sm:$0xff pattern:$0x75316420]  ;;  %v375_v38 = vpack.c.bf16 %v370_v36, %v369_v35 }
  0x9a   : > { %v376_v39 = vpack.c.bf16 %v371_v37, %v371_v37 }
  0x9b   : > { %v379_v40 = vrot.slane %v375_v38, 2 }
  0x9c   : > { %v380_v41 = vrot.slane %v376_v39, 4  ;;  %v381_v42 = vrot.slane %v376_v39, 6 }
  0x9d   : > { %v385_v43 = vsel %vm382_vm5, %v375_v38, %v379_v40 }
  0x9e   : > { %v389_v44 = vsel %vm386_vm6, %v380_v41, %v381_v42 }
  0x9f   : > { %v390_v45 = vsel %vm355_vm3, %v385_v43, %v389_v44 }
  0xa0   : > { %392 = vrot.lane.b32.xlu1 %v390_v45, %s895_s23 }
 0x112   : > { %v393_v46 = vpop.permute.xlu1 %392 }
 0x113   : > { %v394_v47 = vrot.slane %v393_v46, 6 }
 0x115   : > { %v396_v48 = vsel %vm395_vm11, %v394_v47, %v393_v46  ;;  %vm631_vm11 = vcmask 293888  }
 0x116   : > { %403 = vst.msk [vmem:[#allocation2] sm:$0x3f] %vm402_vm12, %v396_v48  ;;  %vm708_vm12 = vcmask 257024  }
 0x11d   : > { %v404_v49 = vld [vmem:[#allocation2] sm:$0x3f] }
 0x11e   : > { %406 = vst [vmem:[#allocation1] ss:$2 sm:$0xff] %v404_v49  ;;  %v414_v50 = vld [vmem:[#allocation2] sm:$0x3f] }
 0x11f   : > { %v437_v53 = vld [vmem:[#allocation2] sm:$0x3f] }
 0x120   : > { %v457_v56 = vld [vmem:[#allocation2] sm:$0x3f] }
 0x121   : > { %v478_v59 = vld [vmem:[#allocation2] sm:$0x3f] }
 0x122   : > { %v498_v62 = vld [vmem:[#allocation2] sm:$0x3f] }
 0x123   : > { %v519_v2 = vld [vmem:[#allocation2] sm:$0x3f] }
 0x124   : > { %v539_v8 = vld [vmem:[#allocation2] sm:$0x3f] }
 0x125   : > { %v407_v51 = vld.sshfl [vmem:[#allocation1] sm:$0xff pattern:$0x75643120]  ;;  %v408_v52 = vld.sshfl [vmem:[#allocation1 + $0x8] sm:$0xff pattern:$0x75643120] }
 0x126   : > { %417 = vst [vmem:[#allocation1 + $0x1] ss:$2 sm:$0xff] %v414_v50  ;;  %v560_v4 = vld [vmem:[#allocation2] sm:$0x3f] }
 0x127   : > { %411 = vst [vmem:[#allocation3] sm:$0x33] %v407_v51 }
 0x128   : > { %413 = vst.msk [vmem:[#allocation3 + $0x8] sm:$0x3] %vm412_vm13, %v408_v52 }
 0x12d   : > { %v418_v54 = vld.sshfl [vmem:[#allocation1] sm:$0xff pattern:$0x75643120]  ;;  %v420_v55 = vld.sshfl [vmem:[#allocation1 + $0x8] sm:$0xff pattern:$0x75643120] }
 0x12e   : > { %439 = vst [vmem:[#allocation1] ss:$2 sm:$0xff] %v437_v53 }
 0x135   : > { %v440_v57 = vld.sshfl [vmem:[#allocation1] sm:$0xff pattern:$0x75643120]  ;;  %v442_v58 = vld.sshfl [vmem:[#allocation1 + $0x8] sm:$0xff pattern:$0x75643120] }
 0x136   : > { %460 = vst [vmem:[#allocation1 + $0x1] ss:$2 sm:$0xff] %v457_v56 }
 0x13d   : > { %v461_v60 = vld.sshfl [vmem:[#allocation1] sm:$0xff pattern:$0x75643120]  ;;  %v463_v61 = vld.sshfl [vmem:[#allocation1 + $0x8] sm:$0xff pattern:$0x75643120] }
 0x13e   : > { %480 = vst [vmem:[#allocation1] ss:$2 sm:$0xff] %v478_v59 }
 0x145   : > { %v483_v63 = vld.sshfl [vmem:[#allocation1 + $0x8] sm:$0xff pattern:$0x75643120]  ;;  %v481_v0 = vld.sshfl [vmem:[#allocation1] sm:$0xff pattern:$0x75643120] }
 0x146   : > { %487 = vrot.lane.b32.xlu1 %v483_v63, %s896_s24  ;;  %485 = vrot.lane.b32.xlu2 %v481_v0, %s896_s24  ;;  %501 = vst [vmem:[#allocation1 + $0x1] ss:$2 sm:$0xff] %v498_v62 }
 0x14d   : > { %v504_v3 = vld.sshfl [vmem:[#allocation1 + $0x8] sm:$0xff pattern:$0x75643120]  ;;  %v502_v6 = vld.sshfl [vmem:[#allocation1] sm:$0xff pattern:$0x75643120] }
 0x14e   : > { %508 = vrot.lane.b32.xlu0 %v504_v3, %s897_s25  ;;  %506 = vrot.lane.b32.xlu2 %v502_v6, %s897_s25  ;;  %521 = vst [vmem:[#allocation1] ss:$2 sm:$0xff] %v519_v2 }
 0x155   : > { %v524_v5 = vld.sshfl [vmem:[#allocation1 + $0x8] sm:$0xff pattern:$0x75643120]  ;;  %v522_v9 = vld.sshfl [vmem:[#allocation1] sm:$0xff pattern:$0x75643120] }
 0x156   : > { %528 = vrot.lane.b32.xlu2 %v524_v5, %s898_s26  ;;  %526 = vrot.lane.b32.xlu1 %v522_v9, %s898_s26  ;;  %542 = vst [vmem:[#allocation1 + $0x1] ss:$2 sm:$0xff] %v539_v8 }
 0x15d   : > { %v545_v10 = vld.sshfl [vmem:[#allocation1 + $0x8] sm:$0xff pattern:$0x75643120]  ;;  %v543_v11 = vld.sshfl [vmem:[#allocation1] sm:$0xff pattern:$0x75643120] }
 0x15e   : > { %549 = vrot.lane.b32.xlu1 %v545_v10, %s899_s27  ;;  %547 = vrot.lane.b32.xlu0 %v543_v11, %s899_s27  ;;  %562 = vst [vmem:[#allocation1] ss:$2 sm:$0xff] %v560_v4 }
 0x165   : > { %v565_v7 = vld.sshfl [vmem:[#allocation1 + $0x8] sm:$0xff pattern:$0x75643120]  ;;  %v563_v12 = vld.sshfl [vmem:[#allocation1] sm:$0xff pattern:$0x75643120] }
 0x166   : > { %424 = vrot.lane.b32.xlu0 %v420_v55, %s900_s28  ;;  %569 = vrot.lane.b32.xlu2 %v565_v7, %s901_s29 }
 0x167   : > { %567 = vrot.lane.b32.xlu1 %v563_v12, %s901_s29 }
 0x16e   : > { %465 = vrot.lane.b32.xlu0 %v461_v60, %s902_s30  ;;  %422 = vrot.lane.b32.xlu2 %v418_v54, %s900_s28 }
 0x16f   : > { %444 = vrot.lane.b32.xlu1 %v440_v57, %s903_s5 }
 0x176   : > { %446 = vrot.lane.b32.xlu2 %v442_v58, %s903_s5 }
 0x177   : > { %467 = vrot.lane.b32.xlu1 %v463_v61, %s902_s30 }
 0x1a0   : > { %v486_v13 = vpop.permute.xlu2 %485 }
 0x1a1   : > { %v489_v17 = vrot.slane %v486_v13, 4 }
 0x1a8   : > { %v507_v14 = vpop.permute.xlu2 %506 }
 0x1a9   : > { %v510_v25 = vrot.slane %v507_v14, 4 }
 0x1b0   : > { %v529_v15 = vpop.permute.xlu2 %528 }
 0x1b1   : > { %538 = vst.msk [vmem:[#allocation3 + $0x2c] sm:$0x3] %vm412_vm13, %v529_v15  ;;  %v531_v31 = vrot.slane %v529_v15, 4 }
 0x1b8   : > { %v488_v16 = vpop.permute.xlu1 %487 }
 0x1b9   : > { %v490_v18 = vrot.slane %v488_v16, 4  ;;  %497 = vst.msk [vmem:[#allocation3 + $0x20] sm:$0x3] %vm412_vm13, %v488_v16 }
 0x1bb   : > { %v491_v19 = vsel %vm355_vm3, %v489_v17, %v490_v18 }
 0x1bc   : > { %v493_v21 = vsel %vm492_vm14, %v486_v13, %v491_v19  ;;  %vm701_vm14 = vmor %vm399_vm8, %vm382_vm5 }
 0x1bd   : > { %496 = vst [vmem:[#allocation3 + $0x18] sm:$0x33] %v493_v21 }
 0x1c0   : > { %v509_v22 = vpop.permute.xlu0 %508  ;;  %v570_v24 = vpop.permute.xlu2 %569 }
 0x1c1   : > { %v511_v26 = vrot.slane %v509_v22, 4  ;;  %518 = vst.msk [vmem:[#allocation3 + $0x20] sm:$0xc] %vm435_vm15, %v509_v22  ;;  %v572_v53 = vrot.slane %v570_v24, 4 }
 0x1c2   : > { %579 = vst.msk [vmem:[#allocation3 + $0x38] sm:$0x3] %vm412_vm13, %v570_v24 }
 0x1c3   : > { %v512_v27 = vsel %vm355_vm3, %v510_v25, %v511_v26  ;;  %v580_v25 = vld [vmem:[%s1056_s2] sm:$0x3] }
 0x1c4   : > { %v514_v1 = vsel %vm513_vm0, %v507_v14, %v512_v27  ;;  %vm725_vm0 = vcmask 11272  }
 0x1c5   : > { %517 = vst [vmem:[#allocation3 + $0x18] sm:$0xcc] %v514_v1 }
 0x1c8   : > { %v527_v28 = vpop.permute.xlu1 %526  ;;  %v423_v30 = vpop.permute.xlu2 %422  ;;  %v846_v47 = vld [vmem:[#allocation3 + $0x20] sm:$0xf] }
 0x1c9   : > { %v530_v32 = vrot.slane %v527_v28, 4  ;;  %v590_v33 = vld [vmem:[#allocation3 + $0x38] sm:$0x3]  ;;  %v426_v49 = vrot.slane %v423_v30, 4 }
 0x1ca   : > { %v615_v34 = vunpack.c.l.b16 %v590_v33 }
 0x1cb   : > { %v532_v35 = vsel %vm355_vm3, %v530_v32, %v531_v31 }
 0x1cc   : > { %v534_v36 = vsel %vm533_vm1, %v527_v28, %v532_v35  ;;  %v624_v37 = vpack.c.b16 %v615_v34, %v615_v34  ;;  %v838_v15 = vld [vmem:[#allocation3 + $0x18] sm:$0xf]  ;;  %v856_v16 = vld [vmem:[#allocation3 + $0x1c] sm:$0xf] }
 0x1cd   : > { %537 = vst [vmem:[#allocation3 + $0x24] sm:$0x33] %v534_v36 }
 0x1ce   : > { %v642_v38 = vsel %vm382_vm5, %v624_v37, 0 }
 0x1cf   : > { %675 = vmatpush.bf16.msra.mxu2 %v642_v38 }
 0x1d0   : > { %v550_v39 = vpop.permute.xlu1 %549  ;;  %v548_v40 = vpop.permute.xlu0 %547 }
 0x1d1   : > { %v552_v41 = vrot.slane %v550_v39, 4  ;;  %559 = vst.msk [vmem:[#allocation3 + $0x2c] sm:$0xc] %vm435_vm15, %v550_v39  ;;  %v551_v42 = vrot.slane %v548_v40, 4  ;;  %v447_v43 = vpop.permute.xlu2 %446 }
 0x1d2   : > { %456 = vst.msk [vmem:[#allocation3 + $0x14] sm:$0x3] %vm412_vm13, %v447_v43  ;;  %v449_v60 = vrot.slane %v447_v43, 4  ;;  %vm702_vm13 = vcmask 259076  }
 0x1d3   : > { %v553_v44 = vsel %vm355_vm3, %v551_v42, %v552_v41  ;;  %vm703_vm8 = vmor %vm702_vm13, %vm701_vm14 }
 0x1d4   : > { %v555_v45 = vsel %vm554_vm2, %v548_v40, %v553_v44 }
 0x1d5   : > { %558 = vst [vmem:[#allocation3 + $0x24] sm:$0xcc] %v555_v45 }
 0x1d8   : > { %v425_v46 = vpop.permute.xlu0 %424  ;;  %v858_v48 = vld [vmem:[#allocation3 + $0x28] sm:$0xf0] }
 0x1d9   : > { %v427_v50 = vrot.slane %v425_v46, 4  ;;  %436 = vst.msk [vmem:[#allocation3 + $0x8] sm:$0xc] %vm435_vm15, %v425_v46  ;;  %v568_v51 = vpop.permute.xlu1 %567  ;;  %v847_v52 = vor.u32 %v858_v48, %v846_v47 }
 0x1da   : > { %v571_v54 = vrot.slane %v568_v51, 4 }
 0x1db   : > { %v429_v55 = vsel %vm355_vm3, %v426_v49, %v427_v50  ;;  %676 = vmatpush.bf16.msra.mxu2 %v847_v52 }
 0x1dc   : > { %v431_v56 = vsel %vm430_vm4, %v423_v30, %v429_v55  ;;  %v573_v57 = vsel %vm355_vm3, %v571_v54, %v572_v53  ;;  %v857_v4 = vld [vmem:[#allocation3 + $0x20] sm:$0xf0]  ;;  %v840_v10 = vld [vmem:[#allocation3 + $0x24] sm:$0xf0] }
 0x1dd   : > { %434 = vst [vmem:[#allocation3] sm:$0xcc] %v431_v56  ;;  %v575_v58 = vsel %vm574_vm7, %v568_v51, %v573_v57  ;;  %v839_v18 = vor.u32 %v857_v4, %v838_v15  ;;  %v843_v19 = vor.u32 %v856_v16, %v840_v10 }
 0x1de   : > { %578 = vst [vmem:[#allocation3 + $0x30] sm:$0x33] %v575_v58 }
 0x1e0   : > { %v466_v6 = vpop.permute.xlu0 %465  ;;  %v834_v21 = vld [vmem:[#allocation3 + $0x8] sm:$0xf] }
 0x1e1   : > { %v445_v59 = vpop.permute.xlu1 %444  ;;  %v469_v11 = vrot.slane %v466_v6, 4 }
 0x1e2   : > { %v448_v61 = vrot.slane %v445_v59, 4 }
 0x1e4   : > { %v450_v62 = vsel %vm355_vm3, %v448_v61, %v449_v60  ;;  %v826_v26 = vld [vmem:[#allocation3] sm:$0xf]  ;;  %v853_v1 = vld [vmem:[#allocation3 + $0x4] sm:$0xf] }
 0x1e5   : > { %v452_v63 = vsel %vm451_vm9, %v445_v59, %v450_v62  ;;  %v589_v0 = vld [vmem:[#allocation3 + $0x30] sm:$0x33] }
 0x1e6   : > { %455 = vst [vmem:[#allocation3 + $0xc] sm:$0x33] %v452_v63  ;;  %v613_v2 = vunpack.c.l.b16 %v589_v0  ;;  %v614_v3 = vunpack.c.h.b16 %v589_v0 }
 0x1e8   : > { %v622_v8 = vpack.c.b16 %v613_v2, %v613_v2  ;;  %v623_v5 = vpack.c.b16 %v614_v3, %v614_v3 }
 0x1e9   : > { %v468_v9 = vpop.permute.xlu1 %467 }
 0x1ea   : > { %v470_v7 = vrot.slane %v468_v9, 4  ;;  %477 = vst.msk [vmem:[#allocation3 + $0x14] sm:$0xc] %vm435_vm15, %v468_v9  ;;  %v636_v12 = vsel %vm382_vm5, %v622_v8, 0  ;;  %v639_v13 = vsel %vm382_vm5, %v623_v5, 0  ;;  %vm713_vm15 = vcmask 3072  }
 0x1eb   : > { %649 = vmatpush.bf16.msra.mxu0 %v636_v12  ;;  %662 = vmatpush.bf16.msra.mxu1 %v639_v13 }
 0x1ec   : > { %v471_v14 = vsel %vm355_vm3, %v469_v11, %v470_v7 }
 0x1ed   : > { %v473_v17 = vsel %vm472_vm10, %v466_v6, %v471_v14 }
 0x1ee   : > { %476 = vst [vmem:[#allocation3 + $0xc] sm:$0xcc] %v473_v17 }
 0x1ef   : > { %650 = vmatpush.bf16.msra.mxu0 %v839_v18  ;;  %663 = vmatpush.bf16.msra.mxu1 %v843_v19 }
 0x1f1   : > { %v855_v22 = vld [vmem:[#allocation3 + $0x10] sm:$0xf0] }
 0x1f2   : > { %v835_v24 = vor.u32 %v855_v22, %v834_v21 }
 0x1f4   : > { %677 = vmatpush.bf16.msra.mxu2 %v835_v24 }
 0x1f5   : > { %v854_v27 = vld [vmem:[#allocation3 + $0x8] sm:$0xf0]  ;;  %v828_v28 = vld [vmem:[#allocation3 + $0xc] sm:$0xf0] }
 0x1f6   : > { %v827_v30 = vor.u32 %v854_v27, %v826_v26  ;;  %v831_v31 = vor.u32 %v853_v1, %v828_v28 }
 0x1f7   : > { %850 = vmatmul.msk.bf16.vlgmr.msra.gmra.mxu2 %vm631_vm11, %v580_v25 }
 0x1f8   : > { %651 = vmatpush.bf16.msra.mxu0 %v827_v30  ;;  %664 = vmatpush.bf16.msra.mxu1 %v831_v31 }
 0x1fb   : > { %848 = vmatmul.msk.bf16.vlgmr.msra.gmra.mxu0 %vm631_vm11, %v580_v25  ;;  %849 = vmatmul.msk.bf16.vlgmr.msra.gmra.mxu1 %vm631_vm11, %v580_v25 }
 0x278   : > { %v653_v32 = vpop.f32.mrf.mxu0  ;;  %v666_v33 = vpop.f32.mrf.mxu1 }
 0x279   : > { %v683_v34 = vmul.f32 %v992_v23, %v653_v32  ;;  %v684_v35 = vmul.f32 %v990_v20, %v666_v33 }
 0x27a   : > { %v679_v36 = vpop.f32.mrf.mxu2 }
 0x27b   : > { %v715_v37 = vmul.f32 %v683_v34, %v683_v34  ;;  %v686_v38 = vpack.c.bf16 %v684_v35, %v683_v34  ;;  %v716_v39 = vmul.f32 %v684_v35, %v684_v35  ;;  %v685_v40 = vmul.f32 %v995_v29, %v679_v36 }
 0x27c   : > { %v705_v41 = vsel %vm355_vm3, %v683_v34, 0.0  ;;  %v706_v42 = vsel %vm355_vm3, %v684_v35, 0.0 }
 0x27d   : > { %v690_v43 = vrot.slane %v686_v38, 2  ;;  %v687_v23 = vpack.c.bf16 %v685_v40, %v685_v40  ;;  %v707_v44 = vadd.f32 %v706_v42, %v705_v41  ;;  %v709_v20 = vsel %vm708_vm12, %v685_v40, 0.0 }
 0x27e   : > { %v717_v45 = vmul.f32 %v685_v40, %v685_v40  ;;  %v718_v46 = vsel %vm355_vm3, %v715_v37, 0.0  ;;  %v719_v47 = vsel %vm355_vm3, %v716_v39, 0.0 }
 0x27f   : > { %v691_v48 = vrot.slane %v687_v23, 4  ;;  %v692_v29 = vrot.slane %v687_v23, 6  ;;  %v710_v49 = vadd.f32 %v709_v20, %v707_v44  ;;  %v720_v52 = vadd.f32 %v719_v47, %v718_v46 }
 0x280   : > { %v655_v50 = vpop.f32.mrf.mxu0  ;;  %v668_v51 = vpop.f32.mrf.mxu1  ;;  %v721_v53 = vsel %vm708_vm12, %v717_v45, 0.0  ;;  %v695_v54 = vsel %vm382_vm5, %v686_v38, %v690_v43 }
 0x281   : > { %v698_v55 = vsel %vm386_vm6, %v691_v48, %v692_v29  ;;  %711 = vadd.xlane.f32.xlu2 %v710_v49  ;;  %v722_v58 = vadd.f32 %v721_v53, %v720_v52 }
 0x282   : > { %v699_v56 = vsel %vm355_vm3, %v695_v54, %v698_v55  ;;  %v681_v57 = vpop.f32.mrf.mxu2 }
 0x283   : > { %704 = vst.msk [vmem:[%s204_s10] sm:$0x3f] %vm703_vm8, %v699_v56  ;;  %723 = vadd.xlane.f32.xlu0 %v722_v58 }
 0x2f4   : > { %v712_v59 = vpop.xlane.xlu2 %711 }
 0x2f5   : > { %714 = vst.msk [vmem:[%s208_s14] sm:$0xf] %vm713_vm15, %v712_v59 }
 0x2f6   : > { %v724_v60 = vpop.xlane.xlu0 %723 }
 0x2f7   : > { %726 = vst.msk [vmem:[%s208_s14] sm:$0xf] %vm725_vm0, %v724_v60 }
 0x2f8 PF: > { %s15_s15 = sadd.s32 1, %s889_s15  }
 0x2f9   : > { %p12_p4 = scmp.ge.s32.totalorder %s15_s15, 4  }
 0x2fb   :  { %14 = sbr.rel (!%p12_p4) target bundleno = 1 (0x1), region = 79 }

// kernel: _lambda_.5
= control target key start
LH: loop header
LB: loop body
LE: loop exit
PB: predicated region body
PF: predicated region fallthrough
CT: control target
= control target key end

     0   :  { %s1308_s15 = smov 0   ;;  %s1499_s0 = inlined_call_operand.vmem [shape: f32[2,4,256], index: 0, kind: input, shape index: {}]   ;;  %s1500_s1 = inlined_call_operand.vmem [shape: bf16[2,4,256], index: 1, kind: input, shape index: {}]   ;;  %s1501_s2 = inlined_call_operand.vmem [shape: bf16[4,72], index: 2, kind: input, shape index: {}]   ;;  %s1502_s3 = inlined_call_operand.vmem [shape: bf16[2,4,288], index: 3, kind: output, shape index: {0}]   ;;  %s1503_s4 = inlined_call_operand.vmem [shape: f32[2,4,2], index: 4, kind: output, shape index: {1}]  }
   0x1 LB: > { %s1133_s16 = sadd.s32 4294967295, %s1255_s15   ;;  %p1137_p0 = scmp.ge.s32.totalorder %s1255_s15, 1  ;;  %s1255_s15 = sphi %s1308_s15, %s15_s15  }
   0x2   : > { %p175_p1 = scmp.lt.s32.totalorder %s1255_s15, 3 }
   0x4   : > { %p176_p2 = pnand %p1137_p0, %p175_p1 }
   0x5   : > { %p210_p3 = scmp.lt.s32.totalorder (!%p176_p2), %s1133_s16, 1  ;;  %s1257_s25 = smov (!%p176_p2), 21  }
   0x6   : > { %179 = sbr.rel (%p176_p2) target bundleno = 677 (0x2a5), region = 32  ;;  %s1258_s26 = smov (!%p176_p2), 19  }
   0x7   : > { %s1259_s27 = smov (!%p176_p2), 23   ;;  %s1260_s28 = smov (!%p176_p2), 31  }
   0x8   : > { %s1261_s29 = smov (!%p176_p2), 27   ;;  %s1262_s30 = smov (!%p176_p2), 25  }
   0x9   : > { %s1263_s5 = smov (!%p176_p2), 33   ;;  %s1264_s6 = smov (!%p176_p2), 35  }
   0xa   : > { %s1265_s7 = smov (!%p176_p2), 29   ;;  %s1266_s8 = smov (!%p176_p2), 37  }
   0xb   : > { %s1505_s16 = smov (!%p210_p3, %s1133_s16), 1  ;;  %s1267_s9 = smov 39   ;;  %vm230_vm0 = vcmask 150528   ;;  %v1272_v53 = vmov 0   ;;  %vm240_vm1 = vcmask 279704   ;;  %vm251_vm2 = vcmask 281754  }
   0xc   : > { %s1200_s17 = sshll.u32 %s1505_s16, 3  ;;  %s1201_s18 = sshll.u32 %s1505_s16, 2  ;;  %231 = vst.msk [vmem:[#allocation2] sm:$0xf] %vm230_vm0, %v1272_v53  ;;  %vm253_vm3 = vcmask 298264   ;;  %vm261_vm4 = vcmask 427304  }
   0xd   : > { %s1323_s21 = scalar_lea.vmem %s1499_s0, %s1200_s17  ;;  %s1330_s24 = scalar_lea.vmem %s1500_s1, %s1201_s18  ;;  %vm272_vm5 = vcmask 429354   ;;  %vm274_vm6 = vcmask 445864   ;;  %vm282_vm7 = vcmask 574904   ;;  %vm293_vm8 = vcmask 576954  }
   0xe   : > { %v255_v0 = vld [vmem:[%s1323_s21] sm:$0xf]  ;;  %v411_v19 = vld [vmem:[%s1323_s21 + $0x4] sm:$0xf]  ;;  %s1268_s10 = smov 41   ;;  %s1269_s11 = smov 43  }
   0xf   : > { %v234_v1 = vld [vmem:[%s1323_s21] sm:$0xf]  ;;  %v256_v2 = vpack.c.bf16 %v255_v0, %v255_v0  ;;  %v412_v21 = vpack.c.bf16 %v411_v19, %v411_v19  ;;  %v432_v25 = vld [vmem:[%s1323_s21 + $0x4] sm:$0xf]  ;;  %s1270_s12 = smov 45   ;;  %s1271_s13 = smov 47  }
  0x10   : > { %v235_v3 = vpack.c.bf16 %v234_v1, %v234_v1  ;;  %v242_v4 = vld [vmem:[%s1330_s24] sm:$0x3]  ;;  %v433_v26 = vpack.c.bf16 %v432_v25, %v432_v25  ;;  %v453_v29 = vld [vmem:[%s1323_s21 + $0x4] sm:$0xf]  ;;  %v419_v45 = vld [vmem:[%s1330_s24 + $0x2] sm:$0x3] }
  0x11   : > { %245 = vst [vmem:[#allocation1 + $0x1] ss:$2 sm:$0xff] %v242_v4  ;;  %258 = vrot.lane.b32.xlu1 %v256_v2, %s1257_s25  ;;  %v276_v5 = vld [vmem:[%s1323_s21] sm:$0xf]  ;;  %v454_v30 = vpack.c.bf16 %v453_v29, %v453_v29  ;;  %v474_v31 = vld [vmem:[%s1323_s21 + $0x4] sm:$0xf] }
  0x12   : > { %237 = vrot.lane.b32.xlu0 %v235_v3, %s1258_s26  ;;  %v360_v6 = vld [vmem:[%s1323_s21] sm:$0xf]  ;;  %v277_v7 = vpack.c.bf16 %v276_v5, %v276_v5  ;;  %v475_v32 = vpack.c.bf16 %v474_v31, %v474_v31  ;;  %v495_v34 = vld [vmem:[%s1323_s21 + $0x4] sm:$0xf]  ;;  %s1273_s14 = smov 49   ;;  %vm295_vm9 = vcmask 593464  }
  0x13   : > { %v361_v8 = vpack.c.bf16 %v360_v6, %v360_v6  ;;  %v263_v9 = vld [vmem:[%s1330_s24] sm:$0x3]  ;;  %v496_v36 = vpack.c.bf16 %v495_v34, %v495_v34  ;;  %v516_v37 = vld [vmem:[%s1323_s21 + $0x4] sm:$0xf]  ;;  %v440_v47 = vld [vmem:[%s1330_s24 + $0x2] sm:$0x3] }
  0x14   : > { %279 = vrot.lane.b32.xlu2 %v277_v7, %s1259_s27  ;;  %v318_v10 = vld [vmem:[%s1323_s21] sm:$0xf]  ;;  %v517_v39 = vpack.c.bf16 %v516_v37, %v516_v37  ;;  %v546_v41 = vld [vmem:[%s1323_s21 + $0x4] sm:$0xf]  ;;  %vm303_vm10 = vcmask 722504   ;;  %vm314_vm11 = vcmask 724554  }
  0x15   : > { %v319_v12 = vpack.c.bf16 %v318_v10, %v318_v10  ;;  %v297_v13 = vld [vmem:[%s1323_s21] sm:$0xf]  ;;  %v547_v43 = vpack.c.bf16 %v546_v41, %v546_v41  ;;  %v567_v59 = vld [vmem:[%s1323_s21 + $0x4] sm:$0xf]  ;;  %vm316_vm12 = vcmask 741064   ;;  %vm324_vm13 = vcmask 870104  }
  0x16   : > { %v298_v14 = vpack.c.bf16 %v297_v13, %v297_v13  ;;  %v284_v15 = vld [vmem:[%s1330_s24] sm:$0x3]  ;;  %v461_v49 = vld [vmem:[%s1330_s24 + $0x2] sm:$0x3]  ;;  %v568_v61 = vpack.c.bf16 %v567_v59, %v567_v59  ;;  %vm335_vm14 = vcmask 872154   ;;  %vm337_vm15 = vcmask 888664  }
  0x17   : > { %v390_v16 = vld [vmem:[%s1323_s21] sm:$0xf]  ;;  %vm345_vm0 = vcmask 1017704   ;;  %s1274_s17 = smov 90   ;;  %s1275_s19 = smov 91  }
  0x18   : > { %v246_v11 = vld.sshfl [vmem:[#allocation1] sm:$0xff pattern:$0x75643120]  ;;  %v391_v18 = vpack.c.bf16 %v390_v16, %v390_v16  ;;  %s1276_s20 = smov 92   ;;  %s1278_s22 = smov 126  }
  0x19   : > { %266 = vst [vmem:[#allocation1 + $0x1] ss:$2 sm:$0xff] %v263_v9  ;;  %363 = vrot.lane.b32.xlu1 %v361_v8, %s1260_s28  ;;  %v339_v20 = vld [vmem:[%s1323_s21] sm:$0xf]  ;;  %s1277_s21 = smov 109   ;;  %s1279_s23 = smov 108  }
  0x1a   : > { %248 = vrot.lane.b32.xlu0 %v246_v11, %s1258_s26  ;;  %v340_v22 = vpack.c.bf16 %v339_v20, %v339_v20  ;;  %v305_v23 = vld [vmem:[%s1330_s24] sm:$0x3]  ;;  %v482_v51 = vld [vmem:[%s1330_s24 + $0x2] sm:$0x3] }
  0x1b   : > { %v326_v27 = vld [vmem:[%s1330_s24] sm:$0x3]  ;;  %v503_v54 = vld [vmem:[%s1330_s24 + $0x2] sm:$0x3] }
  0x1c   : > { %321 = vrot.lane.b32.xlu2 %v319_v12, %s1261_s29  ;;  %v347_v33 = vld [vmem:[%s1330_s24] sm:$0x3]  ;;  %v529_v57 = vld [vmem:[%s1330_s24 + $0x2] sm:$0x3] }
  0x1d   : > { %v373_v38 = vld [vmem:[%s1330_s24] sm:$0x3]  ;;  %v554_v62 = vld [vmem:[%s1330_s24 + $0x2] sm:$0x3] }
  0x1e   : > { %v398_v42 = vld [vmem:[%s1330_s24] sm:$0x3]  ;;  %v575_v3 = vld [vmem:[%s1330_s24 + $0x2] sm:$0x3]  ;;  %s1280_s24 = smov 110  }
  0x20   : > { %v267_v17 = vld.sshfl [vmem:[#allocation1] sm:$0xff pattern:$0x75643120] }
  0x21   : > { %287 = vst [vmem:[#allocation1 + $0x1] ss:$2 sm:$0xff] %v284_v15  ;;  %269 = vrot.lane.b32.xlu1 %v267_v17, %s1257_s25  ;;  %s1281_s25 = smov 127  }
  0x22   : > { %300 = vrot.lane.b32.xlu0 %v298_v14, %s1262_s30 }
  0x24   : > { %393 = vrot.lane.b32.xlu2 %v391_v18, %s1263_s5 }
  0x28   : > { %v288_v24 = vld.sshfl [vmem:[#allocation1] sm:$0xff pattern:$0x75643120] }
  0x29   : > { %308 = vst [vmem:[#allocation1 + $0x1] ss:$2 sm:$0xff] %v305_v23  ;;  %414 = vrot.lane.b32.xlu1 %v412_v21, %s1264_s6 }
  0x2a   : > { %342 = vrot.lane.b32.xlu0 %v340_v22, %s1265_s7 }
  0x2c   : > { %290 = vrot.lane.b32.xlu2 %v288_v24, %s1259_s27 }
  0x30   : > { %v309_v28 = vld.sshfl [vmem:[#allocation1] sm:$0xff pattern:$0x75643120] }
  0x31   : > { %329 = vst [vmem:[#allocation1 + $0x1] ss:$2 sm:$0xff] %v326_v27  ;;  %311 = vrot.lane.b32.xlu1 %v309_v28, %s1262_s30 }
  0x32   : > { %435 = vrot.lane.b32.xlu0 %v433_v26, %s1266_s8 }
  0x34   : > { %456 = vrot.lane.b32.xlu2 %v454_v30, %s1267_s9 }
  0x38   : > { %v330_v35 = vld.sshfl [vmem:[#allocation1] sm:$0xff pattern:$0x75643120] }
  0x39   : > { %350 = vst [vmem:[#allocation1 + $0x1] ss:$2 sm:$0xff] %v347_v33  ;;  %477 = vrot.lane.b32.xlu1 %v475_v32, %s1268_s10 }
  0x3a   : > { %332 = vrot.lane.b32.xlu0 %v330_v35, %s1261_s29 }
  0x3c   : > { %498 = vrot.lane.b32.xlu2 %v496_v36, %s1269_s11 }
  0x40   : > { %v351_v40 = vld.sshfl [vmem:[#allocation1] sm:$0xff pattern:$0x75643120] }
  0x41   : > { %376 = vst [vmem:[#allocation1 + $0x1] ss:$2 sm:$0xff] %v373_v38  ;;  %353 = vrot.lane.b32.xlu1 %v351_v40, %s1265_s7 }
  0x42   : > { %519 = vrot.lane.b32.xlu0 %v517_v39, %s1270_s12 }
  0x48   : > { %v377_v44 = vld.sshfl [vmem:[#allocation1] sm:$0xff pattern:$0x75643120] }
  0x49   : > { %401 = vst [vmem:[#allocation1 + $0x1] ss:$2 sm:$0xff] %v398_v42  ;;  %379 = vrot.lane.b32.xlu2 %v377_v44, %s1260_s28  ;;  %549 = vrot.lane.b32.xlu1 %v547_v43, %s1271_s13  ;;  %s1214_s28 = smul.u32 6, %s1505_s16 }
  0x50   : > { %v402_v46 = vld.sshfl [vmem:[#allocation1] sm:$0xff pattern:$0x75643120] }
  0x51   : > { %422 = vst [vmem:[#allocation1 + $0x1] ss:$2 sm:$0xff] %v419_v45  ;;  %404 = vrot.lane.b32.xlu0 %v402_v46, %s1263_s5  ;;  %s224_s5 = scalar_lea.vmem %s1502_s3, %s1214_s28 }
  0x58   : > { %v423_v48 = vld.sshfl [vmem:[#allocation1] sm:$0xff pattern:$0x75643120] }
  0x59   : > { %443 = vst [vmem:[#allocation1 + $0x1] ss:$2 sm:$0xff] %v440_v47  ;;  %425 = vrot.lane.b32.xlu2 %v423_v48, %s1264_s6 }
  0x60   : > { %v444_v50 = vld.sshfl [vmem:[#allocation1] sm:$0xff pattern:$0x75643120] }
  0x61   : > { %446 = vrot.lane.b32.xlu1 %v444_v50, %s1266_s8  ;;  %464 = vst [vmem:[#allocation1 + $0x1] ss:$2 sm:$0xff] %v461_v49  ;;  %s228_s8 = scalar_lea.vmem %s1503_s4, %s1201_s18 }
  0x68   : > { %v465_v52 = vld.sshfl [vmem:[#allocation1] sm:$0xff pattern:$0x75643120] }
  0x69   : > { %485 = vst [vmem:[#allocation1 + $0x1] ss:$2 sm:$0xff] %v482_v51  ;;  %467 = vrot.lane.b32.xlu0 %v465_v52, %s1267_s9 }
  0x6e   : > { %v280_v56 = vpop.permute.xlu2 %279 }
  0x70   : > { %v486_v55 = vld.sshfl [vmem:[#allocation1] sm:$0xff pattern:$0x75643120] }
  0x71   : > { %506 = vst [vmem:[#allocation1 + $0x1] ss:$2 sm:$0xff] %v503_v54  ;;  %488 = vrot.lane.b32.xlu2 %v486_v55, %s1268_s10 }
  0x76   : > { %v322_v60 = vpop.permute.xlu2 %321 }
  0x78   : > { %v507_v58 = vld.sshfl [vmem:[#allocation1] sm:$0xff pattern:$0x75643120] }
  0x79   : > { %509 = vrot.lane.b32.xlu0 %v507_v58, %s1269_s11  ;;  %532 = vst [vmem:[#allocation1 + $0x1] ss:$2 sm:$0xff] %v529_v57 }
  0x7e   : > { %v1387_v2 = vpop.permute.xlu2 %393 }
  0x80   : > { %v533_v63 = vld.sshfl [vmem:[#allocation1] sm:$0xff pattern:$0x75643120] }
  0x81   : > { %557 = vst [vmem:[#allocation1 + $0x1] ss:$2 sm:$0xff] %v554_v62  ;;  %535 = vrot.lane.b32.xlu1 %v533_v63, %s1270_s12  ;;  %570 = vrot.lane.b32.xlu0 %v568_v61, %s1273_s14 }
  0x83   : > { %v259_v0 = vpop.permute.xlu1 %258 }
  0x84   : > { %v238_v1 = vpop.permute.xlu0 %237 }
  0x85   : > { %241 = vst.msk [vmem:[#allocation2] sm:$0x3] %vm240_vm1, %v238_v1  ;;  %vm369_vm1 = vcmask 1042424  }
  0x86   : > { %v291_v7 = vpop.permute.xlu2 %290 }
  0x88   : > { %v558_v4 = vld.sshfl [vmem:[#allocation1] sm:$0xff pattern:$0x75643120] }
  0x89   : > { %578 = vst [vmem:[#allocation1 + $0x1] ss:$2 sm:$0xff] %v575_v3  ;;  %560 = vrot.lane.b32.xlu2 %v558_v4, %s1271_s13 }
  0x8b   : > { %v364_v5 = vpop.permute.xlu1 %363 }
  0x8c   : > { %v249_v6 = vpop.permute.xlu0 %248  ;;  %v365_v21 = vrot.slane %v364_v5, 4 }
  0x8d   : > { %252 = vst.msk [vmem:[#allocation2] sm:$0xc] %vm251_vm2, %v249_v6  ;;  %vm370_vm2 = vcmask 119812  }
  0x8e   : > { %254 = vst.msk [vmem:[#allocation2] sm:$0xf] %vm253_vm3, %v1272_v53  ;;  %v1394_v11 = vpop.permute.xlu2 %456  ;;  %vm356_vm3 = vcmask 1019754  }
  0x8f   : > { %262 = vst.msk [vmem:[#allocation2] sm:$0x3] %vm261_vm4, %v259_v0  ;;  %vm384_vm4 = vcmask 1044474  }
  0x90   : > { %v579_v8 = vld.sshfl [vmem:[#allocation1] sm:$0xff pattern:$0x75643120] }
  0x91   : > { %581 = vrot.lane.b32.xlu1 %v579_v8, %s1273_s14 }
  0x93   : > { %v270_v9 = vpop.permute.xlu1 %269 }
  0x94   : > { %v301_v10 = vpop.permute.xlu0 %300  ;;  %273 = vst.msk [vmem:[#allocation2] sm:$0xc] %vm272_vm5, %v270_v9  ;;  %vm385_vm5 = vcmask 121862  }
  0x95   : > { %275 = vst.msk [vmem:[#allocation2] sm:$0xf] %vm274_vm6, %v1272_v53  ;;  %vm366_vm6 = vcmask 252928  }
  0x96   : > { %283 = vst.msk [vmem:[#allocation2] sm:$0x3] %vm282_vm7, %v280_v56  ;;  %v1396_v14 = vpop.permute.xlu2 %498  ;;  %vm358_vm7 = vcmask 1036264   ;;  %v367_v24 = vsel %vm366_vm6, %v365_v21, %v364_v5 }
  0x97   : > { %294 = vst.msk [vmem:[#allocation2] sm:$0xc] %vm293_vm8, %v291_v7  ;;  %vm371_vm8 = vmor %vm370_vm2, %vm369_vm1  ;;  %vm430_vm1 = vcmask 429464   ;;  %vm438_vm2 = vcmask 558504  }
  0x98   : > { %296 = vst.msk [vmem:[#allocation2] sm:$0xf] %vm295_vm9, %v1272_v53  ;;  %vm386_vm9 = vmor %vm385_vm5, %vm384_vm4  ;;  %vm451_vm4 = vcmask 577064   ;;  %vm459_vm5 = vcmask 706104  }
  0x99   : > { %304 = vst.msk [vmem:[#allocation2] sm:$0x3] %vm303_vm10, %v301_v10  ;;  %vm388_vm10 = vcmask 134264  }
  0x9b   : > { %v415_v12 = vpop.permute.xlu1 %414 }
  0x9c   : > { %v343_v13 = vpop.permute.xlu0 %342 }
  0xa3   : > { %v312_v15 = vpop.permute.xlu1 %311  ;;  %v380_v19 = vpop.permute.xlu2 %379 }
  0xa4   : > { %v436_v16 = vpop.permute.xlu0 %435  ;;  %315 = vst.msk [vmem:[#allocation2] sm:$0xc] %vm314_vm11, %v312_v15  ;;  %v381_v20 = vrot.slane %v380_v19, 4  ;;  %vm396_vm11 = vcmask 263304  }
  0xa5   : > { %317 = vst.msk [vmem:[#allocation2] sm:$0xf] %vm316_vm12, %v1272_v53  ;;  %vm232_vm12 = vcmask 568728  }
  0xa6   : > { %325 = vst.msk [vmem:[#allocation2] sm:$0x3] %vm324_vm13, %v322_v60  ;;  %v382_v23 = vsel %vm366_vm6, %v381_v20, %v380_v19  ;;  %vm407_vm13 = vcmask 265354   ;;  %vm470_vm6 = vcmask 708154  }
  0xa7   : > { %233 = vst.msk [vmem:[#allocation2 + $0x8] sm:$0xf] %vm232_vm12, %v1272_v53  ;;  %vm525_vm12 = vcmask 1042408  }
  0xab   : > { %v1399_v17 = vpop.permute.xlu1 %477 }
  0xac   : > { %v333_v18 = vpop.permute.xlu0 %332 }
  0xad   : > { %336 = vst.msk [vmem:[#allocation2] sm:$0xc] %vm335_vm14, %v333_v18  ;;  %vm409_vm14 = vcmask 281864  }
  0xae   : > { %338 = vst.msk [vmem:[#allocation2] sm:$0xf] %vm337_vm15, %v1272_v53  ;;  %vm417_vm15 = vcmask 410904  }
  0xaf   : > { %346 = vst.msk [vmem:[#allocation2] sm:$0x3] %vm345_vm0, %v343_v13  ;;  %vm428_vm0 = vcmask 412954  }
  0xb3   : > { %v354_v22 = vpop.permute.xlu1 %353  ;;  %v426_v27 = vpop.permute.xlu2 %425 }
  0xb4   : > { %357 = vst.msk [vmem:[#allocation2] sm:$0xc] %vm356_vm3, %v354_v22  ;;  %v520_v25 = vpop.permute.xlu0 %519  ;;  %vm449_vm3 = vcmask 560554  }
  0xb5   : > { %359 = vst.msk [vmem:[#allocation2] sm:$0xf] %vm358_vm7, %v1272_v53  ;;  %vm472_vm7 = vcmask 724664   ;;  %v521_v32 = vrot.slane %v520_v25, 4 }
  0xb6   : > { %372 = vst.msk [vmem:[#allocation2] sm:$0x33] %vm371_vm8, %v367_v24  ;;  %vm480_vm8 = vcmask 853704  }
  0xb7   : > { %387 = vst.msk [vmem:[#allocation2] sm:$0xcc] %vm386_vm9, %v382_v23  ;;  %vm491_vm9 = vcmask 855754  }
  0xb8   : > { %389 = vst.msk [vmem:[#allocation2 + $0x4] sm:$0xf] %vm388_vm10, %v1272_v53  ;;  %vm493_vm10 = vcmask 872264  }
  0xb9   : > { %397 = vst.msk [vmem:[#allocation2 + $0x4] sm:$0x3] %vm396_vm11, %v1387_v2  ;;  %vm501_vm11 = vcmask 1001304  }
  0xbb   : > { %v550_v28 = vpop.permute.xlu1 %549 }
  0xc3   : > { %v405_v26 = vpop.permute.xlu0 %404 }
  0xc4   : > { %408 = vst.msk [vmem:[#allocation2 + $0x4] sm:$0xc] %vm407_vm13, %v405_v26  ;;  %vm526_vm13 = vcmask 103428  }
  0xc5   : > { %410 = vst.msk [vmem:[#allocation2 + $0x4] sm:$0xf] %vm409_vm14, %v1272_v53  ;;  %vm512_vm14 = vcmask 1003354  }
  0xc6   : > { %418 = vst.msk [vmem:[#allocation2 + $0x4] sm:$0x3] %vm417_vm15, %v415_v12  ;;  %vm522_vm15 = vcmask 367616  }
  0xc7   : > { %429 = vst.msk [vmem:[#allocation2 + $0x4] sm:$0xc] %vm428_vm0, %v426_v27  ;;  %vm514_vm0 = vcmask 1019864   ;;  %v523_v34 = vsel %vm522_vm15, %v521_v32, %v520_v25 }
  0xc8   : > { %431 = vst.msk [vmem:[#allocation2 + $0x4] sm:$0xf] %vm430_vm1, %v1272_v53  ;;  %vm527_vm1 = vmor %vm526_vm13, %vm525_vm12  ;;  %vm591_vm12 = vcmask 257024   ;;  %vm603_vm13 = vcmask 1043456  }
  0xc9   : > { %439 = vst.msk [vmem:[#allocation2 + $0x4] sm:$0x3] %vm438_vm2, %v436_v16  ;;  %vm540_vm2 = vcmask 1044458  }
  0xcb   : > { %v489_v31 = vpop.permute.xlu2 %488 }
  0xd3   : > { %v447_v29 = vpop.permute.xlu1 %446 }
  0xd4   : > { %450 = vst.msk [vmem:[#allocation2 + $0x4] sm:$0xc] %vm449_vm3, %v447_v29  ;;  %vm541_vm3 = vcmask 105478  }
  0xd5   : > { %452 = vst.msk [vmem:[#allocation2 + $0x4] sm:$0xf] %vm451_vm4, %v1272_v53  ;;  %vm542_vm4 = vmor %vm541_vm3, %vm540_vm2  ;;  %vm656_vm2 = vcmask 891904   ;;  %vm622_vm3 = vcmask 1031168  }
  0xd6   : > { %460 = vst.msk [vmem:[#allocation2 + $0x4] sm:$0x3] %vm459_vm5, %v1394_v11  ;;  %vm544_vm5 = vcmask 117864  }
  0xdb   : > { %v468_v30 = vpop.permute.xlu0 %467 }
  0xdc   : > { %471 = vst.msk [vmem:[#allocation2 + $0x4] sm:$0xc] %vm470_vm6, %v468_v30  ;;  %vm552_vm6 = vcmask 246904  }
  0xdd   : > { %473 = vst.msk [vmem:[#allocation2 + $0x4] sm:$0xf] %vm472_vm7, %v1272_v53  ;;  %vm563_vm7 = vcmask 248954  }
  0xde   : > { %481 = vst.msk [vmem:[#allocation2 + $0x4] sm:$0x3] %vm480_vm8, %v1399_v17  ;;  %vm565_vm8 = vcmask 265464  }
  0xdf   : > { %492 = vst.msk [vmem:[#allocation2 + $0x4] sm:$0xc] %vm491_vm9, %v489_v31  ;;  %vm573_vm9 = vcmask 394504  }
  0xe0   : > { %494 = vst.msk [vmem:[#allocation2 + $0x4] sm:$0xf] %vm493_vm10, %v1272_v53  ;;  %vm584_vm10 = vcmask 396554  }
  0xe1   : > { %502 = vst.msk [vmem:[#allocation2 + $0x4] sm:$0x3] %vm501_vm11, %v1396_v14  ;;  %vm586_vm11 = vcmask 413064  }
  0xe3   : > { %v561_v38 = vpop.permute.xlu2 %560 }
  0xeb   : > { %v510_v33 = vpop.permute.xlu0 %509 }
  0xec   : > { %513 = vst.msk [vmem:[#allocation2 + $0x4] sm:$0xc] %vm512_vm14, %v510_v33  ;;  %vm690_vm14 = vcmask 752640  }
  0xed   : > { %515 = vst.msk [vmem:[#allocation2 + $0x4] sm:$0xf] %vm514_vm0, %v1272_v53  ;;  %vm724_vm0 = vcmask 736256  }
  0xee   : > { %528 = vst.msk [vmem:[#allocation2 + $0x4] sm:$0x33] %vm527_vm1, %v523_v34  ;;  %vm707_vm1 = vcmask 744448  }
  0xf3   : > { %v536_v35 = vpop.permute.xlu1 %535  ;;  %v571_v39 = vpop.permute.xlu0 %570 }
  0xf4   : > { %v537_v36 = vrot.slane %v536_v35, 4 }
  0xf6   : > { %v538_v37 = vsel %vm522_vm15, %v537_v36, %v536_v35  ;;  %vm673_vm15 = vcmask 883712  }
  0xf7   : > { %543 = vst.msk [vmem:[#allocation2 + $0x4] sm:$0xcc] %vm542_vm4, %v538_v37  ;;  %vm639_vm4 = vcmask 900096  }
  0xf8   : > { %545 = vst.msk [vmem:[#allocation2 + $0x8] sm:$0xf] %vm544_vm5, %v1272_v53  ;;  %vm605_vm5 = vcmask 1039360  }
  0xf9   : > { %553 = vst.msk [vmem:[#allocation2 + $0x8] sm:$0x3] %vm552_vm6, %v550_v28  ;;  %vm821_vm6 = vcmask 588800  }
  0xfa   : > { %564 = vst.msk [vmem:[#allocation2 + $0x8] sm:$0xc] %vm563_vm7, %v561_v38 }
  0xfb   : > { %566 = vst.msk [vmem:[#allocation2 + $0x8] sm:$0xf] %vm565_vm8, %v1272_v53 }
  0xfc   : > { %574 = vst.msk [vmem:[#allocation2 + $0x8] sm:$0x3] %vm573_vm9, %v571_v39 }
  0xfe   : > { %v713_v40 = vld [vmem:[#allocation2] sm:$0xff] }
  0xff   : > { %717 = vrot.lane.b32.xlu2 %v713_v40, %s1274_s17  ;;  %700 = vrot.lane.b32.xlu0 %v713_v40, %s1275_s19  ;;  %590 = vst [vmem:[#allocation3] sm:$0xff] %v713_v40 }
 0x100   : > { %683 = vrot.lane.b32.xlu1 %v713_v40, %s1276_s20 }
 0x103   : > { %v582_v41 = vpop.permute.xlu1 %581 }
 0x104   : > { %585 = vst.msk [vmem:[#allocation2 + $0x8] sm:$0xc] %vm584_vm10, %v582_v41 }
 0x105   : > { %587 = vst.msk [vmem:[#allocation2 + $0x8] sm:$0xf] %vm586_vm11, %v1272_v53 }
 0x107   : > { %649 = vrot.lane.b32.xlu2 %v713_v40, %s1277_s21  ;;  %615 = vrot.lane.b32.xlu0 %v713_v40, %s1278_s22 }
 0x108   : > { %666 = vrot.lane.b32.xlu1 %v713_v40, %s1279_s23 }
 0x10c   : > { %v714_v42 = vld [vmem:[#allocation2 + $0x8] sm:$0xf] }
 0x10d   : > { %v697_v43 = vld [vmem:[#allocation2 + $0x8] sm:$0xf] }
 0x10e   : > { %v680_v44 = vld [vmem:[#allocation2 + $0x8] sm:$0xf] }
 0x10f   : > { %632 = vrot.lane.b32.xlu2 %v713_v40, %s1280_s24  ;;  %719 = vrot.lane.b32.xlu0 %v714_v42, %s1274_s17  ;;  %v646_v45 = vld [vmem:[#allocation2 + $0x8] sm:$0xf] }
 0x110   : > { %702 = vrot.lane.b32.xlu1 %v697_v43, %s1275_s19  ;;  %v612_v46 = vld [vmem:[#allocation2 + $0x8] sm:$0xf] }
 0x111   : > { %v663_v47 = vld [vmem:[#allocation2 + $0x8] sm:$0xf] }
 0x112   : > { %v629_v48 = vld [vmem:[#allocation2 + $0x8] sm:$0xf] }
 0x113   : > { %v594_v49 = vld [vmem:[#allocation2 + $0x8] sm:$0xf] }
 0x114   : > { %v589_v61 = vld [vmem:[#allocation2 + $0x8] sm:$0xf] }
 0x115   : > { %592 = vst.msk [vmem:[#allocation3 + $0x8] sm:$0xf] %vm591_vm12, %v589_v61 }
 0x117   : > { %685 = vrot.lane.b32.xlu2 %v680_v44, %s1276_s20  ;;  %651 = vrot.lane.b32.xlu0 %v646_v45, %s1277_s21 }
 0x118   : > { %617 = vrot.lane.b32.xlu1 %v612_v46, %s1278_s22 }
 0x11f   : > { %668 = vrot.lane.b32.xlu2 %v663_v47, %s1279_s23  ;;  %634 = vrot.lane.b32.xlu0 %v629_v48, %s1280_s24 }
 0x120   : > { %597 = vrot.lane.b32.xlu1 %v713_v40, %s1281_s25 }
 0x127   : > { %599 = vrot.lane.b32.xlu2 %v594_v49, %s1281_s25 }
 0x159   : > { %v718_v50 = vpop.permute.xlu2 %717 }
 0x15a   : > { %v721_v6 = vrot.slane %v718_v50, 4 }
 0x161   : > { %v1418_v51 = vpop.permute.xlu2 %649 }
 0x162   : > { %v653_v20 = vrot.slane %v1418_v51, 4 }
 0x169   : > { %v1420_v52 = vpop.permute.xlu2 %632 }
 0x16a   : > { %v636_v44 = vrot.slane %v1420_v52, 4 }
 0x171   : > { %v686_v54 = vpop.permute.xlu2 %685  ;;  %v701_v55 = vpop.permute.xlu0 %700 }
 0x172   : > { %v684_v56 = vpop.permute.xlu1 %683  ;;  %v688_v57 = vrot.slane %v686_v54, 4  ;;  %695 = vst.msk [vmem:[#allocation3 + $0x50] sm:$0xf] %vm591_vm12, %v686_v54  ;;  %v704_v9 = vrot.slane %v701_v55, 4 }
 0x173   : > { %v687_v58 = vrot.slane %v684_v56, 4 }
 0x175   : > { %v689_v59 = vsel %vm603_vm13, %v687_v58, %v688_v57 }
 0x176   : > { %v691_v60 = vsel %vm690_vm14, %v684_v56, %v689_v59 }
 0x177   : > { %694 = vst [vmem:[#allocation3 + $0x48] sm:$0xff] %v691_v60 }
 0x179   : > { %v669_v62 = vpop.permute.xlu2 %668  ;;  %v616_v63 = vpop.permute.xlu0 %615  ;;  %v1190_v32 = vld [vmem:[#allocation3 + $0x50] sm:$0xf] }
 0x17a   : > { %v667_v0 = vpop.permute.xlu1 %666  ;;  %v671_v1 = vrot.slane %v669_v62, 4  ;;  %678 = vst.msk [vmem:[#allocation3 + $0x44] sm:$0xf] %vm591_vm12, %v669_v62  ;;  %v619_v28 = vrot.slane %v616_v63, 4 }
 0x17b   : > { %v670_v2 = vrot.slane %v667_v0, 4 }
 0x17d   : > { %v672_v3 = vsel %vm603_vm13, %v670_v2, %v671_v1 }
 0x17e   : > { %v674_v4 = vsel %vm673_vm15, %v667_v0, %v672_v3  ;;  %v1182_v36 = vld [vmem:[#allocation3 + $0x48] sm:$0xf]  ;;  %v1211_v37 = vld [vmem:[#allocation3 + $0x4c] sm:$0xf] }
 0x17f   : > { %677 = vst [vmem:[#allocation3 + $0x3c] sm:$0xff] %v674_v4 }
 0x181   : > { %v720_v5 = vpop.permute.xlu0 %719  ;;  %v1429_v11 = vpop.permute.xlu2 %599  ;;  %v1210_v48 = vld [vmem:[#allocation3 + $0x40] sm:$0xf0] }
 0x182   : > { %v703_v7 = vpop.permute.xlu1 %702  ;;  %v722_v8 = vrot.slane %v720_v5, 4  ;;  %729 = vst.msk [vmem:[#allocation3 + $0x68] sm:$0xf] %vm591_vm12, %v720_v5  ;;  %v602_v45 = vrot.slane %v1429_v11, 4  ;;  %v1154_v5 = vld [vmem:[#allocation3 + $0x8] sm:$0xf] }
 0x183   : > { %v705_v10 = vrot.slane %v703_v7, 4  ;;  %712 = vst.msk [vmem:[#allocation3 + $0x5c] sm:$0xf] %vm591_vm12, %v703_v7 }
 0x184   : > { %v723_v12 = vsel %vm603_vm13, %v721_v6, %v722_v8  ;;  %610 = vst.msk [vmem:[#allocation3 + $0x14] sm:$0xf] %vm591_vm12, %v1429_v11 }
 0x185   : > { %v706_v13 = vsel %vm603_vm13, %v704_v9, %v705_v10  ;;  %v725_v14 = vsel %vm724_vm0, %v718_v50, %v723_v12 }
 0x186   : > { %v708_v15 = vsel %vm707_vm1, %v701_v55, %v706_v13  ;;  %v791_v16 = vunpack.c.l.b16 %v725_v14  ;;  %v792_v17 = vunpack.c.h.b16 %v725_v14  ;;  %v1209_v56 = vld [vmem:[#allocation3 + $0x38] sm:$0xf0]  ;;  %v1172_v62 = vld [vmem:[#allocation3 + $0x3c] sm:$0xf0] }
 0x187   : > { %711 = vst [vmem:[#allocation3 + $0x54] sm:$0xff] %v708_v15  ;;  %v730_v15 = vld [vmem:[%s1501_s2] sm:$0x3] }
 0x188   : > { %v806_v18 = vpack.c.b16 %v791_v16, %v791_v16  ;;  %v807_v19 = vpack.c.b16 %v792_v17, %v792_v17  ;;  %v1146_v16 = vld [vmem:[#allocation3] sm:$0xf] }
 0x189   : > { %v652_v21 = vpop.permute.xlu0 %651  ;;  %v748_v22 = vld [vmem:[#allocation3 + $0x68] sm:$0xf] }
 0x18a   : > { %v618_v23 = vpop.permute.xlu1 %617  ;;  %v654_v24 = vrot.slane %v652_v21, 4  ;;  %661 = vst.msk [vmem:[#allocation3 + $0x38] sm:$0xf] %vm591_vm12, %v652_v21  ;;  %v793_v25 = vunpack.c.l.b16 %v748_v22  ;;  %v827_v26 = vsel %vm603_vm13, %v806_v18, 0  ;;  %v830_v27 = vsel %vm603_vm13, %v807_v19, 0 }
 0x18b   : > { %v620_v29 = vrot.slane %v618_v23, 4  ;;  %627 = vst.msk [vmem:[#allocation3 + $0x20] sm:$0xf] %vm591_vm12, %v618_v23  ;;  %838 = vmatpush.bf16.msra.mxu0 %v827_v26  ;;  %851 = vmatpush.bf16.msra.mxu1 %v830_v27  ;;  %v1213_v35 = vld [vmem:[#allocation3 + $0x58] sm:$0xf0] }
 0x18c   : > { %v655_v30 = vsel %vm603_vm13, %v653_v20, %v654_v24  ;;  %v808_v31 = vpack.c.b16 %v793_v25, %v793_v25  ;;  %v1191_v47 = vor.u32 %v1213_v35, %v1190_v32  ;;  %v1204_v6 = vld [vmem:[#allocation3 + $0x10] sm:$0xf0]  ;;  %v1202_v18 = vld [vmem:[#allocation3 + $0x4] sm:$0xf]  ;;  %v874_v20 = vlaneseq }
 0x18d   : > { %v621_v33 = vsel %vm603_vm13, %v619_v28, %v620_v29  ;;  %v657_v34 = vsel %vm656_vm2, %v1418_v51, %v655_v30  ;;  %v1155_v10 = vor.u32 %v1204_v6, %v1154_v5 }
 0x18e   : > { %v623_v38 = vsel %vm622_vm3, %v616_v63, %v621_v33  ;;  %660 = vst [vmem:[#allocation3 + $0x30] sm:$0xff] %v657_v34  ;;  %v833_v39 = vsel %vm603_vm13, %v808_v31, 0  ;;  %v1212_v40 = vld [vmem:[#allocation3 + $0x50] sm:$0xf0]  ;;  %v1184_v41 = vld [vmem:[#allocation3 + $0x54] sm:$0xf0] }
 0x18f   : > { %626 = vst [vmem:[#allocation3 + $0x18] sm:$0xff] %v623_v38  ;;  %864 = vmatpush.bf16.msra.mxu2 %v833_v39  ;;  %v1183_v42 = vor.u32 %v1212_v40, %v1182_v36  ;;  %v1187_v43 = vor.u32 %v1211_v37, %v1184_v41  ;;  %v1454_v21 = vand.u32 127, %v874_v20 }
 0x191   : > { %v635_v46 = vpop.permute.xlu0 %634  ;;  %839 = vmatpush.bf16.msra.mxu0 %v1183_v42  ;;  %852 = vmatpush.bf16.msra.mxu1 %v1187_v43  ;;  %v1178_v51 = vld [vmem:[#allocation3 + $0x38] sm:$0xf]  ;;  %v1457_v22 = vadd.s32 128, %v1454_v21  ;;  %v881_v23 = vand.u32 65535, %v1454_v21  ;;  %v1462_v25 = vadd.s32 256, %v1454_v21  ;;  %v882_v26 = vshrl.u32 %v1454_v21, 16 }
 0x192   : > { %v598_v49 = vpop.permute.xlu1 %597  ;;  %v637_v50 = vrot.slane %v635_v46, 4  ;;  %644 = vst.msk [vmem:[#allocation3 + $0x2c] sm:$0xf] %vm591_vm12, %v635_v46  ;;  %v1179_v59 = vor.u32 %v1210_v48, %v1178_v51  ;;  %v1166_v2 = vld [vmem:[#allocation3 + $0x20] sm:$0xf] }
 0x193   : > { %v601_v54 = vrot.slane %v598_v49, 4  ;;  %865 = vmatpush.bf16.msra.mxu2 %v1191_v47  ;;  %v910_v24 = vand.u32 65535, %v1457_v22  ;;  %v885_v27 = vmul.u32 58254, %v881_v23  ;;  %v911_v28 = vshrl.u32 %v1457_v22, 16 }
 0x194   : > { %v638_v55 = vsel %vm603_vm13, %v636_v44, %v637_v50  ;;  %v939_v30 = vand.u32 65535, %v1462_v25  ;;  %v886_v31 = vmul.u32 14564, %v882_v26  ;;  %v884_v32 = vmul.u32 14564, %v881_v23 }
 0x195   : > { %v604_v57 = vsel %vm603_vm13, %v601_v54, %v602_v45  ;;  %v640_v58 = vsel %vm639_vm4, %v1420_v52, %v638_v55  ;;  %v1170_v60 = vld [vmem:[#allocation3 + $0x30] sm:$0xf]  ;;  %v1208_v61 = vld [vmem:[#allocation3 + $0x34] sm:$0xf]  ;;  %v914_v29 = vmul.u32 58254, %v910_v24  ;;  %v888_v33 = vshll.u32 %v885_v27, 16 }
 0x196   : > { %v606_v63 = vsel %vm605_vm5, %v598_v49, %v604_v57  ;;  %643 = vst [vmem:[#allocation3 + $0x24] sm:$0xff] %v640_v58  ;;  %v1171_v0 = vor.u32 %v1209_v56, %v1170_v60  ;;  %v1175_v1 = vor.u32 %v1208_v61, %v1172_v62  ;;  %v1158_v7 = vld [vmem:[#allocation3 + $0x18] sm:$0xf]  ;;  %v1205_v8 = vld [vmem:[#allocation3 + $0x1c] sm:$0xf]  ;;  %v940_v34 = vshrl.u32 %v1462_v25, 16 }
 0x197   : > { %609 = vst [vmem:[#allocation3 + $0xc] sm:$0xff] %v606_v63  ;;  %866 = vmatpush.bf16.msra.mxu2 %v1179_v59  ;;  %v913_v35 = vmul.u32 14564, %v910_v24  ;;  %v915_v36 = vmul.u32 14564, %v911_v28  ;;  %v917_v37 = vshll.u32 %v914_v29, 16  ;;  %v943_v38 = vmul.u32 58254, %v939_v30 }
 0x198   : > { %840 = vmatpush.bf16.msra.mxu0 %v1171_v0  ;;  %853 = vmatpush.bf16.msra.mxu1 %v1175_v1  ;;  %v890_v39 = vshll.u32 %v886_v31, 16  ;;  %vm892_vm7 = vc.u32 %v884_v32, %v888_v33  ;;  %v894_v40 = vadd.s32 %v888_v33, %v884_v32  ;;  %v942_v41 = vmul.u32 14564, %v939_v30 }
 0x199   : > { %v1207_v3 = vld [vmem:[#allocation3 + $0x28] sm:$0xf0]  ;;  %v944_v42 = vmul.u32 14564, %v940_v34  ;;  %v919_v43 = vshll.u32 %v915_v36, 16  ;;  %vm921_vm8 = vc.u32 %v913_v35, %v917_v37  ;;  %v923_v44 = vadd.s32 %v917_v37, %v913_v35 }
 0x19a   : > { %v1167_v4 = vor.u32 %v1207_v3, %v1166_v2  ;;  %v887_v45 = vmul.u32 58254, %v882_v26  ;;  %v946_v46 = vshll.u32 %v943_v38, 16  ;;  %v893_v47 = vsel %vm892_vm7, 1, %v1272_v53 }
 0x19b   : > { %v916_v48 = vmul.u32 58254, %v911_v28  ;;  %v948_v49 = vshll.u32 %v944_v42, 16  ;;  %vm896_vm9 = vc.u32 %v894_v40, %v890_v39  ;;  %v922_v50 = vsel %vm921_vm8, 1, %v1272_v53 }
 0x19c   : > { %867 = vmatpush.bf16.msra.mxu2 %v1167_v4  ;;  %vm950_vm10 = vc.u32 %v942_v41, %v946_v46  ;;  %v952_v51 = vadd.s32 %v946_v46, %v942_v41  ;;  %vm925_vm11 = vc.u32 %v923_v44, %v919_v43  ;;  %v945_v54 = vmul.u32 58254, %v940_v34 }
 0x19d   : > { %v1206_v52 = vld [vmem:[#allocation3 + $0x20] sm:$0xf0]  ;;  %v1160_v9 = vld [vmem:[#allocation3 + $0x24] sm:$0xf0]  ;;  %v895_v55 = vadd.s32 %v893_v47, %v887_v45  ;;  %v951_v56 = vsel %vm950_vm10, 1, %v1272_v53  ;;  %v897_v57 = vsel %vm896_vm9, 1, %v1272_v53  ;;  %v924_v58 = vadd.s32 %v922_v50, %v916_v48 }
 0x19e   : > { %v1159_v11 = vor.u32 %v1206_v52, %v1158_v7  ;;  %v1163_v12 = vor.u32 %v1205_v8, %v1160_v9  ;;  %v1203_v13 = vld [vmem:[#allocation3 + $0x8] sm:$0xf0]  ;;  %v1148_v14 = vld [vmem:[#allocation3 + $0xc] sm:$0xf0]  ;;  %vm954_vm14 = vc.u32 %v952_v51, %v948_v49  ;;  %v926_v59 = vsel %vm925_vm11, 1, %v1272_v53 }
 0x19f   : > { %v1147_v17 = vor.u32 %v1203_v13, %v1146_v16  ;;  %v1151_v19 = vor.u32 %v1202_v18, %v1148_v14  ;;  %v953_v60 = vadd.s32 %v951_v56, %v945_v54  ;;  %v889_v61 = vshrl.u32 %v885_v27, 16 }
 0x1a0   : > { %841 = vmatpush.bf16.msra.mxu0 %v1159_v11  ;;  %854 = vmatpush.bf16.msra.mxu1 %v1163_v12  ;;  %v899_v62 = vadd.s32 %v897_v57, %v895_v55  ;;  %v955_v63 = vsel %vm954_vm14, 1, %v1272_v53  ;;  %v918_v0 = vshrl.u32 %v914_v29, 16  ;;  %v928_v1 = vadd.s32 %v926_v59, %v924_v58 }
 0x1a1   : > { %868 = vmatpush.bf16.msra.mxu2 %v1155_v10  ;;  %v947_v2 = vshrl.u32 %v943_v38, 16  ;;  %v957_v3 = vadd.s32 %v955_v63, %v953_v60  ;;  %v891_v4 = vshrl.u32 %v886_v31, 16  ;;  %v920_v6 = vshrl.u32 %v915_v36, 16 }
 0x1a2   : > { %v900_v5 = vadd.s32 %v899_v62, %v889_v61  ;;  %v929_v7 = vadd.s32 %v928_v1, %v918_v0  ;;  %v949_v52 = vshrl.u32 %v944_v42, 16  ;;  %vm1009_vm11 = vcmask 1043458  }
 0x1a3   : > { %v958_v8 = vadd.s32 %v957_v3, %v947_v2  ;;  %vm999_vm14 = vcmask 1041408  }
 0x1a4   : > { %1194 = vmatmul.msk.bf16.vlgmr.msra.gmra.mxu2 %vm821_vm6, %v730_v15  ;;  %842 = vmatpush.bf16.msra.mxu0 %v1147_v17  ;;  %v901_v9 = vadd.s32 %v900_v5, %v891_v4  ;;  %v930_v10 = vadd.s32 %v929_v7, %v920_v6 }
 0x1a5   : > { %855 = vmatpush.bf16.msra.mxu1 %v1151_v19  ;;  %v959_v11 = vadd.s32 %v958_v8, %v949_v52 }
 0x1a6   : > { %v902_v12 = vshrl.u32 %v901_v9, 4  ;;  %v931_v13 = vshrl.u32 %v930_v10, 4 }
 0x1a7   : > { %1192 = vmatmul.msk.bf16.vlgmr.msra.gmra.mxu0 %vm821_vm6, %v730_v15  ;;  %v960_v14 = vshrl.u32 %v959_v11, 4 }
 0x1a8   : > { %1193 = vmatmul.msk.bf16.vlgmr.msra.gmra.mxu1 %vm821_vm6, %v730_v15  ;;  %v903_v15 = vmul.u32 18, %v902_v12  ;;  %v932_v16 = vmul.u32 18, %v931_v13 }
 0x1a9   : > { %v961_v17 = vmul.u32 18, %v960_v14 }
 0x1aa   : > { %v904_v53 = vsub.s32 %v1454_v21, %v903_v15  ;;  %v933_v18 = vsub.s32 %v1457_v22, %v932_v16  ;;  %v1282_v22 = vmov 0.0  }
 0x1ab   : > { %v962_v19 = vsub.s32 %v1462_v25, %v961_v17 }
 0x1ac   : > { %vm965_vm15 = vcmp.ne.s32.totalorder %v904_v53, 0  ;;  %vm968_vm0 = vcmp.lt.s32.totalorder %v904_v53, 0  ;;  %vm966_vm1 = vcmp.ne.s32.totalorder %v933_v18, 0  ;;  %vm969_vm2 = vcmp.lt.s32.totalorder %v933_v18, 0 }
 0x1ad   : > { %v974_v20 = vadd.s32 18, %v904_v53  ;;  %vm971_vm3 = vmand %vm968_vm0, %vm965_vm15  ;;  %v975_v23 = vadd.s32 18, %v933_v18  ;;  %vm967_vm4 = vcmp.ne.s32.totalorder %v962_v19, 0  ;;  %vm970_vm5 = vcmp.lt.s32.totalorder %v962_v19, 0 }
 0x1ae   : > { %vm972_vm6 = vmand %vm969_vm2, %vm966_vm1  ;;  %v976_v24 = vadd.s32 18, %v962_v19  ;;  %vm1011_vm15 = vcmask 259076   ;;  %vm1003_vm1 = vcmask 1045508  }
 0x1af   : > { %v977_v26 = vsel %vm971_vm3, %v974_v20, %v904_v53  ;;  %vm973_vm7 = vmand %vm970_vm5, %vm967_vm4  ;;  %v978_v27 = vsel %vm972_vm6, %v975_v23, %v933_v18  ;;  %vm1021_vm3 = vcmask 3072   ;;  %vm1033_vm4 = vcmask 11272  }
 0x1b0   : > { %vm980_vm8 = vcmp.lt.s32.totalorder %v977_v26, 16  ;;  %v979_v21 = vsel %vm973_vm7, %v976_v24, %v962_v19  ;;  %vm981_vm9 = vcmp.lt.s32.totalorder %v978_v27, 16  ;;  %vm1010_vm0 = vmor %vm1009_vm11, %vm999_vm14 }
 0x1b1   : > { %v1195_v28 = vsel %vm980_vm8, 1.0, %v1282_v22  ;;  %vm982_vm10 = vcmp.lt.s32.totalorder %v979_v21, 16  ;;  %v1196_v25 = vsel %vm981_vm9, 1.0, %v1282_v22  ;;  %vm1012_vm2 = vmor %vm1011_vm15, %vm1010_vm0 }
 0x1b2   : > { %v1197_v32 = vsel %vm982_vm10, 1.0, %v1282_v22 }
 0x224   : > { %v844_v29 = vpop.f32.mrf.mxu0 }
 0x225   : > { %v989_v30 = vmul.f32 %v1195_v28, %v844_v29  ;;  %v857_v31 = vpop.f32.mrf.mxu1 }
 0x226   : > { %v990_v33 = vmul.f32 %v1196_v25, %v857_v31 }
 0x227   : > { %v1023_v34 = vmul.f32 %v989_v30, %v989_v30  ;;  %v870_v35 = vpop.f32.mrf.mxu2  ;;  %v1014_v36 = vsel %vm603_vm13, %v989_v30, 0.0 }
 0x228   : > { %v992_v37 = vpack.c.bf16 %v990_v33, %v989_v30  ;;  %v1024_v38 = vmul.f32 %v990_v33, %v990_v33  ;;  %v991_v39 = vmul.f32 %v1197_v32, %v870_v35  ;;  %v1015_v40 = vsel %vm603_vm13, %v990_v33, 0.0 }
 0x229   : > { %v1016_v41 = vadd.f32 %v1015_v40, %v1014_v36  ;;  %v1026_v42 = vsel %vm603_vm13, %v1023_v34, 0.0 }
 0x22a   : > { %v996_v43 = vrot.slane %v992_v37, 2  ;;  %v993_v44 = vpack.c.bf16 %v991_v39, %v991_v39  ;;  %v1017_v45 = vsel %vm591_vm12, %v991_v39, 0.0  ;;  %v1025_v46 = vmul.f32 %v991_v39, %v991_v39 }
 0x22b   : > { %v1018_v47 = vadd.f32 %v1017_v45, %v1016_v41  ;;  %v1027_v48 = vsel %vm603_vm13, %v1024_v38, 0.0 }
 0x22c   : > { %v997_v49 = vrot.slane %v993_v44, 4  ;;  %v998_v50 = vrot.slane %v993_v44, 6  ;;  %v846_v51 = vpop.f32.mrf.mxu0  ;;  %v1028_v54 = vadd.f32 %v1027_v48, %v1026_v42  ;;  %v1029_v56 = vsel %vm591_vm12, %v1025_v46, 0.0 }
 0x22d   : > { %1019 = vadd.xlane.f32.xlu0 %v1018_v47  ;;  %v859_v55 = vpop.f32.mrf.mxu1  ;;  %v1002_v57 = vsel %vm999_vm14, %v992_v37, %v996_v43 }
 0x22e   : > { %v1006_v58 = vsel %vm1003_vm1, %v997_v49, %v998_v50  ;;  %v1030_v59 = vadd.f32 %v1029_v56, %v1028_v54 }
 0x22f   : > { %v1007_v60 = vsel %vm603_vm13, %v1002_v57, %v1006_v58  ;;  %v872_v61 = vpop.f32.mrf.mxu2 }
 0x230   : > { %1013 = vst.msk [vmem:[%s224_s5] sm:$0x3f] %vm1012_vm2, %v1007_v60  ;;  %1031 = vadd.xlane.f32.xlu1 %v1030_v59 }
 0x2a0   : > { %v1020_v62 = vpop.xlane.xlu0 %1019 }
 0x2a1   : > { %1022 = vst.msk [vmem:[%s228_s8] sm:$0xf] %vm1021_vm3, %v1020_v62 }
 0x2a3   : > { %v1032_v63 = vpop.xlane.xlu1 %1031 }
 0x2a4   : > { %1034 = vst.msk [vmem:[%s228_s8] sm:$0xf] %vm1033_vm4, %v1032_v63 }
 0x2a5 PF: > { %s15_s15 = sadd.s32 1, %s1255_s15  }
 0x2a6   : > { %p12_p4 = scmp.ge.s32.totalorder %s15_s15, 4  }
 0x2a8   :  { %14 = sbr.rel (!%p12_p4) target bundleno = 1 (0x1), region = 93 }

</bundles_post_ra>
